<compile_context>
chip_gen: v5e
topology: v5e:2x2
jax: 0.10.0
libtpu: 0.0.40
codegen_flags: <defaults>
</compile_context>

<pallas_src>
import functools

import jax
import jax.numpy as jnp
from jax.experimental import pallas as pl
from jax.experimental.pallas import tpu as pltpu


def _hipp_rnn_head_kernel(x_ref, wih_ref, whh_ref, b_ref,
                          w1_ref, b1_ref, w2_ref, b2_ref,
                          o_ref, gx_ref, *, seq_len, batch, hp):
    """Fused LSTM recurrence + predictor MLP (single invocation, everything VMEM-resident).

    x_ref:   (S*BP, F)     bf16   lane-contiguous input slab
    wih_ref: (F, 4*HP)     bf16   per-gate zero-padded to HP lanes
    whh_ref: (HP, 4*HP)    bf16   per-gate zero-padded, zero rows beyond H
    b_ref:   (1, 4*HP)     f32
    w1_ref:  (HP, hid)     bf16 ; b1_ref: (1, hid) f32
    w2_ref:  (hid, DP)     bf16 ; b2_ref: (1, DP)  f32
    o_ref:   (BP, DP)      f32    lane-dense output
    gx_ref:  (S*BP, 4*HP)  f32    VMEM scratch for the hoisted input projection
    """
    # Hoisted input projection + bias: one big MXU pass, completely off the serial chain.
    gx_ref[...] = (jnp.dot(x_ref[...], wih_ref[...],
                           preferred_element_type=jnp.float32) + b_ref[...])

    # Zero initial LSTM state (self.last_states is None for pass_states=None),
    # carried as register values across the unrolled recurrence.
    h = jnp.zeros((batch, hp), jnp.float32)
    c = jnp.zeros((batch, hp), jnp.float32)

    for t in range(seq_len):
        gx = gx_ref[t * batch:(t + 1) * batch, :]                    # (BP, 4HP) f32
        if t == 0:
            g = gx                                                   # h == 0: skip the matmul
        else:
            g = gx + jnp.dot(h.astype(jnp.bfloat16), whh_ref[...],
                             preferred_element_type=jnp.float32)
        # torch nn.LSTM gate order: i, f, g, o. Each slice is a full lane-aligned
        # (BP, HP) block (HP multiple of 128) -> no cross-lane shuffles on the chain.
        i_g = jax.nn.sigmoid(g[:, 0 * hp:1 * hp])
        f_g = jax.nn.sigmoid(g[:, 1 * hp:2 * hp])
        g_g = jnp.tanh(g[:, 2 * hp:3 * hp])
        o_g = jax.nn.sigmoid(g[:, 3 * hp:4 * hp])
        c = f_g * c + i_g * g_g                                      # f32 cell state
        h = o_g * jnp.tanh(c)                                        # f32 hidden state

    # Predictor MLP on the last hidden state: Linear -> ReLU -> Linear (f32 epilogue,
    # bf16 only on the operands that feed the MXU).
    z = jnp.dot(h.astype(jnp.bfloat16), w1_ref[...],
                preferred_element_type=jnp.float32) + b1_ref[...]
    z = jnp.maximum(z, 0.0)
    y = jnp.dot(z.astype(jnp.bfloat16), w2_ref[...],
                preferred_element_type=jnp.float32) + b2_ref[...]
    o_ref[...] = y.astype(o_ref.dtype)                               # lane-dense full vst


def _pad_axis(a, axis, new_size):
    if a.shape[axis] == new_size:
        return a
    pad = [(0, 0)] * a.ndim
    pad[axis] = (0, new_size - a.shape[axis])
    return jnp.pad(a, pad)


def hipp_rnn_head_forward(input_embd, w_ih, w_hh, b_lstm, w1, b1, w2, b2):
    """HippRNNHead.forward, rnn_type='default' (single-layer unidirectional nn.LSTM).

    input_embd: (S, B, F) f32
    w_ih: (F, 4H), w_hh: (H, 4H), b_lstm: (4H,)  [= b_ih + b_hh, gate order i,f,g,o]
    w1: (H, hid), b1: (hid,), w2: (hid, d_out), b2: (d_out,)
    returns (B, d_out) f32
    """
    S, B, F = input_embd.shape
    H = w_hh.shape[0]
    hid = w1.shape[1]
    d_out = w2.shape[1]

    BP = max(16, int(pl.cdiv(B, 16)) * 16)        # bf16 sublane packing: 16 rows
    HP = max(128, int(pl.cdiv(H, 128)) * 128)     # per-gate lane padding (lane-aligned gates)
    DP = max(128, int(pl.cdiv(d_out, 128)) * 128)  # lane-dense output (unmasked vst)

    # Input: pad batch rows, flatten to a lane-contiguous (S*BP, F) bf16 slab.
    x = input_embd.astype(jnp.bfloat16)
    if BP != B:
        x = jnp.pad(x, ((0, 0), (0, BP - B), (0, 0)))
    x = x.reshape(S * BP, F)

    def pad_gates_lastdim(w):
        # Last dim is 4H (gate order i,f,g,o); zero-pad each gate block from H to HP lanes.
        lead = w.shape[:-1]
        w4 = w.reshape(*lead, 4, H)
        w4 = _pad_axis(w4, -1, HP)
        return w4.reshape(*lead, 4 * HP)

    wih_p = pad_gates_lastdim(w_ih.astype(jnp.float32))              # (F, 4HP)
    whh_p = pad_gates_lastdim(w_hh.astype(jnp.float32))              # (H, 4HP)
    whh_p = _pad_axis(whh_p, 0, HP)                                  # (HP, 4HP), zero h rows
    b_p = pad_gates_lastdim(b_lstm.astype(jnp.float32)).reshape(1, 4 * HP)
    w1_p = _pad_axis(w1.astype(jnp.float32), 0, HP)                  # (HP, hid), zero rows
    w2_p = _pad_axis(w2.astype(jnp.float32), 1, DP)                  # (hid, DP)
    b2_p = _pad_axis(b2.astype(jnp.float32), 0, DP).reshape(1, DP)

    kernel = functools.partial(_hipp_rnn_head_kernel, seq_len=S, batch=BP, hp=HP)

    out = pl.pallas_call(
        kernel,
        out_shape=jax.ShapeDtypeStruct((BP, DP), jnp.float32),
        scratch_shapes=[
            pltpu.VMEM((S * BP, 4 * HP), jnp.float32),   # hoisted gates_x
        ],
    )(
        x,
        wih_p.astype(jnp.bfloat16),
        whh_p.astype(jnp.bfloat16),
        b_p,
        w1_p.astype(jnp.bfloat16),
        b1.reshape(1, hid).astype(jnp.float32),
        w2_p.astype(jnp.bfloat16),
        b2_p,
    )
    return out[:B, :d_out]


def _kaiming_uniform(key, fan_in, shape, dtype=jnp.float32):
    bound = jnp.sqrt(6.0 / fan_in)
    return jax.random.uniform(key, shape, dtype, minval=-bound, maxval=bound)


def _reference(input_embd, w_ih, w_hh, b_lstm, w1, b1, w2, b2):
    # Pure-JAX reference mirroring the kernel's bf16-operand / f32-accumulate numerics
    # (jax.nn.sigmoid to match the kernel).
    S, B, F = input_embd.shape
    H = w_hh.shape[0]
    x = input_embd.astype(jnp.bfloat16)
    wih = w_ih.astype(jnp.bfloat16)
    whh = w_hh.astype(jnp.bfloat16)
    h = jnp.zeros((B, H), jnp.float32)
    c = jnp.zeros((B, H), jnp.float32)
    for t in range(S):
        gates = (jnp.dot(x[t], wih, preferred_element_type=jnp.float32)
                 + jnp.dot(h.astype(jnp.bfloat16), whh,
                           preferred_element_type=jnp.float32)
                 + b_lstm)
        i_g = jax.nn.sigmoid(gates[:, 0 * H:1 * H])
        f_g = jax.nn.sigmoid(gates[:, 1 * H:2 * H])
        g_g = jnp.tanh(gates[:, 2 * H:3 * H])
        o_g = jax.nn.sigmoid(gates[:, 3 * H:4 * H])
        c = f_g * c + i_g * g_g
        h = o_g * jnp.tanh(c)
    z = jnp.maximum(jnp.dot(h.astype(jnp.bfloat16), w1.astype(jnp.bfloat16),
                            preferred_element_type=jnp.float32) + b1, 0.0)
    y = jnp.dot(z.astype(jnp.bfloat16), w2.astype(jnp.bfloat16),
                preferred_element_type=jnp.float32) + b2
    return y


if __name__ == "__main__":
    # Small shapes implied by the forward: input_embd is (seq, batch, feat).
    S, B, F = 8, 4, 16
    H = 32          # LSTM hidden size (per-gate lane-padded to 128 inside the wrapper)
    hid = 128       # predictor MLP hidden
    d_out = 64      # predictor MLP output (padded to 128 lanes inside the wrapper)

    key = jax.random.PRNGKey(0)
    ks = jax.random.split(key, 8)

    input_embd = jax.random.normal(ks[0], (S, B, F), jnp.float32)

    # torch nn.LSTM default init: U(-1/sqrt(H), 1/sqrt(H)); b_lstm plays the role of b_ih+b_hh.
    bound = 1.0 / jnp.sqrt(jnp.float32(H))
    w_ih = jax.random.uniform(ks[1], (F, 4 * H), jnp.float32, -bound, bound)
    w_hh = jax.random.uniform(ks[2], (H, 4 * H), jnp.float32, -bound, bound)
    b_lstm = jax.random.uniform(ks[3], (4 * H,), jnp.float32, -2 * bound, 2 * bound)

    # predictor MLP, kaiming-style init (module init_weights uses 'kaiming').
    w1 = _kaiming_uniform(ks[4], H, (H, hid))
    b1 = jax.random.uniform(ks[5], (hid,), jnp.float32,
                            minval=-1.0 / jnp.sqrt(jnp.float32(H)),
                            maxval=1.0 / jnp.sqrt(jnp.float32(H)))
    w2 = _kaiming_uniform(ks[6], hid, (hid, d_out))
    b2 = jax.random.uniform(ks[7], (d_out,), jnp.float32,
                            minval=-1.0 / jnp.sqrt(jnp.float32(hid)),
                            maxval=1.0 / jnp.sqrt(jnp.float32(hid)))

    out = hipp_rnn_head_forward(input_embd, w_ih, w_hh, b_lstm, w1, b1, w2, b2)
    out = jax.block_until_ready(out)

    ref = _reference(input_embd, w_ih, w_hh, b_lstm, w1, b1, w2, b2)
    assert out.shape == (B, d_out)
    assert jnp.allclose(out, ref, atol=1e-2, rtol=1e-2), float(jnp.max(jnp.abs(out - ref)))

    print("KERNEL_OK")
</pallas_src>

<mosaic_0001>
module attributes {stable_mosaic.version = 11 : i64} {
  func.func @_hipp_rnn_head_kernel(%arg0: memref<128x16xbf16, #tpu.memory_space<vmem>>, %arg1: memref<16x512xbf16, #tpu.memory_space<vmem>>, %arg2: memref<128x512xbf16, #tpu.memory_space<vmem>>, %arg3: memref<1x512xf32, #tpu.memory_space<vmem>>, %arg4: memref<128x128xbf16, #tpu.memory_space<vmem>>, %arg5: memref<1x128xf32, #tpu.memory_space<vmem>>, %arg6: memref<128x128xbf16, #tpu.memory_space<vmem>>, %arg7: memref<1x128xf32, #tpu.memory_space<vmem>>, %arg8: memref<16x128xf32, #tpu.memory_space<vmem>>, %arg9: memref<128x512xf32, #tpu.memory_space<vmem>>) attributes {dimension_semantics = [], scalar_prefetch = 0 : i64, scratch_operands = 1 : i64, tpu.core_type = #tpu.core_type<tc>} {
    %c0 = arith.constant 0 : index
    %c0_0 = arith.constant 0 : index
    %0 = vector.load %arg0[%c0, %c0_0] : memref<128x16xbf16, #tpu.memory_space<vmem>>, vector<128x16xbf16>
    %c0_1 = arith.constant 0 : index
    %c0_2 = arith.constant 0 : index
    %1 = vector.load %arg1[%c0_1, %c0_2] : memref<16x512xbf16, #tpu.memory_space<vmem>>, vector<16x512xbf16>
    %cst = arith.constant dense<0.000000e+00> : vector<128x512xf32>
    %2 = tpu.matmul %0, %1, %cst {dimension_numbers = #tpu.dot_dimension_numbers<[1], [0], [0], [1], [0, 0, 1, 1], [], []>} : vector<128x16xbf16>, vector<16x512xbf16>, vector<128x512xf32> -> vector<128x512xf32>
    %c0_3 = arith.constant 0 : index
    %c0_4 = arith.constant 0 : index
    %3 = vector.load %arg3[%c0_3, %c0_4] : memref<1x512xf32, #tpu.memory_space<vmem>>, vector<1x512xf32>
    %4 = vector.broadcast %3 : vector<1x512xf32> to vector<128x512xf32>
    %5 = arith.addf %2, %4 : vector<128x512xf32>
    %c0_5 = arith.constant 0 : index
    %c0_6 = arith.constant 0 : index
    %6 = vector.load %arg9[%c0_5, %c0_6] : memref<128x512xf32, #tpu.memory_space<vmem>>, vector<128x512xf32>
    tpu.vector_store %arg9[%c0_5, %c0_6], %5 {strides = array<i32>} : memref<128x512xf32, #tpu.memory_space<vmem>>, vector<128x512xf32>,
    %cst_7 = arith.constant 0.000000e+00 : f32
    %7 = vector.broadcast %cst_7 : f32 to vector<16x128xf32>
    %c0_8 = arith.constant 0 : index
    %c0_9 = arith.constant 0 : index
    %8 = vector.load %arg9[%c0_8, %c0_9] : memref<128x512xf32, #tpu.memory_space<vmem>>, vector<16x512xf32>
    %9 = vector.extract_strided_slice %8 {offsets = [0, 0], sizes = [16, 128], strides = [1, 1]} : vector<16x512xf32> to vector<16x128xf32>
    %10 = arith.negf %9 : vector<16x128xf32>
    %11 = math.exp %10 : vector<16x128xf32>
    %cst_10 = arith.constant 1.000000e+00 : f32
    %12 = vector.broadcast %cst_10 : f32 to vector<16x128xf32>
    %13 = arith.addf %12, %11 : vector<16x128xf32>
    %14 = arith.divf %12, %13 : vector<16x128xf32>
    %15 = vector.extract_strided_slice %8 {offsets = [0, 128], sizes = [16, 128], strides = [1, 1]} : vector<16x512xf32> to vector<16x128xf32>
    %16 = arith.negf %15 : vector<16x128xf32>
    %17 = math.exp %16 : vector<16x128xf32>
    %cst_11 = arith.constant 1.000000e+00 : f32
    %18 = vector.broadcast %cst_11 : f32 to vector<16x128xf32>
    %19 = arith.addf %18, %17 : vector<16x128xf32>
    %20 = arith.divf %18, %19 : vector<16x128xf32>
    %21 = vector.extract_strided_slice %8 {offsets = [0, 256], sizes = [16, 128], strides = [1, 1]} : vector<16x512xf32> to vector<16x128xf32>
    %22 = math.tanh %21 : vector<16x128xf32>
    %23 = vector.extract_strided_slice %8 {offsets = [0, 384], sizes = [16, 128], strides = [1, 1]} : vector<16x512xf32> to vector<16x128xf32>
    %24 = arith.negf %23 : vector<16x128xf32>
    %25 = math.exp %24 : vector<16x128xf32>
    %cst_12 = arith.constant 1.000000e+00 : f32
    %26 = vector.broadcast %cst_12 : f32 to vector<16x128xf32>
    %27 = arith.addf %26, %25 : vector<16x128xf32>
    %28 = arith.divf %26, %27 : vector<16x128xf32>
    %29 = arith.mulf %20, %7 : vector<16x128xf32>
    %30 = arith.mulf %14, %22 : vector<16x128xf32>
    %31 = arith.addf %29, %30 : vector<16x128xf32>
    %32 = math.tanh %31 : vector<16x128xf32>
    %33 = arith.mulf %28, %32 : vector<16x128xf32>
    %c16 = arith.constant 16 : index
    %c0_13 = arith.constant 0 : index
    %34 = vector.load %arg9[%c16, %c0_13] : memref<128x512xf32, #tpu.memory_space<vmem>>, vector<16x512xf32>
    %35 = arith.truncf %33 : vector<16x128xf32> to vector<16x128xbf16>
    %c0_14 = arith.constant 0 : index
    %c0_15 = arith.constant 0 : index
    %36 = vector.load %arg2[%c0_14, %c0_15] : memref<128x512xbf16, #tpu.memory_space<vmem>>, vector<128x512xbf16>
    %cst_16 = arith.constant dense<0.000000e+00> : vector<16x512xf32>
    %37 = tpu.matmul %35, %36, %cst_16 {dimension_numbers = #tpu.dot_dimension_numbers<[1], [0], [0], [1], [0, 0, 1, 1], [], []>} : vector<16x128xbf16>, vector<128x512xbf16>, vector<16x512xf32> -> vector<16x512xf32>
    %38 = arith.addf %34, %37 : vector<16x512xf32>
    %39 = vector.extract_strided_slice %38 {offsets = [0, 0], sizes = [16, 128], strides = [1, 1]} : vector<16x512xf32> to vector<16x128xf32>
    %40 = arith.negf %39 : vector<16x128xf32>
    %41 = math.exp %40 : vector<16x128xf32>
    %cst_17 = arith.constant 1.000000e+00 : f32
    %42 = vector.broadcast %cst_17 : f32 to vector<16x128xf32>
    %43 = arith.addf %42, %41 : vector<16x128xf32>
    %44 = arith.divf %42, %43 : vector<16x128xf32>
    %45 = vector.extract_strided_slice %38 {offsets = [0, 128], sizes = [16, 128], strides = [1, 1]} : vector<16x512xf32> to vector<16x128xf32>
    %46 = arith.negf %45 : vector<16x128xf32>
    %47 = math.exp %46 : vector<16x128xf32>
    %cst_18 = arith.constant 1.000000e+00 : f32
    %48 = vector.broadcast %cst_18 : f32 to vector<16x128xf32>
    %49 = arith.addf %48, %47 : vector<16x128xf32>
    %50 = arith.divf %48, %49 : vector<16x128xf32>
    %51 = vector.extract_strided_slice %38 {offsets = [0, 256], sizes = [16, 128], strides = [1, 1]} : vector<16x512xf32> to vector<16x128xf32>
    %52 = math.tanh %51 : vector<16x128xf32>
    %53 = vector.extract_strided_slice %38 {offsets = [0, 384], sizes = [16, 128], strides = [1, 1]} : vector<16x512xf32> to vector<16x128xf32>
    %54 = arith.negf %53 : vector<16x128xf32>
    %55 = math.exp %54 : vector<16x128xf32>
    %cst_19 = arith.constant 1.000000e+00 : f32
    %56 = vector.broadcast %cst_19 : f32 to vector<16x128xf32>
    %57 = arith.addf %56, %55 : vector<16x128xf32>
    %58 = arith.divf %56, %57 : vector<16x128xf32>
    %59 = arith.mulf %50, %31 : vector<16x128xf32>
    %60 = arith.mulf %44, %52 : vector<16x128xf32>
    %61 = arith.addf %59, %60 : vector<16x128xf32>
    %62 = math.tanh %61 : vector<16x128xf32>
    %63 = arith.mulf %58, %62 : vector<16x128xf32>
    %c32 = arith.constant 32 : index
    %c0_20 = arith.constant 0 : index
    %64 = vector.load %arg9[%c32, %c0_20] : memref<128x512xf32, #tpu.memory_space<vmem>>, vector<16x512xf32>
    %65 = arith.truncf %63 : vector<16x128xf32> to vector<16x128xbf16>
    %c0_21 = arith.constant 0 : index
    %c0_22 = arith.constant 0 : index
    %66 = vector.load %arg2[%c0_21, %c0_22] : memref<128x512xbf16, #tpu.memory_space<vmem>>, vector<128x512xbf16>
    %cst_23 = arith.constant dense<0.000000e+00> : vector<16x512xf32>
    %67 = tpu.matmul %65, %66, %cst_23 {dimension_numbers = #tpu.dot_dimension_numbers<[1], [0], [0], [1], [0, 0, 1, 1], [], []>} : vector<16x128xbf16>, vector<128x512xbf16>, vector<16x512xf32> -> vector<16x512xf32>
    %68 = arith.addf %64, %67 : vector<16x512xf32>
    %69 = vector.extract_strided_slice %68 {offsets = [0, 0], sizes = [16, 128], strides = [1, 1]} : vector<16x512xf32> to vector<16x128xf32>
    %70 = arith.negf %69 : vector<16x128xf32>
    %71 = math.exp %70 : vector<16x128xf32>
    %cst_24 = arith.constant 1.000000e+00 : f32
    %72 = vector.broadcast %cst_24 : f32 to vector<16x128xf32>
    %73 = arith.addf %72, %71 : vector<16x128xf32>
    %74 = arith.divf %72, %73 : vector<16x128xf32>
    %75 = vector.extract_strided_slice %68 {offsets = [0, 128], sizes = [16, 128], strides = [1, 1]} : vector<16x512xf32> to vector<16x128xf32>
    %76 = arith.negf %75 : vector<16x128xf32>
    %77 = math.exp %76 : vector<16x128xf32>
    %cst_25 = arith.constant 1.000000e+00 : f32
    %78 = vector.broadcast %cst_25 : f32 to vector<16x128xf32>
    %79 = arith.addf %78, %77 : vector<16x128xf32>
    %80 = arith.divf %78, %79 : vector<16x128xf32>
    %81 = vector.extract_strided_slice %68 {offsets = [0, 256], sizes = [16, 128], strides = [1, 1]} : vector<16x512xf32> to vector<16x128xf32>
    %82 = math.tanh %81 : vector<16x128xf32>
    %83 = vector.extract_strided_slice %68 {offsets = [0, 384], sizes = [16, 128], strides = [1, 1]} : vector<16x512xf32> to vector<16x128xf32>
    %84 = arith.negf %83 : vector<16x128xf32>
    %85 = math.exp %84 : vector<16x128xf32>
    %cst_26 = arith.constant 1.000000e+00 : f32
    %86 = vector.broadcast %cst_26 : f32 to vector<16x128xf32>
    %87 = arith.addf %86, %85 : vector<16x128xf32>
    %88 = arith.divf %86, %87 : vector<16x128xf32>
    %89 = arith.mulf %80, %61 : vector<16x128xf32>
    %90 = arith.mulf %74, %82 : vector<16x128xf32>
    %91 = arith.addf %89, %90 : vector<16x128xf32>
    %92 = math.tanh %91 : vector<16x128xf32>
    %93 = arith.mulf %88, %92 : vector<16x128xf32>
    %c48 = arith.constant 48 : index
    %c0_27 = arith.constant 0 : index
    %94 = vector.load %arg9[%c48, %c0_27] : memref<128x512xf32, #tpu.memory_space<vmem>>, vector<16x512xf32>
    %95 = arith.truncf %93 : vector<16x128xf32> to vector<16x128xbf16>
    %c0_28 = arith.constant 0 : index
    %c0_29 = arith.constant 0 : index
    %96 = vector.load %arg2[%c0_28, %c0_29] : memref<128x512xbf16, #tpu.memory_space<vmem>>, vector<128x512xbf16>
    %cst_30 = arith.constant dense<0.000000e+00> : vector<16x512xf32>
    %97 = tpu.matmul %95, %96, %cst_30 {dimension_numbers = #tpu.dot_dimension_numbers<[1], [0], [0], [1], [0, 0, 1, 1], [], []>} : vector<16x128xbf16>, vector<128x512xbf16>, vector<16x512xf32> -> vector<16x512xf32>
    %98 = arith.addf %94, %97 : vector<16x512xf32>
    %99 = vector.extract_strided_slice %98 {offsets = [0, 0], sizes = [16, 128], strides = [1, 1]} : vector<16x512xf32> to vector<16x128xf32>
    %100 = arith.negf %99 : vector<16x128xf32>
    %101 = math.exp %100 : vector<16x128xf32>
    %cst_31 = arith.constant 1.000000e+00 : f32
    %102 = vector.broadcast %cst_31 : f32 to vector<16x128xf32>
    %103 = arith.addf %102, %101 : vector<16x128xf32>
    %104 = arith.divf %102, %103 : vector<16x128xf32>
    %105 = vector.extract_strided_slice %98 {offsets = [0, 128], sizes = [16, 128], strides = [1, 1]} : vector<16x512xf32> to vector<16x128xf32>
    %106 = arith.negf %105 : vector<16x128xf32>
    %107 = math.exp %106 : vector<16x128xf32>
    %cst_32 = arith.constant 1.000000e+00 : f32
    %108 = vector.broadcast %cst_32 : f32 to vector<16x128xf32>
    %109 = arith.addf %108, %107 : vector<16x128xf32>
    %110 = arith.divf %108, %109 : vector<16x128xf32>
    %111 = vector.extract_strided_slice %98 {offsets = [0, 256], sizes = [16, 128], strides = [1, 1]} : vector<16x512xf32> to vector<16x128xf32>
    %112 = math.tanh %111 : vector<16x128xf32>
    %113 = vector.extract_strided_slice %98 {offsets = [0, 384], sizes = [16, 128], strides = [1, 1]} : vector<16x512xf32> to vector<16x128xf32>
    %114 = arith.negf %113 : vector<16x128xf32>
    %115 = math.exp %114 : vector<16x128xf32>
    %cst_33 = arith.constant 1.000000e+00 : f32
    %116 = vector.broadcast %cst_33 : f32 to vector<16x128xf32>
    %117 = arith.addf %116, %115 : vector<16x128xf32>
    %118 = arith.divf %116, %117 : vector<16x128xf32>
    %119 = arith.mulf %110, %91 : vector<16x128xf32>
    %120 = arith.mulf %104, %112 : vector<16x128xf32>
    %121 = arith.addf %119, %120 : vector<16x128xf32>
    %122 = math.tanh %121 : vector<16x128xf32>
    %123 = arith.mulf %118, %122 : vector<16x128xf32>
    %c64 = arith.constant 64 : index
    %c0_34 = arith.constant 0 : index
    %124 = vector.load %arg9[%c64, %c0_34] : memref<128x512xf32, #tpu.memory_space<vmem>>, vector<16x512xf32>
    %125 = arith.truncf %123 : vector<16x128xf32> to vector<16x128xbf16>
    %c0_35 = arith.constant 0 : index
    %c0_36 = arith.constant 0 : index
    %126 = vector.load %arg2[%c0_35, %c0_36] : memref<128x512xbf16, #tpu.memory_space<vmem>>, vector<128x512xbf16>
    %cst_37 = arith.constant dense<0.000000e+00> : vector<16x512xf32>
    %127 = tpu.matmul %125, %126, %cst_37 {dimension_numbers = #tpu.dot_dimension_numbers<[1], [0], [0], [1], [0, 0, 1, 1], [], []>} : vector<16x128xbf16>, vector<128x512xbf16>, vector<16x512xf32> -> vector<16x512xf32>
    %128 = arith.addf %124, %127 : vector<16x512xf32>
    %129 = vector.extract_strided_slice %128 {offsets = [0, 0], sizes = [16, 128], strides = [1, 1]} : vector<16x512xf32> to vector<16x128xf32>
    %130 = arith.negf %129 : vector<16x128xf32>
    %131 = math.exp %130 : vector<16x128xf32>
    %cst_38 = arith.constant 1.000000e+00 : f32
    %132 = vector.broadcast %cst_38 : f32 to vector<16x128xf32>
    %133 = arith.addf %132, %131 : vector<16x128xf32>
    %134 = arith.divf %132, %133 : vector<16x128xf32>
    %135 = vector.extract_strided_slice %128 {offsets = [0, 128], sizes = [16, 128], strides = [1, 1]} : vector<16x512xf32> to vector<16x128xf32>
    %136 = arith.negf %135 : vector<16x128xf32>
    %137 = math.exp %136 : vector<16x128xf32>
    %cst_39 = arith.constant 1.000000e+00 : f32
    %138 = vector.broadcast %cst_39 : f32 to vector<16x128xf32>
    %139 = arith.addf %138, %137 : vector<16x128xf32>
    %140 = arith.divf %138, %139 : vector<16x128xf32>
    %141 = vector.extract_strided_slice %128 {offsets = [0, 256], sizes = [16, 128], strides = [1, 1]} : vector<16x512xf32> to vector<16x128xf32>
    %142 = math.tanh %141 : vector<16x128xf32>
    %143 = vector.extract_strided_slice %128 {offsets = [0, 384], sizes = [16, 128], strides = [1, 1]} : vector<16x512xf32> to vector<16x128xf32>
    %144 = arith.negf %143 : vector<16x128xf32>
    %145 = math.exp %144 : vector<16x128xf32>
    %cst_40 = arith.constant 1.000000e+00 : f32
    %146 = vector.broadcast %cst_40 : f32 to vector<16x128xf32>
    %147 = arith.addf %146, %145 : vector<16x128xf32>
    %148 = arith.divf %146, %147 : vector<16x128xf32>
    %149 = arith.mulf %140, %121 : vector<16x128xf32>
    %150 = arith.mulf %134, %142 : vector<16x128xf32>
    %151 = arith.addf %149, %150 : vector<16x128xf32>
    %152 = math.tanh %151 : vector<16x128xf32>
    %153 = arith.mulf %148, %152 : vector<16x128xf32>
    %c80 = arith.constant 80 : index
    %c0_41 = arith.constant 0 : index
    %154 = vector.load %arg9[%c80, %c0_41] : memref<128x512xf32, #tpu.memory_space<vmem>>, vector<16x512xf32>
    %155 = arith.truncf %153 : vector<16x128xf32> to vector<16x128xbf16>
    %c0_42 = arith.constant 0 : index
    %c0_43 = arith.constant 0 : index
    %156 = vector.load %arg2[%c0_42, %c0_43] : memref<128x512xbf16, #tpu.memory_space<vmem>>, vector<128x512xbf16>
    %cst_44 = arith.constant dense<0.000000e+00> : vector<16x512xf32>
    %157 = tpu.matmul %155, %156, %cst_44 {dimension_numbers = #tpu.dot_dimension_numbers<[1], [0], [0], [1], [0, 0, 1, 1], [], []>} : vector<16x128xbf16>, vector<128x512xbf16>, vector<16x512xf32> -> vector<16x512xf32>
    %158 = arith.addf %154, %157 : vector<16x512xf32>
    %159 = vector.extract_strided_slice %158 {offsets = [0, 0], sizes = [16, 128], strides = [1, 1]} : vector<16x512xf32> to vector<16x128xf32>
    %160 = arith.negf %159 : vector<16x128xf32>
    %161 = math.exp %160 : vector<16x128xf32>
    %cst_45 = arith.constant 1.000000e+00 : f32
    %162 = vector.broadcast %cst_45 : f32 to vector<16x128xf32>
    %163 = arith.addf %162, %161 : vector<16x128xf32>
    %164 = arith.divf %162, %163 : vector<16x128xf32>
    %165 = vector.extract_strided_slice %158 {offsets = [0, 128], sizes = [16, 128], strides = [1, 1]} : vector<16x512xf32> to vector<16x128xf32>
    %166 = arith.negf %165 : vector<16x128xf32>
    %167 = math.exp %166 : vector<16x128xf32>
    %cst_46 = arith.constant 1.000000e+00 : f32
    %168 = vector.broadcast %cst_46 : f32 to vector<16x128xf32>
    %169 = arith.addf %168, %167 : vector<16x128xf32>
    %170 = arith.divf %168, %169 : vector<16x128xf32>
    %171 = vector.extract_strided_slice %158 {offsets = [0, 256], sizes = [16, 128], strides = [1, 1]} : vector<16x512xf32> to vector<16x128xf32>
    %172 = math.tanh %171 : vector<16x128xf32>
    %173 = vector.extract_strided_slice %158 {offsets = [0, 384], sizes = [16, 128], strides = [1, 1]} : vector<16x512xf32> to vector<16x128xf32>
    %174 = arith.negf %173 : vector<16x128xf32>
    %175 = math.exp %174 : vector<16x128xf32>
    %cst_47 = arith.constant 1.000000e+00 : f32
    %176 = vector.broadcast %cst_47 : f32 to vector<16x128xf32>
    %177 = arith.addf %176, %175 : vector<16x128xf32>
    %178 = arith.divf %176, %177 : vector<16x128xf32>
    %179 = arith.mulf %170, %151 : vector<16x128xf32>
    %180 = arith.mulf %164, %172 : vector<16x128xf32>
    %181 = arith.addf %179, %180 : vector<16x128xf32>
    %182 = math.tanh %181 : vector<16x128xf32>
    %183 = arith.mulf %178, %182 : vector<16x128xf32>
    %c96 = arith.constant 96 : index
    %c0_48 = arith.constant 0 : index
    %184 = vector.load %arg9[%c96, %c0_48] : memref<128x512xf32, #tpu.memory_space<vmem>>, vector<16x512xf32>
    %185 = arith.truncf %183 : vector<16x128xf32> to vector<16x128xbf16>
    %c0_49 = arith.constant 0 : index
    %c0_50 = arith.constant 0 : index
    %186 = vector.load %arg2[%c0_49, %c0_50] : memref<128x512xbf16, #tpu.memory_space<vmem>>, vector<128x512xbf16>
    %cst_51 = arith.constant dense<0.000000e+00> : vector<16x512xf32>
    %187 = tpu.matmul %185, %186, %cst_51 {dimension_numbers = #tpu.dot_dimension_numbers<[1], [0], [0], [1], [0, 0, 1, 1], [], []>} : vector<16x128xbf16>, vector<128x512xbf16>, vector<16x512xf32> -> vector<16x512xf32>
    %188 = arith.addf %184, %187 : vector<16x512xf32>
    %189 = vector.extract_strided_slice %188 {offsets = [0, 0], sizes = [16, 128], strides = [1, 1]} : vector<16x512xf32> to vector<16x128xf32>
    %190 = arith.negf %189 : vector<16x128xf32>
    %191 = math.exp %190 : vector<16x128xf32>
    %cst_52 = arith.constant 1.000000e+00 : f32
    %192 = vector.broadcast %cst_52 : f32 to vector<16x128xf32>
    %193 = arith.addf %192, %191 : vector<16x128xf32>
    %194 = arith.divf %192, %193 : vector<16x128xf32>
    %195 = vector.extract_strided_slice %188 {offsets = [0, 128], sizes = [16, 128], strides = [1, 1]} : vector<16x512xf32> to vector<16x128xf32>
    %196 = arith.negf %195 : vector<16x128xf32>
    %197 = math.exp %196 : vector<16x128xf32>
    %cst_53 = arith.constant 1.000000e+00 : f32
    %198 = vector.broadcast %cst_53 : f32 to vector<16x128xf32>
    %199 = arith.addf %198, %197 : vector<16x128xf32>
    %200 = arith.divf %198, %199 : vector<16x128xf32>
    %201 = vector.extract_strided_slice %188 {offsets = [0, 256], sizes = [16, 128], strides = [1, 1]} : vector<16x512xf32> to vector<16x128xf32>
    %202 = math.tanh %201 : vector<16x128xf32>
    %203 = vector.extract_strided_slice %188 {offsets = [0, 384], sizes = [16, 128], strides = [1, 1]} : vector<16x512xf32> to vector<16x128xf32>
    %204 = arith.negf %203 : vector<16x128xf32>
    %205 = math.exp %204 : vector<16x128xf32>
    %cst_54 = arith.constant 1.000000e+00 : f32
    %206 = vector.broadcast %cst_54 : f32 to vector<16x128xf32>
    %207 = arith.addf %206, %205 : vector<16x128xf32>
    %208 = arith.divf %206, %207 : vector<16x128xf32>
    %209 = arith.mulf %200, %181 : vector<16x128xf32>
    %210 = arith.mulf %194, %202 : vector<16x128xf32>
    %211 = arith.addf %209, %210 : vector<16x128xf32>
    %212 = math.tanh %211 : vector<16x128xf32>
    %213 = arith.mulf %208, %212 : vector<16x128xf32>
    %c112 = arith.constant 112 : index
    %c0_55 = arith.constant 0 : index
    %214 = vector.load %arg9[%c112, %c0_55] : memref<128x512xf32, #tpu.memory_space<vmem>>, vector<16x512xf32>
    %215 = arith.truncf %213 : vector<16x128xf32> to vector<16x128xbf16>
    %c0_56 = arith.constant 0 : index
    %c0_57 = arith.constant 0 : index
    %216 = vector.load %arg2[%c0_56, %c0_57] : memref<128x512xbf16, #tpu.memory_space<vmem>>, vector<128x512xbf16>
    %cst_58 = arith.constant dense<0.000000e+00> : vector<16x512xf32>
    %217 = tpu.matmul %215, %216, %cst_58 {dimension_numbers = #tpu.dot_dimension_numbers<[1], [0], [0], [1], [0, 0, 1, 1], [], []>} : vector<16x128xbf16>, vector<128x512xbf16>, vector<16x512xf32> -> vector<16x512xf32>
    %218 = arith.addf %214, %217 : vector<16x512xf32>
    %219 = vector.extract_strided_slice %218 {offsets = [0, 0], sizes = [16, 128], strides = [1, 1]} : vector<16x512xf32> to vector<16x128xf32>
    %220 = arith.negf %219 : vector<16x128xf32>
    %221 = math.exp %220 : vector<16x128xf32>
    %cst_59 = arith.constant 1.000000e+00 : f32
    %222 = vector.broadcast %cst_59 : f32 to vector<16x128xf32>
    %223 = arith.addf %222, %221 : vector<16x128xf32>
    %224 = arith.divf %222, %223 : vector<16x128xf32>
    %225 = vector.extract_strided_slice %218 {offsets = [0, 128], sizes = [16, 128], strides = [1, 1]} : vector<16x512xf32> to vector<16x128xf32>
    %226 = arith.negf %225 : vector<16x128xf32>
    %227 = math.exp %226 : vector<16x128xf32>
    %cst_60 = arith.constant 1.000000e+00 : f32
    %228 = vector.broadcast %cst_60 : f32 to vector<16x128xf32>
    %229 = arith.addf %228, %227 : vector<16x128xf32>
    %230 = arith.divf %228, %229 : vector<16x128xf32>
    %231 = vector.extract_strided_slice %218 {offsets = [0, 256], sizes = [16, 128], strides = [1, 1]} : vector<16x512xf32> to vector<16x128xf32>
    %232 = math.tanh %231 : vector<16x128xf32>
    %233 = vector.extract_strided_slice %218 {offsets = [0, 384], sizes = [16, 128], strides = [1, 1]} : vector<16x512xf32> to vector<16x128xf32>
    %234 = arith.negf %233 : vector<16x128xf32>
    %235 = math.exp %234 : vector<16x128xf32>
    %cst_61 = arith.constant 1.000000e+00 : f32
    %236 = vector.broadcast %cst_61 : f32 to vector<16x128xf32>
    %237 = arith.addf %236, %235 : vector<16x128xf32>
    %238 = arith.divf %236, %237 : vector<16x128xf32>
    %239 = arith.mulf %230, %211 : vector<16x128xf32>
    %240 = arith.mulf %224, %232 : vector<16x128xf32>
    %241 = arith.addf %239, %240 : vector<16x128xf32>
    %242 = math.tanh %241 : vector<16x128xf32>
    %243 = arith.mulf %238, %242 : vector<16x128xf32>
    %244 = arith.truncf %243 : vector<16x128xf32> to vector<16x128xbf16>
    %c0_62 = arith.constant 0 : index
    %c0_63 = arith.constant 0 : index
    %245 = vector.load %arg4[%c0_62, %c0_63] : memref<128x128xbf16, #tpu.memory_space<vmem>>, vector<128x128xbf16>
    %cst_64 = arith.constant dense<0.000000e+00> : vector<16x128xf32>
    %246 = tpu.matmul %244, %245, %cst_64 {dimension_numbers = #tpu.dot_dimension_numbers<[1], [0], [0], [1], [0, 0, 1, 1], [], []>} : vector<16x128xbf16>, vector<128x128xbf16>, vector<16x128xf32> -> vector<16x128xf32>
    %c0_65 = arith.constant 0 : index
    %c0_66 = arith.constant 0 : index
    %247 = vector.load %arg5[%c0_65, %c0_66] : memref<1x128xf32, #tpu.memory_space<vmem>>, vector<1x128xf32>
    %248 = vector.broadcast %247 : vector<1x128xf32> to vector<16x128xf32>
    %249 = arith.addf %246, %248 : vector<16x128xf32>
    %cst_67 = arith.constant 0.000000e+00 : f32
    %250 = vector.broadcast %cst_67 : f32 to vector<16x128xf32>
    %251 = arith.maximumf %249, %250 : vector<16x128xf32>
    %252 = arith.truncf %251 : vector<16x128xf32> to vector<16x128xbf16>
    %c0_68 = arith.constant 0 : index
    %c0_69 = arith.constant 0 : index
    %253 = vector.load %arg6[%c0_68, %c0_69] : memref<128x128xbf16, #tpu.memory_space<vmem>>, vector<128x128xbf16>
    %cst_70 = arith.constant dense<0.000000e+00> : vector<16x128xf32>
    %254 = tpu.matmul %252, %253, %cst_70 {dimension_numbers = #tpu.dot_dimension_numbers<[1], [0], [0], [1], [0, 0, 1, 1], [], []>} : vector<16x128xbf16>, vector<128x128xbf16>, vector<16x128xf32> -> vector<16x128xf32>
    %c0_71 = arith.constant 0 : index
    %c0_72 = arith.constant 0 : index
    %255 = vector.load %arg7[%c0_71, %c0_72] : memref<1x128xf32, #tpu.memory_space<vmem>>, vector<1x128xf32>
    %256 = vector.broadcast %255 : vector<1x128xf32> to vector<16x128xf32>
    %257 = arith.addf %254, %256 : vector<16x128xf32>
    %c0_73 = arith.constant 0 : index
    %c0_74 = arith.constant 0 : index
    %258 = vector.load %arg8[%c0_73, %c0_74] : memref<16x128xf32, #tpu.memory_space<vmem>>, vector<16x128xf32>
    tpu.vector_store %arg8[%c0_73, %c0_74], %257 {strides = array<i32>} : memref<16x128xf32, #tpu.memory_space<vmem>>, vector<16x128xf32>,
    return
  }
}

</mosaic_0001>

<bundles_post_ra>
// kernel: tpu_custom_call.1
= control target key start
LH: loop header
LB: loop body
LE: loop exit
PB: predicated region body
PF: predicated region fallthrough
CT: control target
= control target key end

     0   :  { %13 = vsyncpa [#allocation4], 0  ;;  %s4197_s0 = inlined_call_operand.vmem [shape: bf16[128,16], index: 0, kind: input, shape index: {}]   ;;  %s4198_s1 = inlined_call_operand.hbm [shape: bf16[16,512], index: 1, kind: input, shape index: {}]   ;;  %s4199_s2 = inlined_call_operand.hbm [shape: bf16[128,512], index: 2, kind: input, shape index: {}]   ;;  %s4200_s3 = inlined_call_operand.vmem [shape: f32[1,512], index: 3, kind: input, shape index: {}]   ;;  %s4201_s4 = inlined_call_operand.vmem [shape: bf16[128,128], index: 4, kind: input, shape index: {}]   ;;  %s4202_s5 = inlined_call_operand.vmem [shape: f32[1,128], index: 5, kind: input, shape index: {}]   ;;  %s4203_s6 = inlined_call_operand.hbm [shape: bf16[128,128], index: 6, kind: input, shape index: {}]   ;;  %s4204_s7 = inlined_call_operand.vmem [shape: f32[1,128], index: 7, kind: input, shape index: {}]   ;;  %s4205_s8 = inlined_call_operand.hbm [shape: f32[16,128], index: 8, kind: output, shape index: {}]  }
   0x1   :  { %14 = vsyncpa [#allocation7], 0 }
   0x2   :  { %15 = vsyncpa [#allocation5], 0  ;;  %s35_s29 = sshll.u32 %s4199_s2, 4  ;;  %s3114_s30 = smov [#allocation6]   ;;  %s36_s29 = int_to_ptr.hbm [resolvable:$true] %s35_s29 }
   0x3   :  { %s37_s9 = sshll.u32 %s3114_s30, 4  ;;  %s22_s12 = sshll.u32 %s4198_s1, 4  ;;  %s38_s9 = int_to_ptr.vmem [resolvable:$true] %s37_s9  ;;  %s23_s12 = int_to_ptr.hbm [resolvable:$true] %s22_s12 }
   0x4   :  { %s3115_s13 = smov 256   ;;  %s3116_s14 = smov 16  }
   0x5   :  { %43 = dma.hbm_to_vmem [thread:$0]  %s36_s29, 4096, %s38_s9, [#allocation7], %s3115_s13, %s3115_s13, %s3116_s14  }
   0x6   :  { %s3117_s15 = smov [#allocation3]   ;;  %s54_s19 = sshll.u32 %s4203_s6, 4  ;;  %s55_s19 = int_to_ptr.hbm [resolvable:$true] %s54_s19 }
   0x7   :  { %s24_s16 = sshll.u32 %s3117_s15, 4  ;;  %s3118_s2 = smov [#allocation8]   ;;  %s25_s16 = int_to_ptr.vmem [resolvable:$true] %s24_s16 }
   0x8   :  { %30 = dma.hbm_to_vmem [thread:$0]  %s23_s12, 512, %s25_s16, [#allocation4], %s3115_s13, %s3115_s13, %s3116_s14  }
   0x9   :  { %s56_s20 = sshll.u32 %s3118_s2, 4  ;;  %s3119_s21 = smov 64   ;;  %s57_s20 = int_to_ptr.vmem [resolvable:$true] %s56_s20 }
   0xa   :  { %s3120_s22 = smov 4  }
   0xb   :  { %62 = dma.hbm_to_vmem [thread:$0]  %s55_s19, 1024, %s57_s20, [#allocation7], %s3119_s21, %s3119_s21, %s3120_s22  }
   0xc   :  { %3108 = dma.done.wait [#allocation4], 512  }
   0xd   :  { %3109 = vsyncadd [#allocation4], 4294966784 }
   0xe   :  { %3110 = dma.done.wait [#allocation7], 5120  }
   0xf   :  { %3111 = vsyncadd [#allocation7], 4294962176  ;;  %v2396_v0 = vld [vmem:[#allocation3] sm:$0xf]  ;;  %v2692_v1 = vld [vmem:[#allocation3 + $0xc] sm:$0xf0] }
  0x10   :  { %v2690_v2 = vld [vmem:[#allocation3 + $0x4] sm:$0xf]  ;;  %v2397_v3 = vor.u32 %v2692_v1, %v2396_v0  ;;  %v2398_v4 = vld [vmem:[#allocation3 + $0x10] sm:$0xf0]  ;;  %vm168_vm0 = vcmask 130048   ;;  %v3184_v6 = vld [vmem:[%s4197_s0 + $0x38] sm:$0xff] }
  0x11   :  { %v2682_v5 = vld [vmem:[%s4197_s0] sm:$0xff]  ;;  %v2401_v7 = vor.u32 %v2690_v2, %v2398_v4  ;;  %v2691_v8 = vld [vmem:[#allocation3 + $0xc] sm:$0xf]  ;;  %v2406_v9 = vld [vmem:[#allocation3 + $0x18] sm:$0xf0]  ;;  %s3121_s9 = smov [#allocation9]  }
  0x12   :  { %v2404_v10 = vld [vmem:[#allocation3 + $0x8] sm:$0xf]  ;;  %200 = vmatpush.bf16.msra.mxu0 %v2397_v3  ;;  %2742 = vmatpush.bf16.msra.mxu2 %v2397_v3  ;;  %v2409_v11 = vor.u32 %v2691_v8, %v2406_v9  ;;  %v2693_v12 = vld [vmem:[#allocation3 + $0x14] sm:$0xf0]  ;;  %v2723_v13 = vld [vmem:[#allocation6 + $0xec] sm:$0xf] }
  0x13   :  { %v2572_v14 = vld [vmem:[#allocation6 + $0xf8] sm:$0xf0]  ;;  %249 = vmatpush.bf16.msra.mxu1 %v2401_v7  ;;  %2743 = vmatpush.bf16.msra.mxu3 %v2401_v7  ;;  %v2405_v15 = vor.u32 %v2693_v12, %v2404_v10  ;;  %v2570_v17 = vld [vmem:[#allocation6 + $0xe8] sm:$0xf]  ;;  %v2725_v18 = vld [vmem:[#allocation6 + $0xf4] sm:$0xf0] }
  0x14   :  { %v3186_v16 = vor.u32 %v2723_v13, %v2572_v14  ;;  %v2562_v19 = vld [vmem:[#allocation6 + $0xe0] sm:$0xf]  ;;  %v3195_v20 = vor.u32 %v2725_v18, %v2570_v17  ;;  %v2724_v21 = vld [vmem:[#allocation6 + $0xec] sm:$0xf0]  ;;  %v2722_v22 = vld [vmem:[#allocation6 + $0xe4] sm:$0xf] }
  0x15   :  { %2410 = vmatmul.msk.bf16.vlgmr.msra.gmra.mxu0 %vm168_vm0, %v2682_v5  ;;  %2417 = vmatmul.msk.bf16.vlgmr.msra.gmra.mxu2 %vm168_vm0, %v3184_v6  ;;  %v2564_v23 = vld [vmem:[#allocation6 + $0xf0] sm:$0xf0]  ;;  %v3197_v24 = vor.u32 %v2724_v21, %v2562_v19  ;;  %v2719_v26 = vld [vmem:[#allocation6 + $0xcc] sm:$0xf]  ;;  %v2556_v27 = vld [vmem:[#allocation6 + $0xd8] sm:$0xf0] }
  0x16   :  { %2418 = vmatmul.msk.bf16.vlgmr.msra.gmra.mxu1 %vm168_vm0, %v2682_v5  ;;  %2425 = vmatmul.msk.bf16.vlgmr.msra.gmra.mxu3 %vm168_vm0, %v3184_v6  ;;  %v3199_v25 = vor.u32 %v2722_v22, %v2564_v23  ;;  %v3202_v28 = vor.u32 %v2719_v26, %v2556_v27  ;;  %v2683_v29 = vld [vmem:[%s4197_s0 + $0x8] sm:$0xff]  ;;  %v2546_v30 = vld [vmem:[#allocation6 + $0xc0] sm:$0xf]  ;;  %v2720_v31 = vld [vmem:[#allocation6 + $0xcc] sm:$0xf0]  ;;  %s2346_s10 = sshll.u32 %s3121_s9, 4  ;;  %s2347_s10 = int_to_ptr.vmem [resolvable:$true] %s2346_s10 }
  0x17   :  { %347 = vmatpush.bf16.msrb.mxu3 %v2409_v11  ;;  %298 = vmatpush.bf16.msrb.mxu2 %v2405_v15  ;;  %v2718_v32 = vld [vmem:[#allocation6 + $0xc4] sm:$0xf]  ;;  %v3214_v33 = vor.u32 %v2720_v31, %v2546_v30  ;;  %v2548_v34 = vld [vmem:[#allocation6 + $0xd0] sm:$0xf0]  ;;  %v2554_v35 = vld [vmem:[#allocation6 + $0xc8] sm:$0xf] }
  0x18   :  { %788 = vmatpush.bf16.msrb.mxu0 %v3197_v24  ;;  %802 = vmatpush.bf16.msrb.mxu1 %v3199_v25  ;;  %v2721_v36 = vld [vmem:[#allocation6 + $0xd4] sm:$0xf0]  ;;  %v3216_v37 = vor.u32 %v2718_v32, %v2548_v34  ;;  %v2715_v39 = vld [vmem:[#allocation6 + $0xac] sm:$0xf]  ;;  %v2540_v40 = vld [vmem:[#allocation6 + $0xb8] sm:$0xf0] }
  0x19   :  { %v3218_v38 = vor.u32 %v2721_v36, %v2554_v35  ;;  %v2530_v41 = vld [vmem:[#allocation6 + $0xa0] sm:$0xf]  ;;  %v3221_v42 = vor.u32 %v2715_v39, %v2540_v40  ;;  %v2716_v43 = vld [vmem:[#allocation6 + $0xac] sm:$0xf0]  ;;  %v2714_v44 = vld [vmem:[#allocation6 + $0xa4] sm:$0xf] }
  0x1a   :  { %v2532_v45 = vld [vmem:[#allocation6 + $0xb0] sm:$0xf0]  ;;  %v3225_v46 = vor.u32 %v2716_v43, %v2530_v41  ;;  %v2538_v49 = vld [vmem:[#allocation6 + $0xa8] sm:$0xf]  ;;  %v2717_v50 = vld [vmem:[#allocation6 + $0xb4] sm:$0xf0] }
  0x1b   :  { %830 = vmatpush.bf16.msra.mxu3 %v3186_v16  ;;  %816 = vmatpush.bf16.msra.mxu2 %v3195_v20  ;;  %v3227_v47 = vor.u32 %v2714_v44, %v2532_v45  ;;  %v2684_v48 = vld [vmem:[%s4197_s0 + $0x10] sm:$0xff]  ;;  %v2711_v51 = vld [vmem:[#allocation6 + $0x8c] sm:$0xf]  ;;  %v3239_v52 = vor.u32 %v2717_v50, %v2538_v49  ;;  %v2524_v53 = vld [vmem:[#allocation6 + $0x98] sm:$0xf0]  ;;  %s3122_s13 = smov 128  }
  0x1c   :  { %789 = vmatpush.bf16.msrb.mxu0 %v3214_v33  ;;  %803 = vmatpush.bf16.msrb.mxu1 %v3216_v37  ;;  %v2514_v54 = vld [vmem:[#allocation6 + $0x80] sm:$0xf]  ;;  %v2712_v55 = vld [vmem:[#allocation6 + $0x8c] sm:$0xf0]  ;;  %v3241_v56 = vor.u32 %v2711_v51, %v2524_v53  ;;  %v2710_v58 = vld [vmem:[#allocation6 + $0x84] sm:$0xf] }
  0x1d   :  { %v3243_v57 = vor.u32 %v2712_v55, %v2514_v54  ;;  %v2516_v59 = vld [vmem:[#allocation6 + $0x90] sm:$0xf0]  ;;  %v2685_v61 = vld [vmem:[%s4197_s0 + $0x18] sm:$0xff]  ;;  %v2686_v62 = vld [vmem:[%s4197_s0 + $0x20] sm:$0xff]  ;;  %s3123_s14 = smov 8  }
  0x1e   :  { %v3246_v60 = vor.u32 %v2710_v58, %v2516_v59  ;;  %v2687_v63 = vld [vmem:[%s4197_s0 + $0x28] sm:$0xff]  ;;  %v3277_v0 = vld [vmem:[%s4200_s3] sm:$0xf]  ;;  %v2713_v2 = vld [vmem:[#allocation6 + $0x94] sm:$0xf0] }
  0x1f   :  { %831 = vmatpush.bf16.msra.mxu3 %v3202_v28  ;;  %817 = vmatpush.bf16.msra.mxu2 %v3218_v38  ;;  %v2522_v1 = vld [vmem:[#allocation6 + $0x88] sm:$0xf]  ;;  %v2707_v3 = vld [vmem:[#allocation6 + $0x6c] sm:$0xf]  ;;  %v3284_v8 = vperm.slane %v3277_v0, 0  ;;  %v3288_v9 = vperm.slane %v3277_v0, 1 }
  0x20   :  { %790 = vmatpush.bf16.msrb.mxu0 %v3225_v46  ;;  %804 = vmatpush.bf16.msrb.mxu1 %v3227_v47  ;;  %v3279_v4 = vor.u32 %v2713_v2, %v2522_v1  ;;  %v2688_v10 = vld [vmem:[%s4197_s0 + $0x30] sm:$0xff]  ;;  %v2498_v18 = vld [vmem:[#allocation6 + $0x60] sm:$0xf]  ;;  %v2706_v22 = vld [vmem:[#allocation6 + $0x64] sm:$0xf] }
  0x21   :  { %4219 = vst [vmem:[#allocation13_spill] sm:$0xff] %v3288_v9  ;;  %v2708_v19 = vld [vmem:[#allocation6 + $0x6c] sm:$0xf0]  ;;  %v2500_v23 = vld [vmem:[#allocation6 + $0x70] sm:$0xf0] }
  0x22   :  { %v3300_v21 = vor.u32 %v2708_v19, %v2498_v18  ;;  %v2506_v26 = vld [vmem:[#allocation6 + $0x68] sm:$0xf]  ;;  %v2709_v30 = vld [vmem:[#allocation6 + $0x74] sm:$0xf0]  ;;  %v2703_v51 = vld [vmem:[#allocation6 + $0x4c] sm:$0xf] }
  0x23   :  { %832 = vmatpush.bf16.msra.mxu3 %v3221_v42  ;;  %818 = vmatpush.bf16.msra.mxu2 %v3239_v52  ;;  %v3309_v32 = vor.u32 %v2709_v30, %v2506_v26  ;;  %v2492_v53 = vld [vmem:[#allocation6 + $0x58] sm:$0xf0]  ;;  %v2482_v54 = vld [vmem:[#allocation6 + $0x40] sm:$0xf]  ;;  %v2704_v55 = vld [vmem:[#allocation6 + $0x4c] sm:$0xf0] }
  0x24   :  { %791 = vmatpush.bf16.msrb.mxu0 %v3243_v57  ;;  %805 = vmatpush.bf16.msrb.mxu1 %v3246_v60  ;;  %v3329_v59 = vor.u32 %v2703_v51, %v2492_v53  ;;  %v2700_v26 = vld [vmem:[#allocation6 + $0x2c] sm:$0xf0]  ;;  %v2698_v30 = vld [vmem:[#allocation6 + $0x24] sm:$0xf] }
  0x25   :  { %2426 = vmatmul.msk.bf16.vlgmr.msrb.gmra.mxu2 %vm168_vm0, %v2682_v5  ;;  %2411 = vmatmul.msk.bf16.gmra.mxu0 %vm168_vm0, %v2683_v29 }
  0x26   :  { %2434 = vmatmul.msk.bf16.vlgmr.msrb.gmra.mxu3 %vm168_vm0, %v2682_v5  ;;  %2419 = vmatmul.msk.bf16.gmra.mxu1 %vm168_vm0, %v2683_v29  ;;  %v2508_v5 = vld [vmem:[#allocation6 + $0x78] sm:$0xf0] }
  0x27   :  { %833 = vmatpush.bf16.msra.mxu3 %v3241_v56  ;;  %v3281_v7 = vor.u32 %v2707_v3, %v2508_v5  ;;  %819 = vmatpush.bf16.msra.mxu2 %v3279_v4  ;;  %v3338_v3 = vperm.slane %v3277_v0, 3 }
  0x28   :  { %792 = vmatpush.bf16.msrb.mxu0 %v3300_v21 }
  0x29   :  { %4224 = vst [vmem:[#allocation18_spill] sm:$0xff] %v3338_v3 }
  0x2b   :  { %834 = vmatpush.bf16.msra.mxu3 %v3281_v7  ;;  %820 = vmatpush.bf16.msra.mxu2 %v3309_v32 }
  0x2f   :  { %835 = vmatpush.bf16.msra.mxu3 %v3329_v59 }
  0x35   :  { %2427 = vmatmul.msk.bf16.gmra.mxu2 %vm168_vm0, %v2683_v29  ;;  %2412 = vmatmul.msk.bf16.gmra.mxu0 %vm168_vm0, %v2684_v48 }
  0x36   :  { %2435 = vmatmul.msk.bf16.gmra.mxu3 %vm168_vm0, %v2683_v29  ;;  %2420 = vmatmul.msk.bf16.gmra.mxu1 %vm168_vm0, %v2684_v48  ;;  %v3304_v29 = vor.u32 %v2706_v22, %v2500_v23  ;;  %v2466_v23 = vld [vmem:[#allocation6 + $0x20] sm:$0xf] }
  0x37   :  { %v3365_v53 = vor.u32 %v2700_v26, %v2466_v23 }
  0x38   :  { %806 = vmatpush.bf16.msrb.mxu1 %v3304_v29 }
  0x45   :  { %2428 = vmatmul.msk.bf16.gmra.mxu2 %vm168_vm0, %v2684_v48  ;;  %2413 = vmatmul.msk.bf16.gmra.mxu0 %vm168_vm0, %v2685_v61 }
  0x46   :  { %2436 = vmatmul.msk.bf16.gmra.mxu3 %vm168_vm0, %v2684_v48  ;;  %2421 = vmatmul.msk.bf16.gmra.mxu1 %vm168_vm0, %v2685_v61 }
  0x55   :  { %2429 = vmatmul.msk.bf16.gmra.mxu2 %vm168_vm0, %v2685_v61  ;;  %2414 = vmatmul.msk.bf16.gmra.mxu0 %vm168_vm0, %v2686_v62 }
  0x56   :  { %2437 = vmatmul.msk.bf16.gmra.mxu3 %vm168_vm0, %v2685_v61  ;;  %2422 = vmatmul.msk.bf16.gmra.mxu1 %vm168_vm0, %v2686_v62  ;;  %v3331_v61 = vor.u32 %v2704_v55, %v2482_v54  ;;  %v2474_v55 = vld [vmem:[#allocation6 + $0x28] sm:$0xf] }
  0x58   :  { %793 = vmatpush.bf16.msrb.mxu0 %v3331_v61 }
  0x5c   :  { %794 = vmatpush.bf16.msrb.mxu0 %v3365_v53 }
  0x65   :  { %2430 = vmatmul.msk.bf16.gmra.mxu2 %vm168_vm0, %v2686_v62  ;;  %2415 = vmatmul.msk.bf16.gmra.mxu0 %vm168_vm0, %v2687_v63 }
  0x66   :  { %2438 = vmatmul.msk.bf16.gmra.mxu3 %vm168_vm0, %v2686_v62  ;;  %2423 = vmatmul.msk.bf16.gmra.mxu1 %vm168_vm0, %v2687_v63  ;;  %v2702_v62 = vld [vmem:[#allocation6 + $0x44] sm:$0xf] }
  0x75   :  { %2431 = vmatmul.msk.bf16.gmra.mxu2 %vm168_vm0, %v2687_v63  ;;  %2416 = vmatmul.msk.bf16.gmra.mxu0 %vm168_vm0, %v2688_v10 }
  0x76   :  { %2439 = vmatmul.msk.bf16.gmra.mxu3 %vm168_vm0, %v2687_v63  ;;  %2424 = vmatmul.msk.bf16.gmra.mxu1 %vm168_vm0, %v2688_v10  ;;  %v2484_v63 = vld [vmem:[#allocation6 + $0x50] sm:$0xf0] }
  0x77   :  { %v3340_v5 = vor.u32 %v2702_v62, %v2484_v63 }
  0x79   :  { %807 = vmatpush.bf16.msrb.mxu1 %v3340_v5 }
  0x85   :  { %2432 = vmatmul.msk.bf16.gmra.mxu2 %vm168_vm0, %v2688_v10 }
  0x86   :  { %2440 = vmatmul.msk.bf16.gmra.mxu3 %vm168_vm0, %v2688_v10 }
  0x92   :  { %v202_v11 = vpop.f32.mrf.mxu0 }
  0x93   :  { %v203_v12 = vadd.f32 %v202_v11, %v3284_v8  ;;  %v251_v13 = vpop.f32.mrf.mxu1 }
  0x94   :  { %v252_v14 = vadd.f32 %v251_v13, %v3288_v9  ;;  %v2705_v13 = vld [vmem:[#allocation6 + $0x54] sm:$0xf0] }
  0x95   :  { %v2442_v15 = vmul.f32 -1.442695, %v203_v12  ;;  %2433 = vmatmul.msk.bf16.gmra.mxu2 %vm168_vm0, %v3184_v6  ;;  %v2490_v12 = vld [vmem:[#allocation6 + $0x48] sm:$0xf] }
  0x96   :  { %v2444_v17 = vmul.f32 -1.442695, %v252_v14  ;;  %2441 = vmatmul.msk.bf16.gmra.mxu3 %vm168_vm0, %v3184_v6  ;;  %v3355_v22 = vor.u32 %v2705_v13, %v2490_v12  ;;  %v2450_v12 = vld [vmem:[#allocation6] sm:$0xf] }
  0x97   :  { %2756 = vpow2.f32 %v2442_v15 }
  0x98   :  { %2758 = vpow2.f32 %v2444_v17  ;;  %v3302_v27 = vpop.f32.mrf.mxu2  ;;  %821 = vmatpush.bf16.msra.mxu2 %v3355_v22 }
  0x99   :  { %4220 = vst [vmem:[#allocation14_spill] sm:$0xff] %v3302_v27  ;;  %v3306_v31 = vpop.f32.mrf.mxu3 }
  0x9a   :  { %4221 = vst [vmem:[#allocation15_spill] sm:$0xff] %v3306_v31  ;;  %v204_v34 = vpop.f32.mrf.mxu0 }
  0x9b   :  { %v205_v35 = vadd.f32 %v204_v34, %v3284_v8  ;;  %v253_v36 = vpop.f32.mrf.mxu1  ;;  %v2468_v34 = vld [vmem:[#allocation6 + $0x30] sm:$0xf0] }
  0x9c   :  { %v254_v39 = vadd.f32 %v253_v36, %v3288_v9  ;;  %v3367_v54 = vor.u32 %v2698_v30, %v2468_v34 }
  0x9d   :  { %v2757_v40 = vpop.eup %2756  ;;  %v2443_v41 = vmul.f32 -1.442695, %v205_v35  ;;  %v2695_v35 = vld [vmem:[#allocation6 + $0xc] sm:$0xf] }
  0x9e   :  { %v2759_v43 = vpop.eup %2758  ;;  %v3315_v44 = vadd.f32 1.0, %v2757_v40  ;;  %v2445_v45 = vmul.f32 -1.442695, %v254_v39  ;;  %v3361_v40 = vperm.slane %v3277_v0, 2  ;;  %808 = vmatpush.bf16.msrb.mxu1 %v3367_v54  ;;  %v2460_v0 = vld [vmem:[#allocation6 + $0x18] sm:$0xf0] }
  0x9f   :  { %v3317_v48 = vadd.f32 1.0, %v2759_v43  ;;  %2760 = vpow2.f32 %v2443_v41  ;;  %v2699_v41 = vld [vmem:[#allocation6 + $0x2c] sm:$0xf]  ;;  %v2476_v43 = vld [vmem:[#allocation6 + $0x38] sm:$0xf0] }
  0xa0   :  { %2762 = vrcp.f32 %v3315_v44  ;;  %v3320_v49 = vpop.f32.mrf.mxu2  ;;  %4225 = vst [vmem:[#allocation19_spill] sm:$0xff] %v3361_v40  ;;  %vm474_vm2 = vweird.f32 %v3315_v44 }
  0xa1   :  { %4222 = vst [vmem:[#allocation16_spill] sm:$0xff] %v3320_v49  ;;  %2764 = vrcp.f32 %v3317_v48  ;;  %v3323_v50 = vpop.f32.mrf.mxu3  ;;  %vm512_vm1 = vweird.f32 %v3317_v48 }
  0xa2   :  { %4223 = vst [vmem:[#allocation17_spill] sm:$0xff] %v3323_v50  ;;  %2766 = vpow2.f32 %v2445_v45 }
  0xa5   :  { %v2761_v58 = vpop.eup %2760 }
  0xa6   :  { %v3333_v1 = vpop.eup %2762  ;;  %v3335_v2 = vadd.f32 1.0, %v2761_v58  ;;  %v2701_v58 = vld [vmem:[#allocation6 + $0x34] sm:$0xf0] }
  0xa7   :  { %v3342_v6 = vpop.eup %2764  ;;  %v470_v14 = vmul.f32 %v3333_v1, %v3315_v44  ;;  %vm475_vm3 = vweird.f32 %v3333_v1 }
  0xa8   :  { %v2767_v10 = vpop.eup %2766  ;;  %2768 = vrcp.f32 %v3335_v2  ;;  %v300_v11 = vpop.f32.mrf.mxu2  ;;  %v508_v18 = vmul.f32 %v3342_v6, %v3317_v48  ;;  %vm513_vm4 = vweird.f32 %v3342_v6  ;;  %vm489_vm5 = vweird.f32 %v3335_v2  ;;  %vm3418_vm7 = vmor %vm474_vm2, %vm475_vm3 }
  0xa9   :  { %v3350_v15 = vadd.f32 1.0, %v2767_v10  ;;  %v349_v17 = vpop.f32.mrf.mxu3  ;;  %v471_v39 = vsub.f32 1.0, %v470_v14  ;;  %v3379_v14 = vor.u32 %v2699_v41, %v2476_v43  ;;  %v301_v30 = vadd.f32 %v300_v11, %v3361_v40  ;;  %v2697_v11 = vld [vmem:[#allocation6 + $0x14] sm:$0xf0]  ;;  %vm3432_vm9 = vmor %vm512_vm1, %vm513_vm4 }
  0xaa   :  { %v350_v19 = vadd.f32 %v349_v17, %v3338_v3  ;;  %v509_v51 = vsub.f32 1.0, %v508_v18  ;;  %v2696_v17 = vld [vmem:[#allocation6 + $0xc] sm:$0xf0]  ;;  %v2694_v18 = vld [vmem:[#allocation6 + $0x4] sm:$0xf]  ;;  %v3385_v10 = vor.u32 %v2701_v58, %v2474_v55 }
  0xab   :  { %2770 = vrcp.f32 %v3350_v15  ;;  %v472_v34 = vmul.f32 %v3333_v1, %v471_v39  ;;  %836 = vmatpush.bf16.msra.mxu3 %v3379_v14  ;;  %vm527_vm10 = vweird.f32 %v3350_v15 }
  0xac   :  { %v2446_v36 = vmul.f32 -1.442695, %v350_v19  ;;  %v2452_v19 = vld [vmem:[#allocation6 + $0x10] sm:$0xf0]  ;;  %v510_v62 = vmul.f32 %v3342_v6, %v509_v51  ;;  %822 = vmatpush.bf16.msra.mxu2 %v3385_v10  ;;  %v3397_v51 = vor.u32 %v2696_v17, %v2450_v12  ;;  %v495_v17 = vand.u32 2147483648, %v3335_v2 }
  0xad   :  { %v3399_v31 = vor.u32 %v2694_v18, %v2452_v19  ;;  %v473_v27 = vadd.f32 %v3333_v1, %v472_v34  ;;  %v4230_v19 = vand.u32 2147483648, %v3317_v48  ;;  %v4231_v34 = vand.u32 2147483648, %v3315_v44 }
  0xae   :  { %v3363_v45 = vpop.eup %2768  ;;  %2772 = vpow2.f32 %v2446_v36  ;;  %795 = vmatpush.bf16.msrb.mxu0 %v3397_v51  ;;  %v511_v12 = vadd.f32 %v3342_v6, %v510_v62 }
  0xaf   :  { %v485_v63 = vmul.f32 %v3363_v45, %v3335_v2  ;;  %2774 = vtanh.f32 %v301_v30  ;;  %vm490_vm6 = vweird.f32 %v3363_v45  ;;  %809 = vmatpush.bf16.msrb.mxu1 %v3399_v31  ;;  %v519_v30 = vor.u32 1.1754944e-38, %v4230_v19 }
  0xb0   :  { %v302_v13 = vpop.f32.mrf.mxu2  ;;  %vm3450_vm11 = vmor %vm489_vm5, %vm490_vm6 }
  0xb1   :  { %v3381_v23 = vpop.eup %2770  ;;  %v486_v26 = vsub.f32 1.0, %v485_v63  ;;  %v351_v36 = vpop.f32.mrf.mxu3  ;;  %v2458_v63 = vld [vmem:[#allocation6 + $0x8] sm:$0xf]  ;;  %v303_v39 = vadd.f32 %v302_v13, %v3361_v40 }
  0xb2   :  { %v523_v41 = vmul.f32 %v3381_v23, %v3350_v15  ;;  %v352_v43 = vadd.f32 %v351_v36, %v3338_v3  ;;  %v3401_v36 = vor.u32 %v2695_v35, %v2460_v0  ;;  %v3407_v13 = vor.u32 %v2697_v11, %v2458_v63  ;;  %987 = vmatpush.bf16.msra.mxu0 %v3197_v24 }
  0xb3   :  { %v487_v55 = vmul.f32 %v3363_v45, %v486_v26  ;;  %vm528_vm8 = vweird.f32 %v3381_v23  ;;  %1001 = vmatpush.bf16.msra.mxu1 %v3199_v25  ;;  %v531_v63 = vand.u32 2147483647, %v3350_v15  ;;  %v477_v11 = vsel %vm3418_vm7, %v3333_v1, %v473_v27 }
  0xb4   :  { %v2773_v58 = vpop.eup %2772  ;;  %v524_v50 = vsub.f32 1.0, %v523_v41  ;;  %v2447_v49 = vmul.f32 -1.442695, %v352_v43  ;;  %837 = vmatpush.bf16.msra.mxu3 %v3401_v36  ;;  %823 = vmatpush.bf16.msra.mxu2 %v3407_v13  ;;  %v481_v41 = vor.u32 1.1754944e-38, %v4231_v34  ;;  %vm3464_vm12 = vmor %vm527_vm10, %vm528_vm8 }
  0xb5   :  { %v3404_v3 = vadd.f32 1.0, %v2773_v58  ;;  %v488_v0 = vadd.f32 %v3363_v45, %v487_v55  ;;  %v2775_v55 = vpop.eup %2774  ;;  %v4236_v58 = vand.u32 2147483647, %v3315_v44  ;;  %vm532_vm0 = vcmp.eq.f32.partialorder %v531_v63, 8.507059e+37 }
  0xb6   :  { %v525_v26 = vmul.f32 %v3381_v23, %v524_v50  ;;  %2776 = vpow2.f32 %v2447_v49  ;;  %v493_v50 = vand.u32 2147483647, %v3335_v2  ;;  %v533_v49 = vand.u32 2147483648, %v3350_v15  ;;  %988 = vmatpush.bf16.msra.mxu0 %v3214_v33 }
  0xb7   :  { %2778 = vtanh.f32 %v303_v39  ;;  %v515_v39 = vsel %vm3432_vm9, %v3342_v6, %v511_v12  ;;  %vm479_vm13 = vcmp.eq.f32.partialorder %v4236_v58, 8.507059e+37  ;;  %v492_v15 = vsel %vm3450_vm11, %v3363_v45, %v488_v0  ;;  %1002 = vmatpush.bf16.msra.mxu1 %v3216_v37 }
  0xb8   :  { %2780 = vrcp.f32 %v3404_v3  ;;  %v526_v18 = vadd.f32 %v3381_v23, %v525_v26  ;;  %1015 = vmatpush.bf16.msrb.mxu2 %v3195_v20  ;;  %1029 = vmatpush.bf16.msrb.mxu3 %v3186_v16  ;;  %v534_v6 = vor.u32 1.1754944e-38, %v533_v49  ;;  %v4237_v26 = vand.u32 2147483647, %v3317_v48 }
  0xb9   :  { %vm494_vm15 = vcmp.eq.f32.partialorder %v493_v50, 8.507059e+37  ;;  %v496_v12 = vor.u32 1.1754944e-38, %v495_v17  ;;  %v482_v35 = vsel %vm479_vm13, %v481_v41, %v477_v11  ;;  %v558_v2 = vand.u32 2147483648, %v3404_v3 }
  0xba   :  { %v530_v27 = vsel %vm3464_vm12, %v3381_v23, %v526_v18  ;;  %vm517_vm14 = vcmp.eq.f32.partialorder %v4237_v26, 8.507059e+37  ;;  %989 = vmatpush.bf16.msra.mxu0 %v3225_v46  ;;  %v579_v50 = vmul.f32 %v2775_v55, %v482_v35  ;;  %vm552_vm2 = vweird.f32 %v3404_v3 }
  0xbb   :  { %v520_v45 = vsel %vm517_vm14, %v519_v30, %v515_v39  ;;  %v497_v62 = vsel %vm494_vm15, %v496_v12, %v492_v15  ;;  %v535_v18 = vsel %vm532_vm0, %v534_v6, %v530_v27  ;;  %1003 = vmatpush.bf16.msra.mxu1 %v3227_v47  ;;  %v556_v58 = vand.u32 2147483647, %v3404_v3 }
  0xbc   :  { %v2777_v1 = vpop.eup %2776  ;;  %1016 = vmatpush.bf16.msrb.mxu2 %v3218_v38  ;;  %1030 = vmatpush.bf16.msrb.mxu3 %v3202_v28  ;;  %v577_v48 = vmul.f32 0.0, %v520_v45  ;;  %v578_v19 = vmul.f32 0.0, %v535_v18  ;;  %v559_v26 = vor.u32 1.1754944e-38, %v558_v2 }
  0xbd   :  { %v2779_v44 = vpop.eup %2778  ;;  %v546_v0 = vadd.f32 1.0, %v2777_v1  ;;  %vm557_vm5 = vcmp.eq.f32.partialorder %v556_v58, 8.507059e+37 }
  0xbe   :  { %v2781_v23 = vpop.eup %2780  ;;  %v580_v30 = vmul.f32 %v2779_v44, %v497_v62  ;;  %990 = vmatpush.bf16.msra.mxu0 %v3243_v57  ;;  %v3488_v41 = vadd.f32 %v579_v50, %v577_v48  ;;  %v3514_v50 = vpop.f32.mrf.mxu2 }
  0xbf   :  { %v548_v49 = vmul.f32 %v2781_v23, %v3404_v3  ;;  %2782 = vrcp.f32 %v546_v0  ;;  %1004 = vmatpush.bf16.msra.mxu1 %v3246_v60  ;;  %vm553_vm1 = vweird.f32 %v2781_v23  ;;  %v573_v15 = vand.u32 2147483648, %v546_v0 }
  0xc0   :  { %1017 = vmatpush.bf16.msrb.mxu2 %v3239_v52  ;;  %1031 = vmatpush.bf16.msrb.mxu3 %v3221_v42  ;;  %v3492_v63 = vadd.f32 %v580_v30, %v578_v19  ;;  %2784 = vtanh.f32 %v3488_v41  ;;  %vm554_vm3 = vmor %vm552_vm2, %vm553_vm1  ;;  %v571_v6 = vand.u32 2147483647, %v546_v0  ;;  %vm567_vm6 = vweird.f32 %v546_v0  ;;  %v3526_v19 = vpop.f32.mrf.mxu0  ;;  %v3528_v30 = vpop.f32.mrf.mxu1 }
  0xc1   :  { %v549_v17 = vsub.f32 1.0, %v548_v49  ;;  %v574_v44 = vor.u32 1.1754944e-38, %v573_v15 }
  0xc2   :  { %991 = vmatpush.bf16.msra.mxu0 %v3300_v21  ;;  %2786 = vtanh.f32 %v3492_v63  ;;  %vm572_vm8 = vcmp.eq.f32.partialorder %v571_v6, 8.507059e+37 }
  0xc3   :  { %v550_v34 = vmul.f32 %v2781_v23, %v549_v17  ;;  %1005 = vmatpush.bf16.msra.mxu1 %v3304_v29 }
  0xc4   :  { %1018 = vmatpush.bf16.msrb.mxu2 %v3279_v4  ;;  %1032 = vmatpush.bf16.msrb.mxu3 %v3241_v56 }
  0xc5   :  { %v2783_v43 = vpop.eup %2782  ;;  %v551_v39 = vadd.f32 %v2781_v23, %v550_v34 }
  0xc6   :  { %v563_v11 = vmul.f32 %v2783_v43, %v546_v0  ;;  %vm568_vm4 = vweird.f32 %v2783_v43  ;;  %992 = vmatpush.bf16.msra.mxu0 %v3331_v61  ;;  %v2785_v35 = vpop.eup %2784  ;;  %v3531_v34 = vpop.f32.mrf.mxu2 }
  0xc7   :  { %v555_v27 = vsel %vm554_vm3, %v2781_v23, %v551_v39  ;;  %1006 = vmatpush.bf16.msra.mxu1 %v3340_v5  ;;  %vm569_vm7 = vmor %vm567_vm6, %vm568_vm4  ;;  %v3508_v23 = vpop.f32.mrf.mxu3 }
  0xc8   :  { %v564_v55 = vsub.f32 1.0, %v563_v11  ;;  %1019 = vmatpush.bf16.msrb.mxu2 %v3309_v32  ;;  %1033 = vmatpush.bf16.msrb.mxu3 %v3281_v7  ;;  %v560_v3 = vsel %vm557_vm5, %v559_v26, %v555_v27  ;;  %v2787_v62 = vpop.eup %2786  ;;  %v3545_v11 = vpop.f32.mrf.mxu0 }
  0xc9   :  { %v585_v49 = vmul.f32 %v2785_v35, %v560_v3  ;;  %v3547_v39 = vpop.f32.mrf.mxu1 }
  0xca   :  { %v565_v1 = vmul.f32 %v2783_v43, %v564_v55  ;;  %993 = vmatpush.bf16.msra.mxu0 %v3365_v53 }
  0xcb   :  { %1007 = vmatpush.bf16.msra.mxu1 %v3367_v54 }
  0xcc   :  { %v566_v12 = vadd.f32 %v2783_v43, %v565_v1  ;;  %1020 = vmatpush.bf16.msrb.mxu2 %v3355_v22  ;;  %1034 = vmatpush.bf16.msrb.mxu3 %v3329_v59 }
  0xce   :  { %v570_v45 = vsel %vm569_vm7, %v2783_v43, %v566_v12  ;;  %994 = vmatpush.bf16.msra.mxu0 %v3397_v51  ;;  %v3550_v2 = vpop.f32.mrf.mxu2 }
  0xcf   :  { %v575_v18 = vsel %vm572_vm8, %v574_v44, %v570_v45  ;;  %1008 = vmatpush.bf16.msra.mxu1 %v3399_v31  ;;  %v3521_v17 = vpop.f32.mrf.mxu3  ;;  %4239 = vst [vmem:[#allocation21_spill] sm:$0xff] %v3550_v2 }
  0xd0   :  { %v586_v0 = vmul.f32 %v2787_v62, %v575_v18  ;;  %1021 = vmatpush.bf16.msrb.mxu2 %v3385_v10  ;;  %1035 = vmatpush.bf16.msrb.mxu3 %v3379_v14  ;;  %v3562_v58 = vpop.f32.mrf.mxu0 }
  0xd1   :  { %v3564_v15 = vpop.f32.mrf.mxu1 }
  0xd2   :  { %v595_v48 = vpack.c.bf16 %v586_v0, %v585_v49  ;;  %4241 = vst [vmem:[#allocation23_spill] sm:$0xff] %v3564_v15 }
  0xd4   :  { %796 = vmatmul.bf16.vlgmr.msrb.gmra.mxu0 %v595_v48  ;;  %810 = vmatmul.bf16.vlgmr.msrb.gmra.mxu1 %v595_v48 }
  0xd5   :  { %824 = vmatmul.bf16.vlgmr.msra.gmra.mxu2 %v595_v48  ;;  %838 = vmatmul.bf16.vlgmr.msra.gmra.mxu3 %v595_v48 }
  0xd6   :  { %1022 = vmatpush.bf16.msrb.mxu2 %v3407_v13  ;;  %1036 = vmatpush.bf16.msrb.mxu3 %v3401_v36  ;;  %v3567_v27 = vpop.f32.mrf.mxu2 }
  0xd7   :  { %1186 = vmatpush.bf16.msrb.mxu0 %v3197_v24  ;;  %1200 = vmatpush.bf16.msrb.mxu1 %v3199_v25  ;;  %v3540_v43 = vpop.f32.mrf.mxu3  ;;  %4242 = vst [vmem:[#allocation24_spill] sm:$0xff] %v3567_v27 }
  0xd8   :  { %4238 = vst [vmem:[#allocation20_spill] sm:$0xff] %v3540_v43  ;;  %v3578_v6 = vpop.f32.mrf.mxu0 }
  0xd9   :  { %4244 = vst [vmem:[#allocation26_spill] sm:$0xff] %v3578_v6  ;;  %v3580_v26 = vpop.f32.mrf.mxu1 }
  0xda   :  { %1214 = vmatpush.bf16.msra.mxu2 %v3195_v20  ;;  %1228 = vmatpush.bf16.msra.mxu3 %v3186_v16  ;;  %4245 = vst [vmem:[#allocation27_spill] sm:$0xff] %v3580_v26 }
  0xdb   :  { %1187 = vmatpush.bf16.msrb.mxu0 %v3214_v33  ;;  %1201 = vmatpush.bf16.msrb.mxu1 %v3216_v37 }
  0xde   :  { %1215 = vmatpush.bf16.msra.mxu2 %v3218_v38  ;;  %1229 = vmatpush.bf16.msra.mxu3 %v3202_v28  ;;  %v3582_v12 = vpop.f32.mrf.mxu2 }
  0xdf   :  { %1188 = vmatpush.bf16.msrb.mxu0 %v3225_v46  ;;  %1202 = vmatpush.bf16.msrb.mxu1 %v3227_v47  ;;  %v3557_v55 = vpop.f32.mrf.mxu3  ;;  %4246 = vst [vmem:[#allocation28_spill] sm:$0xff] %v3582_v12 }
  0xe0   :  { %4240 = vst [vmem:[#allocation22_spill] sm:$0xff] %v3557_v55  ;;  %v3586_v44 = vpop.f32.mrf.mxu0 }
  0xe1   :  { %4248 = vst [vmem:[#allocation30_spill] sm:$0xff] %v3586_v44  ;;  %v3588_v35 = vpop.f32.mrf.mxu1 }
  0xe2   :  { %1216 = vmatpush.bf16.msra.mxu2 %v3239_v52  ;;  %1230 = vmatpush.bf16.msra.mxu3 %v3221_v42  ;;  %4249 = vst [vmem:[#allocation31_spill] sm:$0xff] %v3588_v35 }
  0xe3   :  { %1189 = vmatpush.bf16.msrb.mxu0 %v3243_v57  ;;  %1203 = vmatpush.bf16.msrb.mxu1 %v3246_v60 }
  0xe6   :  { %1217 = vmatpush.bf16.msra.mxu2 %v3279_v4  ;;  %1231 = vmatpush.bf16.msra.mxu3 %v3241_v56  ;;  %v3590_v45 = vpop.f32.mrf.mxu2 }
  0xe7   :  { %1190 = vmatpush.bf16.msrb.mxu0 %v3300_v21  ;;  %1204 = vmatpush.bf16.msrb.mxu1 %v3304_v29  ;;  %v3576_v1 = vpop.f32.mrf.mxu3  ;;  %4250 = vst [vmem:[#allocation32_spill] sm:$0xff] %v3590_v45 }
  0xe8   :  { %4243 = vst [vmem:[#allocation25_spill] sm:$0xff] %v3576_v1  ;;  %v3594_v18 = vpop.f32.mrf.mxu0 }
  0xe9   :  { %4252 = vst [vmem:[#allocation34_spill] sm:$0xff] %v3594_v18  ;;  %v3596_v49 = vpop.f32.mrf.mxu1 }
  0xea   :  { %1218 = vmatpush.bf16.msra.mxu2 %v3309_v32  ;;  %1232 = vmatpush.bf16.msra.mxu3 %v3281_v7  ;;  %4253 = vst [vmem:[#allocation35_spill] sm:$0xff] %v3596_v49 }
  0xeb   :  { %1191 = vmatpush.bf16.msrb.mxu0 %v3331_v61  ;;  %1205 = vmatpush.bf16.msrb.mxu1 %v3340_v5 }
  0xee   :  { %1219 = vmatpush.bf16.msra.mxu2 %v3355_v22  ;;  %1233 = vmatpush.bf16.msra.mxu3 %v3329_v59  ;;  %v3598_v0 = vpop.f32.mrf.mxu2 }
  0xef   :  { %1192 = vmatpush.bf16.msrb.mxu0 %v3365_v53  ;;  %1206 = vmatpush.bf16.msrb.mxu1 %v3367_v54  ;;  %v3584_v3 = vpop.f32.mrf.mxu3  ;;  %4254 = vst [vmem:[#allocation36_spill] sm:$0xff] %v3598_v0 }
  0xf0   :  { %4247 = vst [vmem:[#allocation29_spill] sm:$0xff] %v3584_v3  ;;  %v3602_v1 = vpop.f32.mrf.mxu0 }
  0xf1   :  { %4256 = vst [vmem:[#allocation38_spill] sm:$0xff] %v3602_v1  ;;  %v3604_v12 = vpop.f32.mrf.mxu1 }
  0xf2   :  { %1220 = vmatpush.bf16.msra.mxu2 %v3385_v10  ;;  %1234 = vmatpush.bf16.msra.mxu3 %v3379_v14  ;;  %4257 = vst [vmem:[#allocation39_spill] sm:$0xff] %v3604_v12 }
  0xf3   :  { %1193 = vmatpush.bf16.msrb.mxu0 %v3397_v51  ;;  %1207 = vmatpush.bf16.msrb.mxu1 %v3399_v31 }
  0xf6   :  { %1221 = vmatpush.bf16.msra.mxu2 %v3407_v13  ;;  %1235 = vmatpush.bf16.msra.mxu3 %v3401_v36  ;;  %v3606_v3 = vpop.f32.mrf.mxu2 }
  0xf7   :  { %v3592_v62 = vpop.f32.mrf.mxu3  ;;  %4258 = vst [vmem:[#allocation40_spill] sm:$0xff] %v3606_v3 }
  0xf8   :  { %4251 = vst [vmem:[#allocation33_spill] sm:$0xff] %v3592_v62  ;;  %v3610_v35 = vpop.f32.mrf.mxu0 }
  0xf9   :  { %4260 = vst [vmem:[#allocation42_spill] sm:$0xff] %v3610_v35  ;;  %v3612_v45 = vpop.f32.mrf.mxu1 }
  0xfa   :  { %4261 = vst [vmem:[#allocation43_spill] sm:$0xff] %v3612_v45 }
  0xfe   :  { %v3614_v62 = vpop.f32.mrf.mxu2 }
  0xff   :  { %v3600_v48 = vpop.f32.mrf.mxu3  ;;  %4262 = vst [vmem:[#allocation44_spill] sm:$0xff] %v3614_v62 }
 0x100   :  { %4255 = vst [vmem:[#allocation37_spill] sm:$0xff] %v3600_v48  ;;  %v3618_v49 = vpop.f32.mrf.mxu0 }
 0x101   :  { %4264 = vst [vmem:[#allocation46_spill] sm:$0xff] %v3618_v49  ;;  %v3620_v0 = vpop.f32.mrf.mxu1 }
 0x102   :  { %4265 = vst [vmem:[#allocation47_spill] sm:$0xff] %v3620_v0 }
 0x106   :  { %v3622_v48 = vpop.f32.mrf.mxu2 }
 0x107   :  { %v3608_v44 = vpop.f32.mrf.mxu3  ;;  %4266 = vst [vmem:[#allocation48_spill] sm:$0xff] %v3622_v48 }
 0x108   :  { %4259 = vst [vmem:[#allocation41_spill] sm:$0xff] %v3608_v44  ;;  %v3626_v12 = vpop.f32.mrf.mxu0 }
 0x109   :  { %4268 = vst [vmem:[#allocation50_spill] sm:$0xff] %v3626_v12  ;;  %v3628_v3 = vpop.f32.mrf.mxu1 }
 0x10a   :  { %4269 = vst [vmem:[#allocation51_spill] sm:$0xff] %v3628_v3  ;;  %v208_v3 = vadd.f32 %v3526_v19, %v3284_v8  ;;  %v210_v19 = vadd.f32 %v3545_v11, %v3284_v8  ;;  %v306_v11 = vadd.f32 %v3514_v50, %v3361_v40 }
 0x10e   :  { %v3630_v44 = vpop.f32.mrf.mxu2 }
 0x10f   :  { %v3616_v18 = vpop.f32.mrf.mxu3  ;;  %4270 = vst [vmem:[#allocation52_spill] sm:$0xff] %v3630_v44 }
 0x110   :  { %4263 = vst [vmem:[#allocation45_spill] sm:$0xff] %v3616_v18  ;;  %v3634_v45 = vpop.f32.mrf.mxu0 }
 0x111   :  { %4272 = vst [vmem:[#allocation54_spill] sm:$0xff] %v3634_v45  ;;  %v3636_v62 = vpop.f32.mrf.mxu1 }
 0x112   :  { %4273 = vst [vmem:[#allocation55_spill] sm:$0xff] %v3636_v62 }
 0x116   :  { %v3638_v18 = vpop.f32.mrf.mxu2 }
 0x117   :  { %v3624_v1 = vpop.f32.mrf.mxu3  ;;  %4274 = vst [vmem:[#allocation56_spill] sm:$0xff] %v3638_v18 }
 0x118   :  { %4267 = vst [vmem:[#allocation49_spill] sm:$0xff] %v3624_v1  ;;  %v3642_v0 = vpop.f32.mrf.mxu0 }
 0x119   :  { %4276 = vst [vmem:[#allocation58_spill] sm:$0xff] %v3642_v0  ;;  %v3644_v48 = vpop.f32.mrf.mxu1 }
 0x11a   :  { %4277 = vst [vmem:[#allocation59_spill] sm:$0xff] %v3644_v48  ;;  %v4281_v48 = vld [vmem:[#allocation18_spill] sm:$0xff] }
 0x11e   :  { %v3646_v1 = vpop.f32.mrf.mxu2 }
 0x11f   :  { %v3632_v35 = vpop.f32.mrf.mxu3  ;;  %4278 = vst [vmem:[#allocation60_spill] sm:$0xff] %v3646_v1  ;;  %v355_v1 = vadd.f32 %v3508_v23, %v4281_v48 }
 0x120   :  { %4271 = vst [vmem:[#allocation53_spill] sm:$0xff] %v3632_v35  ;;  %v257_v35 = vadd.f32 %v3528_v30, %v3288_v9  ;;  %v259_v30 = vadd.f32 %v3547_v39, %v3288_v9  ;;  %v357_v39 = vadd.f32 %v3521_v17, %v4281_v48  ;;  %v308_v17 = vadd.f32 %v3531_v34, %v3361_v40 }
 0x126   :  { %v3654_v27 = vpop.f32.mrf.mxu2 }
 0x127   :  { %v3640_v49 = vpop.f32.mrf.mxu3  ;;  %4280 = vst [vmem:[#allocation62_spill] sm:$0xff] %v3654_v27 }
 0x128   :  { %4275 = vst [vmem:[#allocation57_spill] sm:$0xff] %v3640_v49 }
 0x12f   :  { %v3652_v44 = vpop.f32.mrf.mxu3 }
 0x130   :  { %4279 = vst [vmem:[#allocation61_spill] sm:$0xff] %v3652_v44 }
 0x151   :  { %v797_v45 = vpop.f32.mrf.mxu0  ;;  %v811_v62 = vpop.f32.mrf.mxu1 }
 0x152   :  { %v844_v12 = vadd.f32 %v797_v45, %v208_v3  ;;  %v845_v18 = vadd.f32 %v811_v62, %v257_v35 }
 0x154   :  { %v2576_v49 = vmul.f32 -1.442695, %v844_v12  ;;  %v2578_v0 = vmul.f32 -1.442695, %v845_v18 }
 0x156   :  { %2788 = vpow2.f32 %v2576_v49 }
 0x157   :  { %2790 = vpow2.f32 %v2578_v0 }
 0x158   :  { %v839_v44 = vpop.f32.mrf.mxu3  ;;  %v825_v26 = vpop.f32.mrf.mxu2 }
 0x159   :  { %v847_v55 = vadd.f32 %v839_v44, %v355_v1  ;;  %v799_v2 = vpop.f32.mrf.mxu0  ;;  %v813_v3 = vpop.f32.mrf.mxu1 }
 0x15a   :  { %v848_v35 = vadd.f32 %v799_v2, %v210_v19  ;;  %v849_v45 = vadd.f32 %v813_v3, %v259_v30 }
 0x15b   :  { %v2580_v62 = vmul.f32 -1.442695, %v847_v55  ;;  %v846_v55 = vadd.f32 %v825_v26, %v306_v11 }
 0x15c   :  { %v2789_v12 = vpop.eup %2788  ;;  %v2577_v18 = vmul.f32 -1.442695, %v848_v35  ;;  %v2579_v23 = vmul.f32 -1.442695, %v849_v45 }
 0x15d   :  { %v2791_v49 = vpop.eup %2790  ;;  %v858_v27 = vadd.f32 1.0, %v2789_v12  ;;  %2792 = vpow2.f32 %v2580_v62 }
 0x15e   :  { %v896_v0 = vadd.f32 1.0, %v2791_v49  ;;  %2794 = vpow2.f32 %v2577_v18 }
 0x15f   :  { %2796 = vrcp.f32 %v858_v27  ;;  %vm865_vm11 = vweird.f32 %v858_v27 }
 0x160   :  { %2798 = vrcp.f32 %v896_v0  ;;  %v841_v2 = vpop.f32.mrf.mxu3  ;;  %vm903_vm12 = vweird.f32 %v896_v0 }
 0x161   :  { %2800 = vpow2.f32 %v2579_v23  ;;  %v851_v1 = vadd.f32 %v841_v2, %v357_v39  ;;  %v827_v23 = vpop.f32.mrf.mxu2  ;;  %v869_v39 = vand.u32 2147483647, %v858_v27  ;;  %v871_v2 = vand.u32 2147483648, %v858_v27 }
 0x162   :  { %2802 = vtanh.f32 %v846_v55  ;;  %v850_v6 = vadd.f32 %v827_v23, %v308_v17 }
 0x163   :  { %v2793_v44 = vpop.eup %2792  ;;  %v2581_v45 = vmul.f32 -1.442695, %v851_v1  ;;  %v909_v1 = vand.u32 2147483648, %v896_v0  ;;  %vm870_vm15 = vcmp.eq.f32.partialorder %v869_v39, 8.507059e+37 }
 0x164   :  { %v2795_v19 = vpop.eup %2794  ;;  %v3666_v30 = vadd.f32 1.0, %v2793_v44 }
 0x165   :  { %v2797_v3 = vpop.eup %2796  ;;  %v3668_v35 = vadd.f32 1.0, %v2795_v19  ;;  %v907_v19 = vand.u32 2147483647, %v896_v0 }
 0x166   :  { %v2799_v62 = vpop.eup %2798  ;;  %v861_v12 = vmul.f32 %v2797_v3, %v858_v27  ;;  %vm866_vm9 = vweird.f32 %v2797_v3 }
 0x167   :  { %v2801_v50 = vpop.eup %2800  ;;  %v899_v18 = vmul.f32 %v2799_v62, %v896_v0  ;;  %2804 = vrcp.f32 %v3668_v35  ;;  %vm904_vm10 = vweird.f32 %v2799_v62  ;;  %vm867_vm13 = vmor %vm865_vm11, %vm866_vm9  ;;  %vm908_vm0 = vcmp.eq.f32.partialorder %v907_v19, 8.507059e+37 }
 0x168   :  { %v862_v26 = vsub.f32 1.0, %v861_v12  ;;  %2806 = vrcp.f32 %v3666_v30  ;;  %v3674_v49 = vadd.f32 1.0, %v2801_v50  ;;  %v2803_v34 = vpop.eup %2802  ;;  %v872_v50 = vor.u32 1.1754944e-38, %v871_v2  ;;  %vm905_vm14 = vmor %vm903_vm12, %vm904_vm10 }
 0x169   :  { %v900_v11 = vsub.f32 1.0, %v899_v18  ;;  %2808 = vpow2.f32 %v2581_v45  ;;  %v910_v45 = vor.u32 1.1754944e-38, %v909_v1  ;;  %v884_v1 = vand.u32 2147483647, %v3668_v35 }
 0x16a   :  { %v863_v44 = vmul.f32 %v2797_v3, %v862_v26  ;;  %2810 = vrcp.f32 %v3674_v49  ;;  %vm880_vm2 = vweird.f32 %v3668_v35  ;;  %vm918_vm6 = vweird.f32 %v3674_v49 }
 0x16b   :  { %v901_v55 = vmul.f32 %v2799_v62, %v900_v11  ;;  %2812 = vtanh.f32 %v850_v6  ;;  %vm885_vm5 = vcmp.eq.f32.partialorder %v884_v1, 8.507059e+37  ;;  %vm943_vm10 = vweird.f32 %v3666_v30 }
 0x16c   :  { %v864_v12 = vadd.f32 %v2797_v3, %v863_v44  ;;  %v949_v1 = vand.u32 2147483648, %v3666_v30 }
 0x16d   :  { %v2805_v40 = vpop.eup %2804  ;;  %v902_v18 = vadd.f32 %v2799_v62, %v901_v55 }
 0x16e   :  { %v3677_v43 = vpop.eup %2806  ;;  %v868_v26 = vsel %vm867_vm13, %v2797_v3, %v864_v12  ;;  %v876_v48 = vmul.f32 %v2805_v40, %v3668_v35  ;;  %v886_v3 = vand.u32 2147483648, %v3668_v35  ;;  %vm881_vm1 = vweird.f32 %v2805_v40 }
 0x16f   :  { %v2809_v11 = vpop.eup %2808  ;;  %v873_v15 = vsel %vm870_vm15, %v872_v50, %v868_v26  ;;  %v906_v9 = vsel %vm905_vm14, %v2799_v62, %v902_v18  ;;  %v939_v39 = vmul.f32 %v3677_v43, %v3666_v30  ;;  %vm882_vm4 = vmor %vm880_vm2, %vm881_vm1  ;;  %vm944_vm9 = vweird.f32 %v3677_v43 }
 0x170   :  { %v2811_v17 = vpop.eup %2810  ;;  %v911_v27 = vsel %vm908_vm0, %v910_v45, %v906_v9  ;;  %v970_v23 = vmul.f32 %v2803_v34, %v873_v15  ;;  %v877_v0 = vsub.f32 1.0, %v876_v48  ;;  %v937_v44 = vadd.f32 1.0, %v2809_v11  ;;  %vm945_vm13 = vmor %vm943_vm10, %vm944_vm9 }
 0x171   :  { %v968_v2 = vmul.f32 %v911_v27, %v3488_v41  ;;  %v914_v55 = vmul.f32 %v2811_v17, %v3674_v49  ;;  %v924_v15 = vand.u32 2147483648, %v3674_v49  ;;  %v2813_v41 = vpop.eup %2812  ;;  %vm919_vm3 = vweird.f32 %v2811_v17 }
 0x172   :  { %v878_v12 = vmul.f32 %v2805_v40, %v877_v0  ;;  %2814 = vrcp.f32 %v937_v44  ;;  %v887_v19 = vor.u32 1.1754944e-38, %v886_v3  ;;  %v922_v34 = vand.u32 2147483647, %v3674_v49  ;;  %vm920_vm7 = vmor %vm918_vm6, %vm919_vm3 }
 0x173   :  { %v3686_v6 = vadd.f32 %v970_v23, %v968_v2  ;;  %v915_v9 = vsub.f32 1.0, %v914_v55  ;;  %v940_v50 = vsub.f32 1.0, %v939_v39  ;;  %v925_v27 = vor.u32 1.1754944e-38, %v924_v15 }
 0x174   :  { %v879_v48 = vadd.f32 %v2805_v40, %v878_v12  ;;  %vm923_vm8 = vcmp.eq.f32.partialorder %v922_v34, 8.507059e+37  ;;  %vm958_vm12 = vweird.f32 %v937_v44  ;;  %v962_v15 = vand.u32 2147483647, %v937_v44 }
 0x175   :  { %v916_v62 = vmul.f32 %v2811_v17, %v915_v9  ;;  %v941_v2 = vmul.f32 %v3677_v43, %v940_v50  ;;  %2816 = vtanh.f32 %v3686_v6  ;;  %v964_v9 = vand.u32 2147483648, %v937_v44 }
 0x176   :  { %v883_v18 = vsel %vm882_vm4, %v2805_v40, %v879_v48  ;;  %vm963_vm0 = vcmp.eq.f32.partialorder %v962_v15, 8.507059e+37 }
 0x177   :  { %v888_v45 = vsel %vm885_vm5, %v887_v19, %v883_v18  ;;  %v917_v26 = vadd.f32 %v2811_v17, %v916_v62  ;;  %v950_v19 = vor.u32 1.1754944e-38, %v949_v1  ;;  %v965_v34 = vor.u32 1.1754944e-38, %v964_v9 }
 0x178   :  { %v2815_v11 = vpop.eup %2814  ;;  %v971_v35 = vmul.f32 %v2813_v41, %v888_v45 }
 0x179   :  { %v921_v23 = vsel %vm920_vm7, %v2811_v17, %v917_v26  ;;  %v954_v0 = vmul.f32 %v2815_v11, %v937_v44  ;;  %v942_v17 = vadd.f32 %v3677_v43, %v941_v2  ;;  %vm959_vm11 = vweird.f32 %v2815_v11  ;;  %v4283_v44 = vld [vmem:[#allocation23_spill] sm:$0xff] }
 0x17a   :  { %v926_v55 = vsel %vm923_vm8, %v925_v27, %v921_v23  ;;  %vm960_vm14 = vmor %vm958_vm12, %vm959_vm11 }
 0x17b   :  { %v969_v3 = vmul.f32 %v926_v55, %v3492_v63  ;;  %v955_v12 = vsub.f32 1.0, %v954_v0  ;;  %v947_v63 = vand.u32 2147483647, %v3666_v30  ;;  %v946_v48 = vsel %vm945_vm13, %v3677_v43, %v942_v17  ;;  %v2817_v62 = vpop.eup %2816  ;;  %v4282_v30 = vld [vmem:[#allocation13_spill] sm:$0xff]  ;;  %v4285_v17 = vld [vmem:[#allocation20_spill] sm:$0xff] }
 0x17c   :  { %v213_v43 = vadd.f32 %v3562_v58, %v3284_v8 }
 0x17d   :  { %v3695_v40 = vadd.f32 %v971_v35, %v969_v3  ;;  %v956_v49 = vmul.f32 %v2815_v11, %v955_v12  ;;  %vm948_vm15 = vcmp.eq.f32.partialorder %v947_v63, 8.507059e+37  ;;  %v4287_v63 = vld [vmem:[#allocation27_spill] sm:$0xff] }
 0x17e   :  { %v951_v18 = vsel %vm948_vm15, %v950_v19, %v946_v48  ;;  %v264_v58 = vadd.f32 %v4287_v63, %v4282_v30 }
 0x17f   :  { %2818 = vtanh.f32 %v3695_v40  ;;  %v957_v39 = vadd.f32 %v2815_v11, %v956_v49  ;;  %v976_v26 = vmul.f32 %v2817_v62, %v951_v18  ;;  %v4284_v49 = vld [vmem:[#allocation18_spill] sm:$0xff] }
 0x180   :  { %v360_v1 = vadd.f32 %v4285_v17, %v4284_v49 }
 0x181   :  { %v961_v41 = vsel %vm960_vm14, %v2815_v11, %v957_v39  ;;  %v262_v11 = vadd.f32 %v4283_v44, %v4282_v30  ;;  %v4286_v39 = vld [vmem:[#allocation26_spill] sm:$0xff] }
 0x182   :  { %v966_v45 = vsel %vm963_vm0, %v965_v34, %v961_v41  ;;  %v215_v9 = vadd.f32 %v4286_v39, %v3284_v8 }
 0x185   :  { %v2819_v50 = vpop.eup %2818 }
 0x186   :  { %v977_v27 = vmul.f32 %v2819_v50, %v966_v45 }
 0x188   :  { %v986_v23 = vpack.c.bf16 %v977_v27, %v976_v26 }
 0x18a   :  { %995 = vmatmul.bf16.vlgmr.msra.gmra.mxu0 %v986_v23  ;;  %1009 = vmatmul.bf16.vlgmr.msra.gmra.mxu1 %v986_v23 }
 0x18b   :  { %1023 = vmatmul.bf16.vlgmr.msrb.gmra.mxu2 %v986_v23  ;;  %1037 = vmatmul.bf16.vlgmr.msrb.gmra.mxu3 %v986_v23 }
 0x18c   :  { %1385 = vmatpush.bf16.msra.mxu0 %v3197_v24  ;;  %1399 = vmatpush.bf16.msra.mxu1 %v3199_v25 }
 0x18d   :  { %1413 = vmatpush.bf16.msrb.mxu2 %v3195_v20  ;;  %1427 = vmatpush.bf16.msrb.mxu3 %v3186_v16 }
 0x190   :  { %1386 = vmatpush.bf16.msra.mxu0 %v3214_v33  ;;  %1400 = vmatpush.bf16.msra.mxu1 %v3216_v37 }
 0x191   :  { %1414 = vmatpush.bf16.msrb.mxu2 %v3218_v38  ;;  %1428 = vmatpush.bf16.msrb.mxu3 %v3202_v28 }
 0x194   :  { %1387 = vmatpush.bf16.msra.mxu0 %v3225_v46  ;;  %1401 = vmatpush.bf16.msra.mxu1 %v3227_v47 }
 0x195   :  { %1415 = vmatpush.bf16.msrb.mxu2 %v3239_v52  ;;  %1429 = vmatpush.bf16.msrb.mxu3 %v3221_v42 }
 0x198   :  { %1388 = vmatpush.bf16.msra.mxu0 %v3243_v57  ;;  %1402 = vmatpush.bf16.msra.mxu1 %v3246_v60 }
 0x199   :  { %1416 = vmatpush.bf16.msrb.mxu2 %v3279_v4  ;;  %1430 = vmatpush.bf16.msrb.mxu3 %v3241_v56 }
 0x19c   :  { %1389 = vmatpush.bf16.msra.mxu0 %v3300_v21  ;;  %1403 = vmatpush.bf16.msra.mxu1 %v3304_v29 }
 0x19d   :  { %1417 = vmatpush.bf16.msrb.mxu2 %v3309_v32  ;;  %1431 = vmatpush.bf16.msrb.mxu3 %v3281_v7 }
 0x1a0   :  { %1390 = vmatpush.bf16.msra.mxu0 %v3331_v61  ;;  %1404 = vmatpush.bf16.msra.mxu1 %v3340_v5 }
 0x1a1   :  { %1418 = vmatpush.bf16.msrb.mxu2 %v3355_v22  ;;  %1432 = vmatpush.bf16.msrb.mxu3 %v3329_v59 }
 0x1a4   :  { %1391 = vmatpush.bf16.msra.mxu0 %v3365_v53  ;;  %1405 = vmatpush.bf16.msra.mxu1 %v3367_v54 }
 0x1a5   :  { %1419 = vmatpush.bf16.msrb.mxu2 %v3385_v10  ;;  %1433 = vmatpush.bf16.msrb.mxu3 %v3379_v14 }
 0x1a8   :  { %1392 = vmatpush.bf16.msra.mxu0 %v3397_v51  ;;  %1406 = vmatpush.bf16.msra.mxu1 %v3399_v31 }
 0x1a9   :  { %1420 = vmatpush.bf16.msrb.mxu2 %v3407_v13  ;;  %1434 = vmatpush.bf16.msrb.mxu3 %v3401_v36 }
 0x207   :  { %v996_v35 = vpop.f32.mrf.mxu0  ;;  %v1010_v0 = vpop.f32.mrf.mxu1 }
 0x208   :  { %v1043_v2 = vadd.f32 %v996_v35, %v213_v43  ;;  %v1044_v55 = vadd.f32 %v1010_v0, %v262_v11  ;;  %v4288_v11 = vld [vmem:[#allocation19_spill] sm:$0xff]  ;;  %v4289_v35 = vld [vmem:[#allocation21_spill] sm:$0xff] }
 0x209   :  { %v311_v0 = vadd.f32 %v4289_v35, %v4288_v11 }
 0x20a   :  { %v2582_v3 = vmul.f32 -1.442695, %v1043_v2  ;;  %v2584_v12 = vmul.f32 -1.442695, %v1044_v55  ;;  %v4290_v2 = vld [vmem:[#allocation22_spill] sm:$0xff] }
 0x20b   :  { %v362_v55 = vadd.f32 %v4290_v2, %v4284_v49 }
 0x20c   :  { %2820 = vpow2.f32 %v2582_v3 }
 0x20d   :  { %2822 = vpow2.f32 %v2584_v12 }
 0x20e   :  { %v1038_v15 = vpop.f32.mrf.mxu3  ;;  %v1024_v44 = vpop.f32.mrf.mxu2 }
 0x20f   :  { %v1046_v48 = vadd.f32 %v1038_v15, %v360_v1  ;;  %v998_v41 = vpop.f32.mrf.mxu0  ;;  %v1012_v62 = vpop.f32.mrf.mxu1  ;;  %v1045_v12 = vadd.f32 %v1024_v44, %v311_v0 }
 0x210   :  { %v1047_v19 = vadd.f32 %v998_v41, %v215_v9  ;;  %v1048_v34 = vadd.f32 %v1012_v62, %v264_v58 }
 0x211   :  { %v2586_v50 = vmul.f32 -1.442695, %v1046_v48 }
 0x212   :  { %v2821_v18 = vpop.eup %2820  ;;  %v2583_v45 = vmul.f32 -1.442695, %v1047_v19  ;;  %v2585_v23 = vmul.f32 -1.442695, %v1048_v34  ;;  %v4291_v34 = vld [vmem:[#allocation24_spill] sm:$0xff] }
 0x213   :  { %v2823_v26 = vpop.eup %2822  ;;  %v1057_v27 = vadd.f32 1.0, %v2821_v18  ;;  %2824 = vpow2.f32 %v2586_v50  ;;  %v313_v50 = vadd.f32 %v4291_v34, %v4288_v11 }
 0x214   :  { %v1095_v43 = vadd.f32 1.0, %v2823_v26  ;;  %2826 = vpow2.f32 %v2583_v45 }
 0x215   :  { %2828 = vrcp.f32 %v1057_v27  ;;  %v1068_v44 = vand.u32 2147483647, %v1057_v27  ;;  %v1070_v35 = vand.u32 2147483648, %v1057_v27  ;;  %vm1064_vm3 = vweird.f32 %v1057_v27 }
 0x216   :  { %2830 = vrcp.f32 %v1095_v43  ;;  %v1040_v3 = vpop.f32.mrf.mxu3  ;;  %v1026_v26 = vpop.f32.mrf.mxu2  ;;  %v1108_v0 = vand.u32 2147483648, %v1095_v43  ;;  %vm1102_vm4 = vweird.f32 %v1095_v43 }
 0x217   :  { %2832 = vpow2.f32 %v2585_v23  ;;  %v1050_v17 = vadd.f32 %v1040_v3, %v362_v55  ;;  %v1106_v3 = vand.u32 2147483647, %v1095_v43  ;;  %vm1069_vm7 = vcmp.eq.f32.partialorder %v1068_v44, 8.507059e+37 }
 0x218   :  { %2834 = vtanh.f32 %v1045_v12  ;;  %v1049_v12 = vadd.f32 %v1026_v26, %v313_v50 }
 0x219   :  { %v2825_v1 = vpop.eup %2824  ;;  %v2587_v15 = vmul.f32 -1.442695, %v1050_v17  ;;  %vm1107_vm8 = vcmp.eq.f32.partialorder %v1106_v3, 8.507059e+37 }
 0x21a   :  { %v2827_v39 = vpop.eup %2826  ;;  %v3750_v9 = vadd.f32 1.0, %v2825_v1 }
 0x21b   :  { %v2829_v63 = vpop.eup %2828  ;;  %v3752_v58 = vadd.f32 1.0, %v2827_v39 }
 0x21c   :  { %v2831_v48 = vpop.eup %2830  ;;  %v1060_v41 = vmul.f32 %v2829_v63, %v1057_v27  ;;  %vm1065_vm1 = vweird.f32 %v2829_v63 }
 0x21d   :  { %v2833_v62 = vpop.eup %2832  ;;  %v1098_v19 = vmul.f32 %v2831_v48, %v1095_v43  ;;  %2836 = vrcp.f32 %v3752_v58  ;;  %vm1103_vm2 = vweird.f32 %v2831_v48  ;;  %vm1066_vm5 = vmor %vm1064_vm3, %vm1065_vm1  ;;  %vm1079_vm10 = vweird.f32 %v3752_v58 }
 0x21e   :  { %v1061_v18 = vsub.f32 1.0, %v1060_v41  ;;  %2838 = vrcp.f32 %v3750_v9  ;;  %v3758_v45 = vadd.f32 1.0, %v2833_v62  ;;  %v2835_v17 = vpop.eup %2834  ;;  %v1071_v41 = vor.u32 1.1754944e-38, %v1070_v35  ;;  %vm1104_vm6 = vmor %vm1102_vm4, %vm1103_vm2 }
 0x21f   :  { %v1099_v23 = vsub.f32 1.0, %v1098_v19  ;;  %2840 = vpow2.f32 %v2587_v15  ;;  %v1109_v15 = vor.u32 1.1754944e-38, %v1108_v0  ;;  %v1083_v0 = vand.u32 2147483647, %v3752_v58 }
 0x220   :  { %v1062_v2 = vmul.f32 %v2829_v63, %v1061_v18  ;;  %2842 = vrcp.f32 %v3758_v45  ;;  %vm1117_vm14 = vweird.f32 %v3758_v45  ;;  %vm1142_vm2 = vweird.f32 %v3750_v9 }
 0x221   :  { %v1100_v55 = vmul.f32 %v2831_v48, %v1099_v23  ;;  %2844 = vtanh.f32 %v1049_v12  ;;  %vm1084_vm13 = vcmp.eq.f32.partialorder %v1083_v0, 8.507059e+37  ;;  %v1148_v0 = vand.u32 2147483648, %v3750_v9 }
 0x222   :  { %v1063_v1 = vadd.f32 %v2829_v63, %v1062_v2 }
 0x223   :  { %v2837_v39 = vpop.eup %2836  ;;  %v1101_v62 = vadd.f32 %v2831_v48, %v1100_v55 }
 0x224   :  { %v3761_v19 = vpop.eup %2838  ;;  %v1067_v34 = vsel %vm1066_vm5, %v2829_v63, %v1063_v1  ;;  %v1075_v18 = vmul.f32 %v2837_v39, %v3752_v58  ;;  %v1085_v63 = vand.u32 2147483648, %v3752_v58  ;;  %vm1080_vm9 = vweird.f32 %v2837_v39 }
 0x225   :  { %v2841_v23 = vpop.eup %2840  ;;  %v1072_v11 = vsel %vm1069_vm7, %v1071_v41, %v1067_v34  ;;  %v1105_v49 = vsel %vm1104_vm6, %v2831_v48, %v1101_v62  ;;  %v1138_v44 = vmul.f32 %v3761_v19, %v3750_v9  ;;  %vm1081_vm12 = vmor %vm1079_vm10, %vm1080_vm9  ;;  %v1121_v41 = vand.u32 2147483647, %v3758_v45 }
 0x226   :  { %v2843_v50 = vpop.eup %2842  ;;  %v1110_v27 = vsel %vm1107_vm8, %v1109_v15, %v1105_v49  ;;  %v1169_v26 = vmul.f32 %v2835_v17, %v1072_v11  ;;  %v1076_v43 = vsub.f32 1.0, %v1075_v18  ;;  %v1136_v2 = vadd.f32 1.0, %v2841_v23 }
 0x227   :  { %v1167_v35 = vmul.f32 %v1110_v27, %v3686_v6  ;;  %v1113_v55 = vmul.f32 %v2843_v50, %v3758_v45  ;;  %v1123_v11 = vand.u32 2147483648, %v3758_v45  ;;  %v2845_v6 = vpop.eup %2844  ;;  %vm1118_vm11 = vweird.f32 %v2843_v50 }
 0x228   :  { %v1077_v1 = vmul.f32 %v2837_v39, %v1076_v43  ;;  %2846 = vrcp.f32 %v1136_v2  ;;  %v1086_v17 = vor.u32 1.1754944e-38, %v1085_v63  ;;  %v1139_v62 = vsub.f32 1.0, %v1138_v44  ;;  %vm1119_vm15 = vmor %vm1117_vm14, %vm1118_vm11 }
 0x229   :  { %v3770_v48 = vadd.f32 %v1169_v26, %v1167_v35  ;;  %v1114_v49 = vsub.f32 1.0, %v1113_v55  ;;  %v1124_v27 = vor.u32 1.1754944e-38, %v1123_v11  ;;  %vm1122_vm0 = vcmp.eq.f32.partialorder %v1121_v41, 8.507059e+37 }
 0x22a   :  { %v1078_v3 = vadd.f32 %v2837_v39, %v1077_v1  ;;  %v1140_v35 = vmul.f32 %v3761_v19, %v1139_v62  ;;  %vm1143_vm1 = vweird.f32 %v3761_v19  ;;  %vm1157_vm4 = vweird.f32 %v1136_v2 }
 0x22b   :  { %v1115_v12 = vmul.f32 %v2843_v50, %v1114_v49  ;;  %2848 = vtanh.f32 %v3770_v48  ;;  %v1163_v49 = vand.u32 2147483648, %v1136_v2  ;;  %vm1144_vm5 = vmor %vm1142_vm2, %vm1143_vm1  ;;  %v1161_v11 = vand.u32 2147483647, %v1136_v2 }
 0x22c   :  { %v1082_v15 = vsel %vm1081_vm12, %v2837_v39, %v1078_v3 }
 0x22d   :  { %v1087_v34 = vsel %vm1084_vm13, %v1086_v17, %v1082_v15  ;;  %v1116_v18 = vadd.f32 %v2843_v50, %v1115_v12  ;;  %v1149_v17 = vor.u32 1.1754944e-38, %v1148_v0  ;;  %v1164_v41 = vor.u32 1.1754944e-38, %v1163_v49 }
 0x22e   :  { %v2847_v23 = vpop.eup %2846  ;;  %v1170_v58 = vmul.f32 %v2845_v6, %v1087_v34  ;;  %vm1162_vm8 = vcmp.eq.f32.partialorder %v1161_v11, 8.507059e+37 }
 0x22f   :  { %v1120_v26 = vsel %vm1119_vm15, %v2843_v50, %v1116_v18  ;;  %v1153_v43 = vmul.f32 %v2847_v23, %v1136_v2  ;;  %v1141_v50 = vadd.f32 %v3761_v19, %v1140_v35  ;;  %vm1158_vm3 = vweird.f32 %v2847_v23  ;;  %v4293_v2 = vld [vmem:[#allocation31_spill] sm:$0xff] }
 0x230   :  { %v1125_v55 = vsel %vm1122_vm0, %v1124_v27, %v1120_v26  ;;  %vm1159_vm6 = vmor %vm1157_vm4, %vm1158_vm3 }
 0x231   :  { %v1168_v63 = vmul.f32 %v1125_v55, %v3695_v40  ;;  %v1154_v1 = vsub.f32 1.0, %v1153_v43  ;;  %v1146_v40 = vand.u32 2147483647, %v3750_v9  ;;  %v1145_v3 = vsel %vm1144_vm5, %v3761_v19, %v1141_v50  ;;  %v2849_v12 = vpop.eup %2848  ;;  %v4292_v9 = vld [vmem:[#allocation30_spill] sm:$0xff]  ;;  %v4295_v50 = vld [vmem:[#allocation25_spill] sm:$0xff] }
 0x232   :  { %v218_v19 = vadd.f32 %v4292_v9, %v3284_v8 }
 0x233   :  { %v3779_v39 = vadd.f32 %v1170_v58, %v1168_v63  ;;  %v1155_v45 = vmul.f32 %v2847_v23, %v1154_v1  ;;  %vm1147_vm7 = vcmp.eq.f32.partialorder %v1146_v40, 8.507059e+37  ;;  %v4297_v40 = vld [vmem:[#allocation35_spill] sm:$0xff] }
 0x234   :  { %v1150_v15 = vsel %vm1147_vm7, %v1149_v17, %v1145_v3  ;;  %v269_v11 = vadd.f32 %v4297_v40, %v4282_v30 }
 0x235   :  { %2850 = vtanh.f32 %v3779_v39  ;;  %v1156_v44 = vadd.f32 %v2847_v23, %v1155_v45  ;;  %v1175_v18 = vmul.f32 %v2849_v12, %v1150_v15  ;;  %v4294_v45 = vld [vmem:[#allocation18_spill] sm:$0xff] }
 0x236   :  { %v365_v0 = vadd.f32 %v4295_v50, %v4294_v45 }
 0x237   :  { %v1160_v6 = vsel %vm1159_vm6, %v2847_v23, %v1156_v44  ;;  %v267_v23 = vadd.f32 %v4293_v2, %v4282_v30  ;;  %v4296_v44 = vld [vmem:[#allocation34_spill] sm:$0xff] }
 0x238   :  { %v1165_v34 = vsel %vm1162_vm8, %v1164_v41, %v1160_v6  ;;  %v220_v49 = vadd.f32 %v4296_v44, %v3284_v8 }
 0x23b   :  { %v2851_v62 = vpop.eup %2850 }
 0x23c   :  { %v1176_v27 = vmul.f32 %v2851_v62, %v1165_v34 }
 0x23e   :  { %v1185_v26 = vpack.c.bf16 %v1176_v27, %v1175_v18 }
 0x240   :  { %1194 = vmatmul.bf16.vlgmr.msrb.gmra.mxu0 %v1185_v26  ;;  %1208 = vmatmul.bf16.vlgmr.msrb.gmra.mxu1 %v1185_v26 }
 0x241   :  { %1222 = vmatmul.bf16.vlgmr.msra.gmra.mxu2 %v1185_v26  ;;  %1236 = vmatmul.bf16.vlgmr.msra.gmra.mxu3 %v1185_v26 }
 0x242   :  { %1584 = vmatpush.bf16.msrb.mxu0 %v3197_v24  ;;  %1598 = vmatpush.bf16.msrb.mxu1 %v3199_v25 }
 0x243   :  { %1612 = vmatpush.bf16.msra.mxu2 %v3195_v20  ;;  %1626 = vmatpush.bf16.msra.mxu3 %v3186_v16 }
 0x246   :  { %1585 = vmatpush.bf16.msrb.mxu0 %v3214_v33  ;;  %1599 = vmatpush.bf16.msrb.mxu1 %v3216_v37 }
 0x247   :  { %1613 = vmatpush.bf16.msra.mxu2 %v3218_v38  ;;  %1627 = vmatpush.bf16.msra.mxu3 %v3202_v28 }
 0x24a   :  { %1586 = vmatpush.bf16.msrb.mxu0 %v3225_v46  ;;  %1600 = vmatpush.bf16.msrb.mxu1 %v3227_v47 }
 0x24b   :  { %1614 = vmatpush.bf16.msra.mxu2 %v3239_v52  ;;  %1628 = vmatpush.bf16.msra.mxu3 %v3221_v42 }
 0x24e   :  { %1587 = vmatpush.bf16.msrb.mxu0 %v3243_v57  ;;  %1601 = vmatpush.bf16.msrb.mxu1 %v3246_v60 }
 0x24f   :  { %1615 = vmatpush.bf16.msra.mxu2 %v3279_v4  ;;  %1629 = vmatpush.bf16.msra.mxu3 %v3241_v56 }
 0x252   :  { %1588 = vmatpush.bf16.msrb.mxu0 %v3300_v21  ;;  %1602 = vmatpush.bf16.msrb.mxu1 %v3304_v29 }
 0x253   :  { %1616 = vmatpush.bf16.msra.mxu2 %v3309_v32  ;;  %1630 = vmatpush.bf16.msra.mxu3 %v3281_v7 }
 0x256   :  { %1589 = vmatpush.bf16.msrb.mxu0 %v3331_v61  ;;  %1603 = vmatpush.bf16.msrb.mxu1 %v3340_v5 }
 0x257   :  { %1617 = vmatpush.bf16.msra.mxu2 %v3355_v22  ;;  %1631 = vmatpush.bf16.msra.mxu3 %v3329_v59 }
 0x25a   :  { %1590 = vmatpush.bf16.msrb.mxu0 %v3365_v53  ;;  %1604 = vmatpush.bf16.msrb.mxu1 %v3367_v54 }
 0x25b   :  { %1618 = vmatpush.bf16.msra.mxu2 %v3385_v10  ;;  %1632 = vmatpush.bf16.msra.mxu3 %v3379_v14 }
 0x25e   :  { %1591 = vmatpush.bf16.msrb.mxu0 %v3397_v51  ;;  %1605 = vmatpush.bf16.msrb.mxu1 %v3399_v31 }
 0x25f   :  { %1619 = vmatpush.bf16.msra.mxu2 %v3407_v13  ;;  %1633 = vmatpush.bf16.msra.mxu3 %v3401_v36 }
 0x2bd   :  { %v1195_v58 = vpop.f32.mrf.mxu0  ;;  %v1209_v43 = vpop.f32.mrf.mxu1 }
 0x2be   :  { %v1242_v35 = vadd.f32 %v1195_v58, %v218_v19  ;;  %v1243_v55 = vadd.f32 %v1209_v43, %v267_v23  ;;  %v4298_v23 = vld [vmem:[#allocation19_spill] sm:$0xff]  ;;  %v4299_v58 = vld [vmem:[#allocation28_spill] sm:$0xff] }
 0x2bf   :  { %v316_v43 = vadd.f32 %v4299_v58, %v4298_v23 }
 0x2c0   :  { %v2588_v63 = vmul.f32 -1.442695, %v1242_v35  ;;  %v2590_v1 = vmul.f32 -1.442695, %v1243_v55  ;;  %v4300_v35 = vld [vmem:[#allocation29_spill] sm:$0xff] }
 0x2c1   :  { %v367_v55 = vadd.f32 %v4300_v35, %v4294_v45 }
 0x2c2   :  { %2852 = vpow2.f32 %v2588_v63 }
 0x2c3   :  { %2854 = vpow2.f32 %v2590_v1 }
 0x2c4   :  { %v1237_v3 = vpop.f32.mrf.mxu3  ;;  %v1223_v2 = vpop.f32.mrf.mxu2 }
 0x2c5   :  { %v1245_v6 = vadd.f32 %v1237_v3, %v365_v0  ;;  %v1197_v12 = vpop.f32.mrf.mxu0  ;;  %v1211_v17 = vpop.f32.mrf.mxu1  ;;  %v1244_v1 = vadd.f32 %v1223_v2, %v316_v43 }
 0x2c6   :  { %v1246_v41 = vadd.f32 %v1197_v12, %v220_v49  ;;  %v1247_v62 = vadd.f32 %v1211_v17, %v269_v11 }
 0x2c7   :  { %v2592_v15 = vmul.f32 -1.442695, %v1245_v6 }
 0x2c8   :  { %v2853_v34 = vpop.eup %2852  ;;  %v2589_v18 = vmul.f32 -1.442695, %v1246_v41  ;;  %v2591_v9 = vmul.f32 -1.442695, %v1247_v62  ;;  %v4301_v62 = vld [vmem:[#allocation32_spill] sm:$0xff] }
 0x2c9   :  { %v2855_v27 = vpop.eup %2854  ;;  %v1256_v26 = vadd.f32 1.0, %v2853_v34  ;;  %2856 = vpow2.f32 %v2592_v15  ;;  %v318_v15 = vadd.f32 %v4301_v62, %v4298_v23 }
 0x2ca   :  { %v1294_v19 = vadd.f32 1.0, %v2855_v27  ;;  %2858 = vpow2.f32 %v2589_v18 }
 0x2cb   :  { %2860 = vrcp.f32 %v1256_v26  ;;  %v1267_v2 = vand.u32 2147483647, %v1256_v26  ;;  %v1269_v58 = vand.u32 2147483648, %v1256_v26  ;;  %vm1263_vm11 = vweird.f32 %v1256_v26 }
 0x2cc   :  { %2862 = vrcp.f32 %v1294_v19  ;;  %v1239_v63 = vpop.f32.mrf.mxu3  ;;  %v1225_v27 = vpop.f32.mrf.mxu2  ;;  %v1307_v43 = vand.u32 2147483648, %v1294_v19  ;;  %vm1301_vm12 = vweird.f32 %v1294_v19 }
 0x2cd   :  { %2864 = vpow2.f32 %v2591_v9  ;;  %v1249_v50 = vadd.f32 %v1239_v63, %v367_v55  ;;  %v1305_v63 = vand.u32 2147483647, %v1294_v19  ;;  %vm1268_vm15 = vcmp.eq.f32.partialorder %v1267_v2, 8.507059e+37 }
 0x2ce   :  { %2866 = vtanh.f32 %v1244_v1  ;;  %v1248_v1 = vadd.f32 %v1225_v27, %v318_v15 }
 0x2cf   :  { %v2857_v0 = vpop.eup %2856  ;;  %v2593_v3 = vmul.f32 -1.442695, %v1249_v50  ;;  %vm1306_vm0 = vcmp.eq.f32.partialorder %v1305_v63, 8.507059e+37 }
 0x2d0   :  { %v2859_v44 = vpop.eup %2858  ;;  %v3834_v49 = vadd.f32 1.0, %v2857_v0 }
 0x2d1   :  { %v2861_v40 = vpop.eup %2860  ;;  %v3836_v11 = vadd.f32 1.0, %v2859_v44 }
 0x2d2   :  { %v2863_v6 = vpop.eup %2862  ;;  %v1259_v12 = vmul.f32 %v2861_v40, %v1256_v26  ;;  %vm1264_vm9 = vweird.f32 %v2861_v40 }
 0x2d3   :  { %v2865_v17 = vpop.eup %2864  ;;  %v1297_v41 = vmul.f32 %v2863_v6, %v1294_v19  ;;  %2868 = vrcp.f32 %v3836_v11  ;;  %vm1302_vm10 = vweird.f32 %v2863_v6  ;;  %vm1265_vm13 = vmor %vm1263_vm11, %vm1264_vm9  ;;  %vm1278_vm2 = vweird.f32 %v3836_v11 }
 0x2d4   :  { %v1260_v34 = vsub.f32 1.0, %v1259_v12  ;;  %2870 = vrcp.f32 %v3834_v49  ;;  %v3842_v18 = vadd.f32 1.0, %v2865_v17  ;;  %v2867_v50 = vpop.eup %2866  ;;  %v1270_v12 = vor.u32 1.1754944e-38, %v1269_v58  ;;  %vm1303_vm14 = vmor %vm1301_vm12, %vm1302_vm10 }
 0x2d5   :  { %v1298_v9 = vsub.f32 1.0, %v1297_v41  ;;  %2872 = vpow2.f32 %v2593_v3  ;;  %v1308_v3 = vor.u32 1.1754944e-38, %v1307_v43  ;;  %v1282_v43 = vand.u32 2147483647, %v3836_v11 }
 0x2d6   :  { %v1261_v35 = vmul.f32 %v2861_v40, %v1260_v34  ;;  %2874 = vrcp.f32 %v3842_v18  ;;  %vm1316_vm6 = vweird.f32 %v3842_v18  ;;  %vm1341_vm10 = vweird.f32 %v3834_v49 }
 0x2d7   :  { %v1299_v55 = vmul.f32 %v2863_v6, %v1298_v9  ;;  %2876 = vtanh.f32 %v1248_v1  ;;  %vm1283_vm5 = vcmp.eq.f32.partialorder %v1282_v43, 8.507059e+37 }
 0x2d8   :  { %v1262_v0 = vadd.f32 %v2861_v40, %v1261_v35 }
 0x2d9   :  { %v2869_v44 = vpop.eup %2868  ;;  %v1300_v17 = vadd.f32 %v2863_v6, %v1299_v55 }
 0x2da   :  { %v3845_v41 = vpop.eup %2870  ;;  %v1266_v62 = vsel %vm1265_vm13, %v2861_v40, %v1262_v0  ;;  %v1274_v34 = vmul.f32 %v2869_v44, %v3836_v11  ;;  %v1284_v40 = vand.u32 2147483648, %v3836_v11  ;;  %vm1279_vm1 = vweird.f32 %v2869_v44 }
 0x2db   :  { %v2873_v9 = vpop.eup %2872  ;;  %v1271_v23 = vsel %vm1268_vm15, %v1270_v12, %v1266_v62  ;;  %v1304_v45 = vsel %vm1303_vm14, %v2863_v6, %v1300_v17  ;;  %v1337_v2 = vmul.f32 %v3845_v41, %v3834_v49  ;;  %vm1280_vm4 = vmor %vm1278_vm2, %vm1279_vm1  ;;  %v1320_v12 = vand.u32 2147483647, %v3842_v18 }
 0x2dc   :  { %v2875_v15 = vpop.eup %2874  ;;  %v1309_v26 = vsel %vm1306_vm0, %v1308_v3, %v1304_v45  ;;  %v1368_v27 = vmul.f32 %v2867_v50, %v1271_v23  ;;  %v1275_v19 = vsub.f32 1.0, %v1274_v34  ;;  %v1335_v35 = vadd.f32 1.0, %v2873_v9 }
 0x2dd   :  { %v1366_v58 = vmul.f32 %v1309_v26, %v3770_v48  ;;  %v1312_v55 = vmul.f32 %v2875_v15, %v3842_v18  ;;  %v1322_v23 = vand.u32 2147483648, %v3842_v18  ;;  %v2877_v48 = vpop.eup %2876  ;;  %vm1317_vm3 = vweird.f32 %v2875_v15 }
 0x2de   :  { %v1276_v0 = vmul.f32 %v2869_v44, %v1275_v19  ;;  %2878 = vrcp.f32 %v1335_v35  ;;  %v1285_v50 = vor.u32 1.1754944e-38, %v1284_v40  ;;  %v1338_v17 = vsub.f32 1.0, %v1337_v2  ;;  %vm1318_vm7 = vmor %vm1316_vm6, %vm1317_vm3 }
 0x2df   :  { %v3854_v6 = vadd.f32 %v1368_v27, %v1366_v58  ;;  %v1313_v45 = vsub.f32 1.0, %v1312_v55  ;;  %v1323_v26 = vor.u32 1.1754944e-38, %v1322_v23  ;;  %vm1321_vm8 = vcmp.eq.f32.partialorder %v1320_v12, 8.507059e+37 }
 0x2e0   :  { %v1277_v63 = vadd.f32 %v2869_v44, %v1276_v0  ;;  %v1339_v58 = vmul.f32 %v3845_v41, %v1338_v17  ;;  %vm1342_vm9 = vweird.f32 %v3845_v41  ;;  %vm1356_vm12 = vweird.f32 %v1335_v35 }
 0x2e1   :  { %v1314_v1 = vmul.f32 %v2875_v15, %v1313_v45  ;;  %2880 = vtanh.f32 %v3854_v6  ;;  %v1362_v45 = vand.u32 2147483648, %v1335_v35  ;;  %vm1343_vm13 = vmor %vm1341_vm10, %vm1342_vm9  ;;  %v1360_v23 = vand.u32 2147483647, %v1335_v35 }
 0x2e2   :  { %v1281_v3 = vsel %vm1280_vm4, %v2869_v44, %v1277_v63  ;;  %v1340_v43 = vadd.f32 %v3845_v41, %v1339_v58 }
 0x2e3   :  { %v1286_v62 = vsel %vm1283_vm5, %v1285_v50, %v1281_v3  ;;  %v1315_v34 = vadd.f32 %v2875_v15, %v1314_v1  ;;  %v1363_v12 = vor.u32 1.1754944e-38, %v1362_v45  ;;  %vm1361_vm0 = vcmp.eq.f32.partialorder %v1360_v23, 8.507059e+37 }
 0x2e4   :  { %v2879_v9 = vpop.eup %2878  ;;  %v1369_v27 = vmul.f32 %v2877_v48, %v1286_v62  ;;  %v1344_v63 = vsel %vm1343_vm13, %v3845_v41, %v1340_v43  ;;  %v4305_v43 = vld [vmem:[#allocation33_spill] sm:$0xff] }
 0x2e5   :  { %v1319_v19 = vsel %vm1318_vm7, %v2875_v15, %v1315_v34  ;;  %v1352_v11 = vmul.f32 %v2879_v9, %v1335_v35  ;;  %vm1357_vm11 = vweird.f32 %v2879_v9  ;;  %v1347_v15 = vand.u32 2147483648, %v3834_v49  ;;  %v4303_v35 = vld [vmem:[#allocation39_spill] sm:$0xff] }
 0x2e6   :  { %v1324_v55 = vsel %vm1321_vm8, %v1323_v26, %v1319_v19  ;;  %vm1358_vm14 = vmor %vm1356_vm12, %vm1357_vm11 }
 0x2e7   :  { %v1367_v40 = vmul.f32 %v1324_v55, %v3779_v39  ;;  %v1353_v0 = vsub.f32 1.0, %v1352_v11  ;;  %v1345_v39 = vand.u32 2147483647, %v3834_v49  ;;  %v2881_v1 = vpop.eup %2880  ;;  %v1348_v50 = vor.u32 1.1754944e-38, %v1347_v15  ;;  %v4302_v49 = vld [vmem:[#allocation38_spill] sm:$0xff] }
 0x2e8   :  { %v223_v41 = vadd.f32 %v4302_v49, %v3284_v8 }
 0x2e9   :  { %v3863_v44 = vadd.f32 %v1369_v27, %v1367_v40  ;;  %v1354_v18 = vmul.f32 %v2879_v9, %v1353_v0  ;;  %vm1346_vm15 = vcmp.eq.f32.partialorder %v1345_v39, 8.507059e+37  ;;  %v4307_v39 = vld [vmem:[#allocation43_spill] sm:$0xff] }
 0x2ea   :  { %v1349_v3 = vsel %vm1346_vm15, %v1348_v50, %v1344_v63  ;;  %v274_v23 = vadd.f32 %v4307_v39, %v4282_v30 }
 0x2eb   :  { %2882 = vtanh.f32 %v3863_v44  ;;  %v1355_v2 = vadd.f32 %v2879_v9, %v1354_v18  ;;  %v1374_v34 = vmul.f32 %v2881_v1, %v1349_v3  ;;  %v4304_v18 = vld [vmem:[#allocation18_spill] sm:$0xff] }
 0x2ec   :  { %v370_v15 = vadd.f32 %v4305_v43, %v4304_v18 }
 0x2ed   :  { %v1359_v48 = vsel %vm1358_vm14, %v2879_v9, %v1355_v2  ;;  %v272_v9 = vadd.f32 %v4303_v35, %v4282_v30  ;;  %v4306_v2 = vld [vmem:[#allocation42_spill] sm:$0xff] }
 0x2ee   :  { %v1364_v62 = vsel %vm1361_vm0, %v1363_v12, %v1359_v48  ;;  %v225_v45 = vadd.f32 %v4306_v2, %v3284_v8 }
 0x2f1   :  { %v2883_v17 = vpop.eup %2882 }
 0x2f2   :  { %v1375_v26 = vmul.f32 %v2883_v17, %v1364_v62 }
 0x2f4   :  { %v1384_v27 = vpack.c.bf16 %v1375_v26, %v1374_v34 }
 0x2f6   :  { %1393 = vmatmul.bf16.vlgmr.msra.gmra.mxu0 %v1384_v27  ;;  %1407 = vmatmul.bf16.vlgmr.msra.gmra.mxu1 %v1384_v27 }
 0x2f7   :  { %1421 = vmatmul.bf16.vlgmr.msrb.gmra.mxu2 %v1384_v27  ;;  %1435 = vmatmul.bf16.vlgmr.msrb.gmra.mxu3 %v1384_v27 }
 0x2f8   :  { %1783 = vmatpush.bf16.msra.mxu0 %v3197_v24  ;;  %1797 = vmatpush.bf16.msra.mxu1 %v3199_v25 }
 0x2f9   :  { %1811 = vmatpush.bf16.msrb.mxu2 %v3195_v20  ;;  %1825 = vmatpush.bf16.msrb.mxu3 %v3186_v16 }
 0x2fc   :  { %1784 = vmatpush.bf16.msra.mxu0 %v3214_v33  ;;  %1798 = vmatpush.bf16.msra.mxu1 %v3216_v37 }
 0x2fd   :  { %1812 = vmatpush.bf16.msrb.mxu2 %v3218_v38  ;;  %1826 = vmatpush.bf16.msrb.mxu3 %v3202_v28 }
 0x300   :  { %1785 = vmatpush.bf16.msra.mxu0 %v3225_v46  ;;  %1799 = vmatpush.bf16.msra.mxu1 %v3227_v47 }
 0x301   :  { %1813 = vmatpush.bf16.msrb.mxu2 %v3239_v52  ;;  %1827 = vmatpush.bf16.msrb.mxu3 %v3221_v42 }
 0x304   :  { %1786 = vmatpush.bf16.msra.mxu0 %v3243_v57  ;;  %1800 = vmatpush.bf16.msra.mxu1 %v3246_v60 }
 0x305   :  { %1814 = vmatpush.bf16.msrb.mxu2 %v3279_v4  ;;  %1828 = vmatpush.bf16.msrb.mxu3 %v3241_v56 }
 0x308   :  { %1787 = vmatpush.bf16.msra.mxu0 %v3300_v21  ;;  %1801 = vmatpush.bf16.msra.mxu1 %v3304_v29 }
 0x309   :  { %1815 = vmatpush.bf16.msrb.mxu2 %v3309_v32  ;;  %1829 = vmatpush.bf16.msrb.mxu3 %v3281_v7 }
 0x30c   :  { %1788 = vmatpush.bf16.msra.mxu0 %v3331_v61  ;;  %1802 = vmatpush.bf16.msra.mxu1 %v3340_v5 }
 0x30d   :  { %1816 = vmatpush.bf16.msrb.mxu2 %v3355_v22  ;;  %1830 = vmatpush.bf16.msrb.mxu3 %v3329_v59 }
 0x310   :  { %1789 = vmatpush.bf16.msra.mxu0 %v3365_v53  ;;  %1803 = vmatpush.bf16.msra.mxu1 %v3367_v54 }
 0x311   :  { %1817 = vmatpush.bf16.msrb.mxu2 %v3385_v10  ;;  %1831 = vmatpush.bf16.msrb.mxu3 %v3379_v14 }
 0x314   :  { %1790 = vmatpush.bf16.msra.mxu0 %v3397_v51  ;;  %1804 = vmatpush.bf16.msra.mxu1 %v3399_v31 }
 0x315   :  { %1818 = vmatpush.bf16.msrb.mxu2 %v3407_v13  ;;  %1832 = vmatpush.bf16.msrb.mxu3 %v3401_v36 }
 0x373   :  { %v1394_v19 = vpop.f32.mrf.mxu0  ;;  %v1408_v11 = vpop.f32.mrf.mxu1 }
 0x374   :  { %v1441_v58 = vadd.f32 %v1394_v19, %v223_v41  ;;  %v1442_v55 = vadd.f32 %v1408_v11, %v272_v9  ;;  %v4308_v9 = vld [vmem:[#allocation19_spill] sm:$0xff]  ;;  %v4309_v19 = vld [vmem:[#allocation36_spill] sm:$0xff] }
 0x375   :  { %v321_v11 = vadd.f32 %v4309_v19, %v4308_v9 }
 0x376   :  { %v2594_v40 = vmul.f32 -1.442695, %v1441_v58  ;;  %v2596_v0 = vmul.f32 -1.442695, %v1442_v55  ;;  %v4310_v58 = vld [vmem:[#allocation37_spill] sm:$0xff] }
 0x377   :  { %v372_v55 = vadd.f32 %v4310_v58, %v4304_v18 }
 0x378   :  { %2884 = vpow2.f32 %v2594_v40 }
 0x379   :  { %2886 = vpow2.f32 %v2596_v0 }
 0x37a   :  { %v1436_v63 = vpop.f32.mrf.mxu3  ;;  %v1422_v35 = vpop.f32.mrf.mxu2 }
 0x37b   :  { %v1444_v48 = vadd.f32 %v1436_v63, %v370_v15  ;;  %v1396_v1 = vpop.f32.mrf.mxu0  ;;  %v1410_v50 = vpop.f32.mrf.mxu1  ;;  %v1443_v0 = vadd.f32 %v1422_v35, %v321_v11 }
 0x37c   :  { %v1445_v12 = vadd.f32 %v1396_v1, %v225_v45  ;;  %v1446_v17 = vadd.f32 %v1410_v50, %v274_v23 }
 0x37d   :  { %v2598_v3 = vmul.f32 -1.442695, %v1444_v48 }
 0x37e   :  { %v2885_v62 = vpop.eup %2884  ;;  %v2595_v34 = vmul.f32 -1.442695, %v1445_v12  ;;  %v2597_v49 = vmul.f32 -1.442695, %v1446_v17  ;;  %v4311_v17 = vld [vmem:[#allocation40_spill] sm:$0xff] }
 0x37f   :  { %v2887_v26 = vpop.eup %2886  ;;  %v1455_v27 = vadd.f32 1.0, %v2885_v62  ;;  %2888 = vpow2.f32 %v2598_v3  ;;  %v323_v3 = vadd.f32 %v4311_v17, %v4308_v9 }
 0x380   :  { %v1493_v41 = vadd.f32 1.0, %v2887_v26  ;;  %2890 = vpow2.f32 %v2595_v34 }
 0x381   :  { %2892 = vrcp.f32 %v1455_v27  ;;  %v1466_v35 = vand.u32 2147483647, %v1455_v27  ;;  %v1468_v19 = vand.u32 2147483648, %v1455_v27  ;;  %vm1462_vm3 = vweird.f32 %v1455_v27 }
 0x382   :  { %2894 = vrcp.f32 %v1493_v41  ;;  %v1438_v40 = vpop.f32.mrf.mxu3  ;;  %v1424_v26 = vpop.f32.mrf.mxu2  ;;  %v1506_v11 = vand.u32 2147483648, %v1493_v41  ;;  %vm1500_vm4 = vweird.f32 %v1493_v41 }
 0x383   :  { %2896 = vpow2.f32 %v2597_v49  ;;  %v1448_v43 = vadd.f32 %v1438_v40, %v372_v55  ;;  %v1504_v40 = vand.u32 2147483647, %v1493_v41  ;;  %vm1467_vm7 = vcmp.eq.f32.partialorder %v1466_v35, 8.507059e+37 }
 0x384   :  { %2898 = vtanh.f32 %v1443_v0  ;;  %v1447_v0 = vadd.f32 %v1424_v26, %v323_v3 }
 0x385   :  { %v2889_v15 = vpop.eup %2888  ;;  %v2599_v63 = vmul.f32 -1.442695, %v1448_v43  ;;  %vm1505_vm8 = vcmp.eq.f32.partialorder %v1504_v40, 8.507059e+37 }
 0x386   :  { %v2891_v2 = vpop.eup %2890  ;;  %v3918_v45 = vadd.f32 1.0, %v2889_v15 }
 0x387   :  { %v2893_v39 = vpop.eup %2892  ;;  %v3920_v23 = vadd.f32 1.0, %v2891_v2 }
 0x388   :  { %v2895_v48 = vpop.eup %2894  ;;  %v1458_v1 = vmul.f32 %v2893_v39, %v1455_v27  ;;  %vm1463_vm1 = vweird.f32 %v2893_v39 }
 0x389   :  { %v2897_v50 = vpop.eup %2896  ;;  %v1496_v12 = vmul.f32 %v2895_v48, %v1493_v41  ;;  %2900 = vrcp.f32 %v3920_v23  ;;  %vm1501_vm2 = vweird.f32 %v2895_v48  ;;  %vm1464_vm5 = vmor %vm1462_vm3, %vm1463_vm1  ;;  %vm1477_vm10 = vweird.f32 %v3920_v23 }
 0x38a   :  { %v1459_v62 = vsub.f32 1.0, %v1458_v1  ;;  %2902 = vrcp.f32 %v3918_v45  ;;  %v3926_v34 = vadd.f32 1.0, %v2897_v50  ;;  %v2899_v43 = vpop.eup %2898  ;;  %v1469_v1 = vor.u32 1.1754944e-38, %v1468_v19  ;;  %vm1502_vm6 = vmor %vm1500_vm4, %vm1501_vm2 }
 0x38b   :  { %v1497_v49 = vsub.f32 1.0, %v1496_v12  ;;  %2904 = vpow2.f32 %v2599_v63  ;;  %v1507_v63 = vor.u32 1.1754944e-38, %v1506_v11  ;;  %v1481_v11 = vand.u32 2147483647, %v3920_v23 }
 0x38c   :  { %v1460_v58 = vmul.f32 %v2893_v39, %v1459_v62  ;;  %2906 = vrcp.f32 %v3926_v34  ;;  %vm1515_vm14 = vweird.f32 %v3926_v34  ;;  %vm1540_vm2 = vweird.f32 %v3918_v45 }
 0x38d   :  { %v1498_v55 = vmul.f32 %v2895_v48, %v1497_v49  ;;  %2908 = vtanh.f32 %v1447_v0  ;;  %vm1482_vm13 = vcmp.eq.f32.partialorder %v1481_v11, 8.507059e+37 }
 0x38e   :  { %v1461_v15 = vadd.f32 %v2893_v39, %v1460_v58 }
 0x38f   :  { %v2901_v2 = vpop.eup %2900  ;;  %v1499_v50 = vadd.f32 %v2895_v48, %v1498_v55 }
 0x390   :  { %v3929_v12 = vpop.eup %2902  ;;  %v1465_v17 = vsel %vm1464_vm5, %v2893_v39, %v1461_v15  ;;  %v1473_v62 = vmul.f32 %v2901_v2, %v3920_v23  ;;  %v1483_v39 = vand.u32 2147483648, %v3920_v23  ;;  %vm1478_vm9 = vweird.f32 %v2901_v2 }
 0x391   :  { %v2905_v49 = vpop.eup %2904  ;;  %v1470_v9 = vsel %vm1467_vm7, %v1469_v1, %v1465_v17  ;;  %v1503_v18 = vsel %vm1502_vm6, %v2895_v48, %v1499_v50  ;;  %v1536_v35 = vmul.f32 %v3929_v12, %v3918_v45  ;;  %vm1479_vm12 = vmor %vm1477_vm10, %vm1478_vm9  ;;  %v1519_v1 = vand.u32 2147483647, %v3926_v34 }
 0x392   :  { %v2907_v3 = vpop.eup %2906  ;;  %v1508_v27 = vsel %vm1505_vm8, %v1507_v63, %v1503_v18  ;;  %v1567_v26 = vmul.f32 %v2899_v43, %v1470_v9  ;;  %v1474_v41 = vsub.f32 1.0, %v1473_v62  ;;  %v1534_v58 = vadd.f32 1.0, %v2905_v49 }
 0x393   :  { %v1565_v19 = vmul.f32 %v1508_v27, %v3854_v6  ;;  %v1511_v55 = vmul.f32 %v2907_v3, %v3926_v34  ;;  %v1521_v9 = vand.u32 2147483648, %v3926_v34  ;;  %v2909_v6 = vpop.eup %2908  ;;  %vm1516_vm11 = vweird.f32 %v2907_v3 }
 0x394   :  { %v1475_v15 = vmul.f32 %v2901_v2, %v1474_v41  ;;  %2910 = vrcp.f32 %v1534_v58  ;;  %v1484_v43 = vor.u32 1.1754944e-38, %v1483_v39  ;;  %v1537_v50 = vsub.f32 1.0, %v1536_v35  ;;  %vm1517_vm15 = vmor %vm1515_vm14, %vm1516_vm11 }
 0x395   :  { %v3938_v48 = vadd.f32 %v1567_v26, %v1565_v19  ;;  %v1512_v18 = vsub.f32 1.0, %v1511_v55  ;;  %v1522_v27 = vor.u32 1.1754944e-38, %v1521_v9  ;;  %vm1520_vm0 = vcmp.eq.f32.partialorder %v1519_v1, 8.507059e+37 }
 0x396   :  { %v1476_v40 = vadd.f32 %v2901_v2, %v1475_v15  ;;  %v1538_v19 = vmul.f32 %v3929_v12, %v1537_v50  ;;  %vm1541_vm1 = vweird.f32 %v3929_v12  ;;  %vm1555_vm4 = vweird.f32 %v1534_v58 }
 0x397   :  { %v1513_v0 = vmul.f32 %v2907_v3, %v1512_v18  ;;  %2912 = vtanh.f32 %v3938_v48  ;;  %v1561_v18 = vand.u32 2147483648, %v1534_v58  ;;  %vm1542_vm5 = vmor %vm1540_vm2, %vm1541_vm1  ;;  %v1559_v9 = vand.u32 2147483647, %v1534_v58 }
 0x398   :  { %v1480_v63 = vsel %vm1479_vm12, %v2901_v2, %v1476_v40  ;;  %v1539_v11 = vadd.f32 %v3929_v12, %v1538_v19 }
 0x399   :  { %v1485_v17 = vsel %vm1482_vm13, %v1484_v43, %v1480_v63  ;;  %v1514_v62 = vadd.f32 %v2907_v3, %v1513_v0  ;;  %v1562_v1 = vor.u32 1.1754944e-38, %v1561_v18  ;;  %vm1560_vm8 = vcmp.eq.f32.partialorder %v1559_v9, 8.507059e+37 }
 0x39a   :  { %v2911_v49 = vpop.eup %2910  ;;  %v1568_v26 = vmul.f32 %v2909_v6, %v1485_v17  ;;  %v1543_v40 = vsel %vm1542_vm5, %v3929_v12, %v1539_v11 }
 0x39b   :  { %v1518_v41 = vsel %vm1517_vm15, %v2907_v3, %v1514_v62  ;;  %v1551_v23 = vmul.f32 %v2911_v49, %v1534_v58  ;;  %vm1556_vm3 = vweird.f32 %v2911_v49  ;;  %v1546_v3 = vand.u32 2147483648, %v3918_v45 }
 0x39c   :  { %v1523_v55 = vsel %vm1520_vm0, %v1522_v27, %v1518_v41  ;;  %vm1557_vm6 = vmor %vm1555_vm4, %vm1556_vm3 }
 0x39d   :  { %v1566_v39 = vmul.f32 %v1523_v55, %v3863_v44  ;;  %v1552_v15 = vsub.f32 1.0, %v1551_v23  ;;  %v1544_v44 = vand.u32 2147483647, %v3918_v45  ;;  %v2913_v0 = vpop.eup %2912  ;;  %v1547_v43 = vor.u32 1.1754944e-38, %v1546_v3  ;;  %v4319_v45 = vld [vmem:[#allocation44_spill] sm:$0xff] }
 0x39f   :  { %v3947_v2 = vadd.f32 %v1568_v26, %v1566_v39  ;;  %v1553_v34 = vmul.f32 %v2911_v49, %v1552_v15  ;;  %vm1545_vm7 = vcmp.eq.f32.partialorder %v1544_v44, 8.507059e+37 }
 0x3a0   :  { %v1548_v63 = vsel %vm1545_vm7, %v1547_v43, %v1543_v40 }
 0x3a1   :  { %2914 = vtanh.f32 %v3947_v2  ;;  %v1554_v35 = vadd.f32 %v2911_v49, %v1553_v34  ;;  %v1573_v62 = vmul.f32 %v2913_v0, %v1548_v63 }
 0x3a3   :  { %v1558_v6 = vsel %vm1557_vm6, %v2911_v49, %v1554_v35  ;;  %v4320_v49 = vld [vmem:[#allocation45_spill] sm:$0xff] }
 0x3a4   :  { %v1563_v17 = vsel %vm1560_vm8, %v1562_v1, %v1558_v6 }
 0x3a7   :  { %v2915_v50 = vpop.eup %2914 }
 0x3a8   :  { %v1574_v27 = vmul.f32 %v2915_v50, %v1563_v17 }
 0x3aa   :  { %v1583_v26 = vpack.c.bf16 %v1574_v27, %v1573_v62 }
 0x3ac   :  { %1592 = vmatmul.bf16.vlgmr.msrb.gmra.mxu0 %v1583_v26  ;;  %1606 = vmatmul.bf16.vlgmr.msrb.gmra.mxu1 %v1583_v26 }
 0x3ad   :  { %1620 = vmatmul.bf16.vlgmr.msra.gmra.mxu2 %v1583_v26  ;;  %1634 = vmatmul.bf16.vlgmr.msra.gmra.mxu3 %v1583_v26  ;;  %v4321_v26 = vld [vmem:[#allocation48_spill] sm:$0xff] }
 0x3ae   :  { %1982 = vmatpush.bf16.msrb.mxu0 %v3197_v24  ;;  %1996 = vmatpush.bf16.msrb.mxu1 %v3199_v25  ;;  %v4313_v24 = vld [vmem:[#allocation47_spill] sm:$0xff] }
 0x3af   :  { %2010 = vmatpush.bf16.msra.mxu2 %v3195_v20  ;;  %2024 = vmatpush.bf16.msra.mxu3 %v3186_v16  ;;  %v4312_v16 = vld [vmem:[#allocation46_spill] sm:$0xff]  ;;  %v277_v25 = vadd.f32 %v4313_v24, %v4282_v30 }
 0x3b0   :  { %v228_v20 = vadd.f32 %v4312_v16, %v3284_v8 }
 0x3b2   :  { %1983 = vmatpush.bf16.msrb.mxu0 %v3214_v33  ;;  %1997 = vmatpush.bf16.msrb.mxu1 %v3216_v37 }
 0x3b3   :  { %2011 = vmatpush.bf16.msra.mxu2 %v3218_v38  ;;  %2025 = vmatpush.bf16.msra.mxu3 %v3202_v28 }
 0x3b6   :  { %1984 = vmatpush.bf16.msrb.mxu0 %v3225_v46  ;;  %1998 = vmatpush.bf16.msrb.mxu1 %v3227_v47  ;;  %v4314_v47 = vld [vmem:[#allocation18_spill] sm:$0xff] }
 0x3b7   :  { %2012 = vmatpush.bf16.msra.mxu2 %v3239_v52  ;;  %2026 = vmatpush.bf16.msra.mxu3 %v3221_v42  ;;  %v4315_v52 = vld [vmem:[#allocation41_spill] sm:$0xff]  ;;  %v377_v41 = vadd.f32 %v4320_v49, %v4314_v47 }
 0x3ba   :  { %1985 = vmatpush.bf16.msrb.mxu0 %v3243_v57  ;;  %1999 = vmatpush.bf16.msrb.mxu1 %v3246_v60  ;;  %v4316_v57 = vld [vmem:[#allocation50_spill] sm:$0xff] }
 0x3bb   :  { %2013 = vmatpush.bf16.msra.mxu2 %v3279_v4  ;;  %2027 = vmatpush.bf16.msra.mxu3 %v3241_v56  ;;  %v375_v56 = vadd.f32 %v4315_v52, %v4314_v47  ;;  %v230_v60 = vadd.f32 %v4316_v57, %v3284_v8  ;;  %v4317_v4 = vld [vmem:[#allocation51_spill] sm:$0xff] }
 0x3be   :  { %1986 = vmatpush.bf16.msrb.mxu0 %v3300_v21  ;;  %2000 = vmatpush.bf16.msrb.mxu1 %v3304_v29 }
 0x3bf   :  { %2014 = vmatpush.bf16.msra.mxu2 %v3309_v32  ;;  %2028 = vmatpush.bf16.msra.mxu3 %v3281_v7  ;;  %v279_v7 = vadd.f32 %v4317_v4, %v4282_v30 }
 0x3c2   :  { %1987 = vmatpush.bf16.msrb.mxu0 %v3331_v61  ;;  %2001 = vmatpush.bf16.msrb.mxu1 %v3340_v5 }
 0x3c3   :  { %2015 = vmatpush.bf16.msra.mxu2 %v3355_v22  ;;  %2029 = vmatpush.bf16.msra.mxu3 %v3329_v59 }
 0x3c6   :  { %1988 = vmatpush.bf16.msrb.mxu0 %v3365_v53  ;;  %2002 = vmatpush.bf16.msrb.mxu1 %v3367_v54 }
 0x3c7   :  { %2016 = vmatpush.bf16.msra.mxu2 %v3385_v10  ;;  %2030 = vmatpush.bf16.msra.mxu3 %v3379_v14 }
 0x3ca   :  { %1989 = vmatpush.bf16.msrb.mxu0 %v3397_v51  ;;  %2003 = vmatpush.bf16.msrb.mxu1 %v3399_v31 }
 0x3cb   :  { %2017 = vmatpush.bf16.msra.mxu2 %v3407_v13  ;;  %2031 = vmatpush.bf16.msra.mxu3 %v3401_v36  ;;  %v4318_v13 = vld [vmem:[#allocation19_spill] sm:$0xff] }
 0x3cc   :  { %v326_v12 = vadd.f32 %v4319_v45, %v4318_v13  ;;  %v328_v16 = vadd.f32 %v4321_v26, %v4318_v13 }
 0x429   :  { %v1593_v28 = vpop.f32.mrf.mxu0  ;;  %v1607_v33 = vpop.f32.mrf.mxu1 }
 0x42a   :  { %v1640_v37 = vadd.f32 %v1593_v28, %v228_v20  ;;  %v1641_v38 = vadd.f32 %v1607_v33, %v277_v25 }
 0x42c   :  { %v2600_v42 = vmul.f32 -1.442695, %v1640_v37  ;;  %v2602_v46 = vmul.f32 -1.442695, %v1641_v38 }
 0x42e   :  { %2916 = vpow2.f32 %v2600_v42 }
 0x42f   :  { %2918 = vpow2.f32 %v2602_v46 }
 0x430   :  { %v1635_v21 = vpop.f32.mrf.mxu3  ;;  %v1621_v36 = vpop.f32.mrf.mxu2 }
 0x431   :  { %v1643_v29 = vadd.f32 %v1635_v21, %v375_v56  ;;  %v1595_v31 = vpop.f32.mrf.mxu0  ;;  %v1609_v32 = vpop.f32.mrf.mxu1  ;;  %v1642_v19 = vadd.f32 %v1621_v36, %v326_v12 }
 0x432   :  { %v1644_v59 = vadd.f32 %v1595_v31, %v230_v60  ;;  %v1645_v61 = vadd.f32 %v1609_v32, %v279_v7 }
 0x433   :  { %v2604_v5 = vmul.f32 -1.442695, %v1643_v29 }
 0x434   :  { %v2917_v22 = vpop.eup %2916  ;;  %v2601_v53 = vmul.f32 -1.442695, %v1644_v59  ;;  %v2603_v14 = vmul.f32 -1.442695, %v1645_v61 }
 0x435   :  { %v2919_v54 = vpop.eup %2918  ;;  %v1654_v10 = vadd.f32 1.0, %v2917_v22  ;;  %2920 = vpow2.f32 %v2604_v5 }
 0x436   :  { %v1692_v51 = vadd.f32 1.0, %v2919_v54  ;;  %2922 = vpow2.f32 %v2601_v53 }
 0x437   :  { %2924 = vrcp.f32 %v1654_v10  ;;  %v1665_v43 = vand.u32 2147483647, %v1654_v10  ;;  %v1667_v1 = vand.u32 2147483648, %v1654_v10  ;;  %vm1661_vm11 = vweird.f32 %v1654_v10 }
 0x438   :  { %2926 = vrcp.f32 %v1692_v51  ;;  %v1637_v58 = vpop.f32.mrf.mxu3  ;;  %v1705_v50 = vand.u32 2147483648, %v1692_v51  ;;  %v1703_v62 = vand.u32 2147483647, %v1692_v51  ;;  %v1623_v27 = vpop.f32.mrf.mxu2  ;;  %vm1699_vm12 = vweird.f32 %v1692_v51 }
 0x439   :  { %2928 = vpow2.f32 %v2603_v14  ;;  %v1647_v39 = vadd.f32 %v1637_v58, %v377_v41  ;;  %v1668_v25 = vor.u32 1.1754944e-38, %v1667_v1  ;;  %vm1666_vm15 = vcmp.eq.f32.partialorder %v1665_v43, 8.507059e+37 }
 0x43a   :  { %2930 = vtanh.f32 %v1642_v19  ;;  %v1706_v37 = vor.u32 1.1754944e-38, %v1705_v50  ;;  %v1646_v42 = vadd.f32 %v1623_v27, %v328_v16  ;;  %vm1704_vm0 = vcmp.eq.f32.partialorder %v1703_v62, 8.507059e+37 }
 0x43b   :  { %v2921_v23 = vpop.eup %2920  ;;  %v2605_v6 = vmul.f32 -1.442695, %v1647_v39 }
 0x43c   :  { %v2923_v55 = vpop.eup %2922  ;;  %v4002_v34 = vadd.f32 1.0, %v2921_v23 }
 0x43d   :  { %v2925_v15 = vpop.eup %2924  ;;  %v4004_v11 = vadd.f32 1.0, %v2923_v55 }
 0x43e   :  { %v2927_v3 = vpop.eup %2926  ;;  %v1657_v35 = vmul.f32 %v2925_v15, %v1654_v10  ;;  %vm1662_vm9 = vweird.f32 %v2925_v15 }
 0x43f   :  { %v2929_v18 = vpop.eup %2928  ;;  %v1695_v44 = vmul.f32 %v2927_v3, %v1692_v51  ;;  %2932 = vrcp.f32 %v4004_v11  ;;  %vm1700_vm10 = vweird.f32 %v2927_v3  ;;  %vm1663_vm13 = vmor %vm1661_vm11, %vm1662_vm9  ;;  %v1680_v61 = vand.u32 2147483647, %v4004_v11 }
 0x440   :  { %v1658_v9 = vsub.f32 1.0, %v1657_v35  ;;  %v4007_v40 = vadd.f32 1.0, %v2929_v18  ;;  %2934 = vrcp.f32 %v4002_v34  ;;  %v2931_v24 = vpop.eup %2930  ;;  %vm1701_vm14 = vmor %vm1699_vm12, %vm1700_vm10  ;;  %v1682_v5 = vand.u32 2147483648, %v4004_v11 }
 0x441   :  { %v1696_v0 = vsub.f32 1.0, %v1695_v44  ;;  %vm1676_vm2 = vweird.f32 %v4004_v11  ;;  %vm1681_vm6 = vcmp.eq.f32.partialorder %v1680_v61, 8.507059e+37  ;;  %vm1739_vm10 = vweird.f32 %v4002_v34 }
 0x442   :  { %v1659_v63 = vmul.f32 %v2925_v15, %v1658_v9  ;;  %2936 = vrcp.f32 %v4007_v40  ;;  %v1720_v10 = vand.u32 2147483648, %v4007_v40  ;;  %v1718_v36 = vand.u32 2147483647, %v4007_v40 }
 0x443   :  { %v1697_v17 = vmul.f32 %v2927_v3, %v1696_v0  ;;  %2938 = vpow2.f32 %v2605_v6  ;;  %vm1714_vm4 = vweird.f32 %v4007_v40  ;;  %v1683_v45 = vor.u32 1.1754944e-38, %v1682_v5 }
 0x444   :  { %v1660_v20 = vadd.f32 %v2925_v15, %v1659_v63  ;;  %2940 = vtanh.f32 %v1646_v42  ;;  %v1721_v23 = vor.u32 1.1754944e-38, %v1720_v10  ;;  %vm1719_vm8 = vcmp.eq.f32.partialorder %v1718_v36, 8.507059e+37 }
 0x445   :  { %v1698_v28 = vadd.f32 %v2927_v3, %v1697_v17  ;;  %v2933_v33 = vpop.eup %2932  ;;  %v1745_v6 = vand.u32 2147483648, %v4002_v34 }
 0x446   :  { %v1664_v38 = vsel %vm1663_vm13, %v2925_v15, %v1660_v20  ;;  %v4013_v46 = vpop.eup %2934  ;;  %v1672_v57 = vmul.f32 %v2933_v33, %v4004_v11  ;;  %vm1677_vm1 = vweird.f32 %v2933_v33 }
 0x447   :  { %v1669_v52 = vsel %vm1666_vm15, %v1668_v25, %v1664_v38  ;;  %v1702_v56 = vsel %vm1701_vm14, %v2927_v3, %v1698_v28  ;;  %v1735_v59 = vmul.f32 %v4013_v46, %v4002_v34  ;;  %vm1678_vm5 = vmor %vm1676_vm2, %vm1677_vm1  ;;  %vm1740_vm9 = vweird.f32 %v4013_v46  ;;  %v4323_v38 = vld [vmem:[#allocation55_spill] sm:$0xff] }
 0x448   :  { %v2937_v60 = vpop.eup %2936  ;;  %v1707_v4 = vsel %vm1704_vm0, %v1706_v37, %v1702_v56  ;;  %v1766_v7 = vmul.f32 %v2931_v24, %v1669_v52  ;;  %v1673_v29 = vsub.f32 1.0, %v1672_v57  ;;  %vm1741_vm12 = vmor %vm1739_vm10, %vm1740_vm9  ;;  %v1746_v62 = vor.u32 1.1754944e-38, %v1745_v6 }
 0x449   :  { %v1764_v21 = vmul.f32 %v1707_v4, %v3938_v48  ;;  %v1710_v31 = vmul.f32 %v2937_v60, %v4007_v40  ;;  %v2939_v32 = vpop.eup %2938  ;;  %vm1715_vm3 = vweird.f32 %v2937_v60  ;;  %v1736_v12 = vsub.f32 1.0, %v1735_v59 }
 0x44a   :  { %v1674_v54 = vmul.f32 %v2933_v33, %v1673_v29  ;;  %v1733_v48 = vadd.f32 1.0, %v2939_v32  ;;  %v2941_v41 = vpop.eup %2940  ;;  %vm1716_vm7 = vmor %vm1714_vm4, %vm1715_vm3  ;;  %v282_v42 = vadd.f32 %v4323_v38, %v4282_v30  ;;  %v4325_v29 = vld [vmem:[#allocation58_spill] sm:$0xff]  ;;  %v4326_v32 = vld [vmem:[#allocation59_spill] sm:$0xff] }
 0x44b   :  { %v4022_v22 = vadd.f32 %v1766_v7, %v1764_v21  ;;  %v1711_v53 = vsub.f32 1.0, %v1710_v31  ;;  %v1737_v11 = vmul.f32 %v4013_v46, %v1736_v12  ;;  %v4324_v7 = vld [vmem:[#allocation49_spill] sm:$0xff]  ;;  %v235_v31 = vadd.f32 %v4325_v29, %v3284_v8 }
 0x44c   :  { %v1675_v51 = vadd.f32 %v2933_v33, %v1674_v54  ;;  %2942 = vrcp.f32 %v1733_v48  ;;  %v1760_v0 = vand.u32 2147483648, %v1733_v48  ;;  %v1758_v1 = vand.u32 2147483647, %v1733_v48 }
 0x44d   :  { %v1712_v14 = vmul.f32 %v2937_v60, %v1711_v53  ;;  %2944 = vtanh.f32 %v4022_v22  ;;  %v1738_v9 = vadd.f32 %v4013_v46, %v1737_v11  ;;  %vm1754_vm13 = vweird.f32 %v1733_v48 }
 0x44e   :  { %v1679_v58 = vsel %vm1678_vm5, %v2933_v33, %v1675_v51  ;;  %v1761_v27 = vor.u32 1.1754944e-38, %v1760_v0  ;;  %vm1759_vm0 = vcmp.eq.f32.partialorder %v1758_v1, 8.507059e+37  ;;  %v4322_v33 = vld [vmem:[#allocation54_spill] sm:$0xff]  ;;  %v380_v21 = vadd.f32 %v4324_v7, %v4314_v47 }
 0x44f   :  { %v1713_v49 = vadd.f32 %v2937_v60, %v1712_v14  ;;  %v1684_v19 = vsel %vm1681_vm6, %v1683_v45, %v1679_v58  ;;  %v1742_v63 = vsel %vm1741_vm12, %v4013_v46, %v1738_v9  ;;  %v233_v37 = vadd.f32 %v4322_v33, %v3284_v8 }
 0x450   :  { %v1767_v39 = vmul.f32 %v2941_v41, %v1684_v19  ;;  %v284_v59 = vadd.f32 %v4326_v32, %v4282_v30 }
 0x451   :  { %v1717_v55 = vsel %vm1716_vm7, %v2937_v60, %v1713_v49 }
 0x452   :  { %v1722_v15 = vsel %vm1719_vm8, %v1721_v23, %v1717_v55  ;;  %v2943_v35 = vpop.eup %2942  ;;  %v4327_v23 = vld [vmem:[#allocation52_spill] sm:$0xff] }
 0x453   :  { %v1765_v3 = vmul.f32 %v1722_v15, %v3947_v2  ;;  %v1750_v44 = vmul.f32 %v2943_v35, %v1733_v48  ;;  %v1743_v2 = vand.u32 2147483647, %v4002_v34  ;;  %vm1755_vm11 = vweird.f32 %v2943_v35  ;;  %v2945_v17 = vpop.eup %2944 }
 0x454   :  { %vm1756_vm14 = vmor %vm1754_vm13, %vm1755_vm11  ;;  %v331_v19 = vadd.f32 %v4327_v23, %v4318_v13 }
 0x455   :  { %v4030_v18 = vadd.f32 %v1767_v39, %v1765_v3  ;;  %v1751_v40 = vsub.f32 1.0, %v1750_v44  ;;  %vm1744_vm15 = vcmp.eq.f32.partialorder %v1743_v2, 8.507059e+37  ;;  %v4328_v39 = vld [vmem:[#allocation53_spill] sm:$0xff] }
 0x456   :  { %v1747_v20 = vsel %vm1744_vm15, %v1746_v62, %v1742_v63  ;;  %v382_v15 = vadd.f32 %v4328_v39, %v4314_v47 }
 0x457   :  { %2946 = vtanh.f32 %v4030_v18  ;;  %v1752_v43 = vmul.f32 %v2943_v35, %v1751_v40  ;;  %v1772_v25 = vmul.f32 %v2945_v17, %v1747_v20 }
 0x459   :  { %v1753_v50 = vadd.f32 %v2943_v35, %v1752_v43 }
 0x45b   :  { %v1757_v16 = vsel %vm1756_vm14, %v2943_v35, %v1753_v50 }
 0x45c   :  { %v1762_v24 = vsel %vm1759_vm0, %v1761_v27, %v1757_v16 }
 0x45d   :  { %v2947_v26 = vpop.eup %2946 }
 0x45e   :  { %v1773_v34 = vmul.f32 %v2947_v26, %v1762_v24 }
 0x460   :  { %v1782_v28 = vpack.c.bf16 %v1773_v34, %v1772_v25 }
 0x462   :  { %1791 = vmatmul.bf16.vlgmr.msra.gmra.mxu0 %v1782_v28  ;;  %1805 = vmatmul.bf16.vlgmr.msra.gmra.mxu1 %v1782_v28 }
 0x463   :  { %1819 = vmatmul.bf16.vlgmr.msrb.gmra.mxu2 %v1782_v28  ;;  %1833 = vmatmul.bf16.vlgmr.msrb.gmra.mxu3 %v1782_v28  ;;  %v4329_v28 = vld [vmem:[#allocation56_spill] sm:$0xff] }
 0x464   :  { %v333_v33 = vadd.f32 %v4329_v28, %v4318_v13 }
 0x4df   :  { %v1792_v46 = vpop.f32.mrf.mxu0  ;;  %v1806_v52 = vpop.f32.mrf.mxu1 }
 0x4e0   :  { %v1839_v56 = vadd.f32 %v1792_v46, %v233_v37  ;;  %v1840_v57 = vadd.f32 %v1806_v52, %v282_v42 }
 0x4e2   :  { %v2606_v60 = vmul.f32 -1.442695, %v1839_v56  ;;  %v2608_v4 = vmul.f32 -1.442695, %v1840_v57 }
 0x4e4   :  { %2948 = vpow2.f32 %v2606_v60 }
 0x4e5   :  { %2950 = vpow2.f32 %v2608_v4 }
 0x4e6   :  { %v1834_v61 = vpop.f32.mrf.mxu3  ;;  %v1820_v41 = vpop.f32.mrf.mxu2 }
 0x4e7   :  { %v1842_v5 = vadd.f32 %v1834_v61, %v380_v21  ;;  %v1794_v53 = vpop.f32.mrf.mxu0  ;;  %v1808_v54 = vpop.f32.mrf.mxu1  ;;  %v1841_v3 = vadd.f32 %v1820_v41, %v331_v19 }
 0x4e8   :  { %v1843_v10 = vadd.f32 %v1794_v53, %v235_v31  ;;  %v1844_v48 = vadd.f32 %v1808_v54, %v284_v59 }
 0x4e9   :  { %v2610_v14 = vmul.f32 -1.442695, %v1842_v5 }
 0x4ea   :  { %v2949_v51 = vpop.eup %2948  ;;  %v2607_v36 = vmul.f32 -1.442695, %v1843_v10  ;;  %v2609_v58 = vmul.f32 -1.442695, %v1844_v48 }
 0x4eb   :  { %v2951_v45 = vpop.eup %2950  ;;  %v1853_v12 = vadd.f32 1.0, %v2949_v51  ;;  %2952 = vpow2.f32 %v2610_v14 }
 0x4ec   :  { %v1891_v49 = vadd.f32 1.0, %v2951_v45  ;;  %2954 = vpow2.f32 %v2607_v36 }
 0x4ed   :  { %2956 = vrcp.f32 %v1853_v12  ;;  %v1864_v27 = vand.u32 2147483647, %v1853_v12  ;;  %v1866_v26 = vand.u32 2147483648, %v1853_v12  ;;  %vm1860_vm3 = vweird.f32 %v1853_v12 }
 0x4ee   :  { %2958 = vrcp.f32 %v1891_v49  ;;  %v1836_v55 = vpop.f32.mrf.mxu3  ;;  %v1904_v16 = vand.u32 2147483648, %v1891_v49  ;;  %v1902_v25 = vand.u32 2147483647, %v1891_v49  ;;  %v1822_v34 = vpop.f32.mrf.mxu2  ;;  %vm1898_vm4 = vweird.f32 %v1891_v49 }
 0x4ef   :  { %2960 = vpow2.f32 %v2609_v58  ;;  %v1846_v44 = vadd.f32 %v1836_v55, %v382_v15  ;;  %v1867_v42 = vor.u32 1.1754944e-38, %v1866_v26  ;;  %vm1865_vm7 = vcmp.eq.f32.partialorder %v1864_v27, 8.507059e+37 }
 0x4f0   :  { %2962 = vtanh.f32 %v1841_v3  ;;  %v1905_v56 = vor.u32 1.1754944e-38, %v1904_v16  ;;  %v1845_v60 = vadd.f32 %v1822_v34, %v333_v33  ;;  %vm1903_vm8 = vcmp.eq.f32.partialorder %v1902_v25, 8.507059e+37 }
 0x4f1   :  { %v2953_v11 = vpop.eup %2952  ;;  %v2611_v17 = vmul.f32 -1.442695, %v1846_v44 }
 0x4f2   :  { %v2955_v35 = vpop.eup %2954  ;;  %v4054_v40 = vadd.f32 1.0, %v2953_v11 }
 0x4f3   :  { %v2957_v9 = vpop.eup %2956  ;;  %v4056_v6 = vadd.f32 1.0, %v2955_v35 }
 0x4f4   :  { %v2959_v0 = vpop.eup %2958  ;;  %v1856_v2 = vmul.f32 %v2957_v9, %v1853_v12  ;;  %vm1861_vm1 = vweird.f32 %v2957_v9 }
 0x4f5   :  { %v2961_v43 = vpop.eup %2960  ;;  %v1894_v1 = vmul.f32 %v2959_v0, %v1891_v49  ;;  %2964 = vrcp.f32 %v4056_v6  ;;  %vm1899_vm2 = vweird.f32 %v2959_v0  ;;  %vm1862_vm5 = vmor %vm1860_vm3, %vm1861_vm1  ;;  %v1879_v48 = vand.u32 2147483647, %v4056_v6 }
 0x4f6   :  { %v1857_v50 = vsub.f32 1.0, %v1856_v2  ;;  %v4059_v63 = vadd.f32 1.0, %v2961_v43  ;;  %2966 = vrcp.f32 %v4054_v40  ;;  %v2963_v38 = vpop.eup %2962  ;;  %vm1900_vm6 = vmor %vm1898_vm4, %vm1899_vm2  ;;  %v1881_v14 = vand.u32 2147483648, %v4056_v6 }
 0x4f7   :  { %v1895_v62 = vsub.f32 1.0, %v1894_v1  ;;  %vm1875_vm10 = vweird.f32 %v4056_v6  ;;  %vm1880_vm14 = vcmp.eq.f32.partialorder %v1879_v48, 8.507059e+37  ;;  %vm1938_vm2 = vweird.f32 %v4054_v40 }
 0x4f8   :  { %v1858_v20 = vmul.f32 %v2957_v9, %v1857_v50  ;;  %2968 = vrcp.f32 %v4059_v63  ;;  %v1919_v12 = vand.u32 2147483648, %v4059_v63  ;;  %v1917_v41 = vand.u32 2147483647, %v4059_v63 }
 0x4f9   :  { %v1896_v24 = vmul.f32 %v2959_v0, %v1895_v62  ;;  %2970 = vpow2.f32 %v2611_v17  ;;  %vm1913_vm12 = vweird.f32 %v4059_v63  ;;  %v1882_v23 = vor.u32 1.1754944e-38, %v1881_v14  ;;  %v4334_v14 = vld [vmem:[#allocation17_spill] sm:$0xff] }
 0x4fa   :  { %v1859_v37 = vadd.f32 %v2957_v9, %v1858_v20  ;;  %2972 = vtanh.f32 %v1845_v60  ;;  %v1920_v11 = vor.u32 1.1754944e-38, %v1919_v12  ;;  %vm1918_vm0 = vcmp.eq.f32.partialorder %v1917_v41, 8.507059e+37  ;;  %v4331_v60 = vld [vmem:[#allocation15_spill] sm:$0xff] }
 0x4fb   :  { %v1897_v46 = vadd.f32 %v2959_v0, %v1896_v24  ;;  %v2965_v52 = vpop.eup %2964  ;;  %v1944_v17 = vand.u32 2147483648, %v4054_v40 }
 0x4fc   :  { %v1863_v57 = vsel %vm1862_vm5, %v2957_v9, %v1859_v37  ;;  %v4065_v4 = vpop.eup %2966  ;;  %v1871_v29 = vmul.f32 %v2965_v52, %v4056_v6  ;;  %vm1876_vm9 = vweird.f32 %v2965_v52 }
 0x4fd   :  { %v1868_v7 = vsel %vm1865_vm7, %v1867_v42, %v1863_v57  ;;  %v1901_v21 = vsel %vm1900_vm6, %v2959_v0, %v1897_v46  ;;  %v1934_v10 = vmul.f32 %v4065_v4, %v4054_v40  ;;  %vm1877_vm13 = vmor %vm1875_vm10, %vm1876_vm9  ;;  %vm1939_vm1 = vweird.f32 %v4065_v4 }
 0x4fe   :  { %v2969_v31 = vpop.eup %2968  ;;  %v1906_v32 = vsel %vm1903_vm8, %v1905_v56, %v1901_v21  ;;  %v1965_v59 = vmul.f32 %v2963_v38, %v1868_v7  ;;  %v1872_v5 = vsub.f32 1.0, %v1871_v29  ;;  %vm1940_vm4 = vmor %vm1938_vm2, %vm1939_vm1  ;;  %v1945_v25 = vor.u32 1.1754944e-38, %v1944_v17  ;;  %v4330_v56 = vld [vmem:[#allocation14_spill] sm:$0xff] }
 0x4ff   :  { %v1963_v61 = vmul.f32 %v1906_v32, %v4022_v22  ;;  %v1909_v53 = vmul.f32 %v2969_v31, %v4059_v63  ;;  %v2971_v54 = vpop.eup %2970  ;;  %vm1914_vm11 = vweird.f32 %v2969_v31  ;;  %v1935_v19 = vsub.f32 1.0, %v1934_v10  ;;  %v2732_v32 = vld [vmem:[%s4201_s4 + $0x30] sm:$0xff]  ;;  %v4333_v10 = vld [vmem:[#allocation16_spill] sm:$0xff] }
 0x500   :  { %v1873_v45 = vmul.f32 %v2965_v52, %v1872_v5  ;;  %v1932_v22 = vadd.f32 1.0, %v2971_v54  ;;  %v2973_v15 = vpop.eup %2972  ;;  %vm1915_vm15 = vmor %vm1913_vm12, %vm1914_vm11  ;;  %v238_v57 = vadd.f32 %v4330_v56, %v3284_v8  ;;  %v4332_v5 = vld [vmem:[#allocation57_spill] sm:$0xff]  ;;  %v2731_v54 = vld [vmem:[%s4201_s4 + $0x28] sm:$0xff]  ;;  %v240_v48 = vadd.f32 %v4333_v10, %v3284_v8 }
 0x501   :  { %v4074_v51 = vadd.f32 %v1965_v59, %v1963_v61  ;;  %v1910_v36 = vsub.f32 1.0, %v1909_v53  ;;  %v1936_v6 = vmul.f32 %v4065_v4, %v1935_v19  ;;  %v385_v53 = vadd.f32 %v4332_v5, %v4314_v47  ;;  %v2730_v19 = vld [vmem:[%s4201_s4 + $0x20] sm:$0xff] }
 0x502   :  { %v1874_v49 = vadd.f32 %v2965_v52, %v1873_v45  ;;  %2974 = vrcp.f32 %v1932_v22  ;;  %v1959_v62 = vand.u32 2147483648, %v1932_v22  ;;  %v1957_v26 = vand.u32 2147483647, %v1932_v22 }
 0x503   :  { %v1911_v58 = vmul.f32 %v2969_v31, %v1910_v36  ;;  %2976 = vtanh.f32 %v4074_v51  ;;  %v1937_v50 = vadd.f32 %v4065_v4, %v1936_v6  ;;  %vm1953_vm5 = vweird.f32 %v1932_v22 }
 0x504   :  { %v1878_v55 = vsel %vm1877_vm13, %v2965_v52, %v1874_v49  ;;  %v1960_v34 = vor.u32 1.1754944e-38, %v1959_v62  ;;  %vm1958_vm8 = vcmp.eq.f32.partialorder %v1957_v26, 8.507059e+37  ;;  %v2733_v52 = vld [vmem:[%s4201_s4 + $0x38] sm:$0xff]  ;;  %v289_v36 = vadd.f32 %v4334_v14, %v4282_v30 }
 0x505   :  { %v1912_v39 = vadd.f32 %v2969_v31, %v1911_v58  ;;  %v1883_v3 = vsel %vm1880_vm14, %v1882_v23, %v1878_v55  ;;  %v1941_v20 = vsel %vm1940_vm4, %v4065_v4, %v1937_v50  ;;  %v287_v4 = vadd.f32 %v4331_v60, %v4282_v30  ;;  %2241 = vmatpush.bf16.msra.mxu0 %v2733_v52 }
 0x506   :  { %v1966_v44 = vmul.f32 %v2973_v15, %v1883_v3 }
 0x507   :  { %v1916_v35 = vsel %vm1915_vm15, %v2969_v31, %v1912_v39 }
 0x508   :  { %v1921_v9 = vsel %vm1918_vm0, %v1920_v11, %v1916_v35  ;;  %v2975_v2 = vpop.eup %2974  ;;  %v2729_v35 = vld [vmem:[%s4201_s4 + $0x18] sm:$0xff] }
 0x509   :  { %v1964_v0 = vmul.f32 %v1921_v9, %v4030_v18  ;;  %v1949_v1 = vmul.f32 %v2975_v2, %v1932_v22  ;;  %v1942_v18 = vand.u32 2147483647, %v4054_v40  ;;  %vm1954_vm3 = vweird.f32 %v2975_v2  ;;  %v2977_v24 = vpop.eup %2976  ;;  %2242 = vmatpush.bf16.msra.mxu0 %v2732_v32 }
 0x50a   :  { %vm1955_vm6 = vmor %vm1953_vm5, %vm1954_vm3 }
 0x50b   :  { %v4082_v43 = vadd.f32 %v1966_v44, %v1964_v0  ;;  %v1950_v63 = vsub.f32 1.0, %v1949_v1  ;;  %vm1943_vm7 = vcmp.eq.f32.partialorder %v1942_v18, 8.507059e+37  ;;  %v4335_v44 = vld [vmem:[#allocation60_spill] sm:$0xff]  ;;  %v4336_v0 = vld [vmem:[#allocation61_spill] sm:$0xff] }
 0x50c   :  { %v1946_v37 = vsel %vm1943_vm7, %v1945_v25, %v1941_v20  ;;  %v336_v9 = vadd.f32 %v4335_v44, %v4318_v13  ;;  %v4337_v25 = vld [vmem:[#allocation62_spill] sm:$0xff] }
 0x50d   :  { %2978 = vtanh.f32 %v4082_v43  ;;  %v1951_v27 = vmul.f32 %v2975_v2, %v1950_v63  ;;  %v1971_v42 = vmul.f32 %v2977_v24, %v1946_v37  ;;  %2243 = vmatpush.bf16.msra.mxu0 %v2731_v54  ;;  %v2728_v63 = vld [vmem:[%s4201_s4 + $0x10] sm:$0xff] }
 0x50f   :  { %v1952_v16 = vadd.f32 %v2975_v2, %v1951_v27 }
 0x511   :  { %v1956_v33 = vsel %vm1955_vm6, %v2975_v2, %v1952_v16  ;;  %2244 = vmatpush.bf16.msra.mxu0 %v2730_v19  ;;  %v387_v2 = vadd.f32 %v4336_v0, %v4314_v47  ;;  %v2727_v16 = vld [vmem:[%s4201_s4 + $0x8] sm:$0xff] }
 0x512   :  { %v1961_v38 = vsel %vm1958_vm8, %v1960_v34, %v1956_v33  ;;  %v338_v34 = vadd.f32 %v4337_v25, %v4318_v13  ;;  %v2726_v13 = vld [vmem:[%s4201_s4] sm:$0xff] }
 0x513   :  { %v2979_v28 = vpop.eup %2978 }
 0x514   :  { %v1972_v40 = vmul.f32 %v2979_v28, %v1961_v38 }
 0x515   :  { %2245 = vmatpush.bf16.msra.mxu0 %v2729_v35 }
 0x516   :  { %v1981_v46 = vpack.c.bf16 %v1972_v40, %v1971_v42 }
 0x518   :  { %1990 = vmatmul.bf16.vlgmr.msrb.gmra.mxu0 %v1981_v46  ;;  %2004 = vmatmul.bf16.vlgmr.msrb.gmra.mxu1 %v1981_v46 }
 0x519   :  { %2018 = vmatmul.bf16.vlgmr.msra.gmra.mxu2 %v1981_v46  ;;  %2032 = vmatmul.bf16.vlgmr.msra.gmra.mxu3 %v1981_v46 }
 0x51a   :  { %2246 = vmatpush.bf16.msra.mxu0 %v2728_v63 }
 0x51e   :  { %2247 = vmatpush.bf16.msra.mxu0 %v2727_v16 }
 0x522   :  { %2248 = vmatpush.bf16.msra.mxu0 %v2726_v13 }
 0x595   :  { %v1991_v7 = vpop.f32.mrf.mxu0  ;;  %v2005_v21 = vpop.f32.mrf.mxu1 }
 0x596   :  { %v2038_v29 = vadd.f32 %v1991_v7, %v238_v57  ;;  %v2039_v31 = vadd.f32 %v2005_v21, %v287_v4  ;;  %v2741_v7 = vld [vmem:[#allocation8 + $0x38] sm:$0xff] }
 0x597   :  { %2326 = vmatpush.bf16.msra.mxu1 %v2741_v7 }
 0x598   :  { %v2612_v59 = vmul.f32 -1.442695, %v2038_v29  ;;  %v2614_v61 = vmul.f32 -1.442695, %v2039_v31 }
 0x59a   :  { %2980 = vpow2.f32 %v2612_v59 }
 0x59b   :  { %2982 = vpow2.f32 %v2614_v61 }
 0x59c   :  { %v2033_v45 = vpop.f32.mrf.mxu3  ;;  %v2019_v3 = vpop.f32.mrf.mxu2 }
 0x59d   :  { %v2041_v12 = vadd.f32 %v2033_v45, %v385_v53  ;;  %v1993_v22 = vpop.f32.mrf.mxu0  ;;  %v2007_v58 = vpop.f32.mrf.mxu1  ;;  %v2040_v50 = vadd.f32 %v2019_v3, %v336_v9  ;;  %v2740_v53 = vld [vmem:[#allocation8 + $0x30] sm:$0xff] }
 0x59e   :  { %v2042_v49 = vadd.f32 %v1993_v22, %v240_v48  ;;  %v2043_v41 = vadd.f32 %v2007_v58, %v289_v36  ;;  %2327 = vmatpush.bf16.msra.mxu1 %v2740_v53  ;;  %v2734_v53 = vld [vmem:[#allocation8] sm:$0xff] }
 0x59f   :  { %v2616_v23 = vmul.f32 -1.442695, %v2041_v12 }
 0x5a0   :  { %v2981_v55 = vpop.eup %2980  ;;  %v2613_v39 = vmul.f32 -1.442695, %v2042_v49  ;;  %v2615_v8 = vmul.f32 -1.442695, %v2043_v41 }
 0x5a1   :  { %v2983_v15 = vpop.eup %2982  ;;  %v4114_v11 = vadd.f32 1.0, %v2981_v55  ;;  %2984 = vpow2.f32 %v2616_v23 }
 0x5a2   :  { %v4116_v30 = vadd.f32 1.0, %v2983_v15  ;;  %2986 = vpow2.f32 %v2613_v39  ;;  %v2739_v15 = vld [vmem:[#allocation8 + $0x28] sm:$0xff] }
 0x5a3   :  { %2988 = vrcp.f32 %v4114_v11  ;;  %v2063_v46 = vand.u32 2147483647, %v4114_v11  ;;  %v2065_v52 = vand.u32 2147483648, %v4114_v11  ;;  %vm2059_vm11 = vweird.f32 %v4114_v11  ;;  %2328 = vmatpush.bf16.msra.mxu1 %v2739_v15 }
 0x5a4   :  { %2990 = vrcp.f32 %v4116_v30  ;;  %v2035_v6 = vpop.f32.mrf.mxu3  ;;  %v2103_v40 = vand.u32 2147483648, %v4116_v30  ;;  %v2021_v56 = vpop.f32.mrf.mxu2  ;;  %v2101_v60 = vand.u32 2147483647, %v4116_v30  ;;  %vm2097_vm12 = vweird.f32 %v4116_v30 }
 0x5a5   :  { %2992 = vpow2.f32 %v2615_v8  ;;  %v2045_v18 = vadd.f32 %v2035_v6, %v387_v2  ;;  %v2044_v31 = vadd.f32 %v2021_v56, %v338_v34  ;;  %v2066_v59 = vor.u32 1.1754944e-38, %v2065_v52 }
 0x5a6   :  { %v2104_v10 = vor.u32 1.1754944e-38, %v2103_v40  ;;  %vm2064_vm15 = vcmp.eq.f32.partialorder %v2063_v46, 8.507059e+37  ;;  %vm2102_vm0 = vcmp.eq.f32.partialorder %v2101_v60, 8.507059e+37 }
 0x5a7   :  { %v2985_v1 = vpop.eup %2984  ;;  %v2617_v38 = vmul.f32 -1.442695, %v2045_v18 }
 0x5a8   :  { %v2987_v17 = vpop.eup %2986  ;;  %v4130_v62 = vadd.f32 1.0, %v2985_v1 }
 0x5a9   :  { %v2989_v27 = vpop.eup %2988  ;;  %v4132_v26 = vadd.f32 1.0, %v2987_v17 }
 0x5aa   :  { %v2991_v20 = vpop.eup %2990  ;;  %v2055_v47 = vmul.f32 %v2989_v27, %v4114_v11  ;;  %2994 = vrcp.f32 %v4130_v62  ;;  %vm2060_vm9 = vweird.f32 %v2989_v27  ;;  %v2143_v41 = vand.u32 2147483648, %v4130_v62 }
 0x5ab   :  { %v2993_v24 = vpop.eup %2992  ;;  %v2093_v28 = vmul.f32 %v2991_v20, %v4116_v30  ;;  %2996 = vtanh.f32 %v2040_v50  ;;  %vm2098_vm10 = vweird.f32 %v2991_v20  ;;  %vm2061_vm13 = vmor %vm2059_vm11, %vm2060_vm9  ;;  %vm2074_vm1 = vweird.f32 %v4132_v26  ;;  %v2738_v50 = vld [vmem:[#allocation8 + $0x20] sm:$0xff] }
 0x5ac   :  { %v2056_v33 = vsub.f32 1.0, %v2055_v47  ;;  %2998 = vrcp.f32 %v4132_v26  ;;  %v4143_v37 = vadd.f32 1.0, %v2993_v24  ;;  %vm2099_vm14 = vmor %vm2097_vm12, %vm2098_vm10  ;;  %v2078_v30 = vand.u32 2147483647, %v4132_v26  ;;  %2329 = vmatpush.bf16.msra.mxu1 %v2738_v50 }
 0x5ad   :  { %v2094_v42 = vsub.f32 1.0, %v2093_v28  ;;  %v2080_v3 = vand.u32 2147483648, %v4132_v26  ;;  %vm2137_vm5 = vweird.f32 %v4130_v62  ;;  %v2141_v17 = vand.u32 2147483647, %v4130_v62 }
 0x5ae   :  { %v2057_v57 = vmul.f32 %v2989_v27, %v2056_v33  ;;  %3000 = vrcp.f32 %v4143_v37  ;;  %v2118_v8 = vand.u32 2147483648, %v4143_v37  ;;  %v2116_v6 = vand.u32 2147483647, %v4143_v37 }
 0x5af   :  { %v2095_v4 = vmul.f32 %v2991_v20, %v2094_v42  ;;  %3002 = vpow2.f32 %v2617_v38  ;;  %v2081_v18 = vor.u32 1.1754944e-38, %v2080_v3  ;;  %vm2112_vm8 = vweird.f32 %v4143_v37 }
 0x5b0   :  { %v4153_v21 = vpop.eup %2994  ;;  %v2058_v29 = vadd.f32 %v2989_v27, %v2057_v57  ;;  %3004 = vtanh.f32 %v2044_v31  ;;  %vm2079_vm9 = vcmp.eq.f32.partialorder %v2078_v30, 8.507059e+37  ;;  %v2119_v47 = vor.u32 1.1754944e-38, %v2118_v8 }
 0x5b1   :  { %v2997_v32 = vpop.eup %2996  ;;  %v2096_v61 = vadd.f32 %v2991_v20, %v2095_v4  ;;  %v2133_v5 = vmul.f32 %v4153_v21, %v4130_v62  ;;  %vm2138_vm3 = vweird.f32 %v4153_v21  ;;  %v2144_v24 = vor.u32 1.1754944e-38, %v2143_v41 }
 0x5b2   :  { %v2999_v54 = vpop.eup %2998  ;;  %v2062_v48 = vsel %vm2061_vm13, %v2989_v27, %v2058_v29  ;;  %vm4178_vm7 = vmor %vm2137_vm5, %vm2138_vm3  ;;  %vm2117_vm11 = vcmp.eq.f32.partialorder %v2116_v6, 8.507059e+37  ;;  %vm2142_vm12 = vcmp.eq.f32.partialorder %v2141_v17, 8.507059e+37 }
 0x5b3   :  { %v2067_v14 = vsel %vm2064_vm15, %v2066_v59, %v2062_v48  ;;  %v2100_v36 = vsel %vm2099_vm14, %v2991_v20, %v2096_v61  ;;  %v2134_v45 = vsub.f32 1.0, %v2133_v5  ;;  %v2070_v12 = vmul.f32 %v2999_v54, %v4132_v26  ;;  %v2737_v59 = vld [vmem:[#allocation8 + $0x18] sm:$0xff]  ;;  %v2736_v61 = vld [vmem:[#allocation8 + $0x10] sm:$0xff]  ;;  %v2735_v5 = vld [vmem:[#allocation8 + $0x8] sm:$0xff] }
 0x5b4   :  { %v3001_v22 = vpop.eup %3000  ;;  %v2105_v58 = vsel %vm2102_vm0, %v2104_v10, %v2100_v36  ;;  %v2164_v49 = vmul.f32 %v2997_v32, %v2067_v14  ;;  %vm2075_vm2 = vweird.f32 %v2999_v54  ;;  %2330 = vmatpush.bf16.msra.mxu1 %v2737_v59  ;;  %v2754_v10 = vld [vmem:[%s4202_s5] ss:$0 sm:$0xff]  ;;  %s2348_s5 = sshll.u32 %s4205_s8, 4  ;;  %s2349_s5 = int_to_ptr.hbm [resolvable:$true] %s2348_s5 }
 0x5b5   :  { %v2162_v23 = vmul.f32 %v2105_v58, %v4074_v51  ;;  %v2135_v19 = vmul.f32 %v4153_v21, %v2134_v45  ;;  %v2071_v55 = vsub.f32 1.0, %v2070_v12  ;;  %v2108_v39 = vmul.f32 %v3001_v22, %v4143_v37  ;;  %v3003_v11 = vpop.eup %3002  ;;  %vm2076_vm6 = vmor %vm2074_vm1, %vm2075_vm2  ;;  %v2755_v58 = vld [vmem:[%s4204_s7] ss:$0 sm:$0xff] }
 0x5b6   :  { %v2131_v0 = vadd.f32 1.0, %v3003_v11  ;;  %vm2113_vm4 = vweird.f32 %v3001_v22  ;;  %v3005_v63 = vpop.eup %3004 }
 0x5b7   :  { %v2166_v35 = vadd.f32 %v2164_v49, %v2162_v23  ;;  %v2109_v44 = vsub.f32 1.0, %v2108_v39  ;;  %v2072_v9 = vmul.f32 %v2999_v54, %v2071_v55  ;;  %v2136_v51 = vadd.f32 %v4153_v21, %v2135_v19  ;;  %vm2114_vm10 = vmor %vm2112_vm8, %vm2113_vm4 }
 0x5b8   :  { %v2158_v13 = vand.u32 2147483648, %v2131_v0  ;;  %v2156_v60 = vand.u32 2147483647, %v2131_v0  ;;  %vm2152_vm14 = vweird.f32 %v2131_v0  ;;  %2331 = vmatpush.bf16.msra.mxu1 %v2736_v61 }
 0x5b9   :  { %3006 = vtanh.f32 %v2166_v35  ;;  %v2110_v2 = vmul.f32 %v3001_v22, %v2109_v44  ;;  %v2073_v1 = vadd.f32 %v2999_v54, %v2072_v9  ;;  %v2140_v26 = vsel %vm4178_vm7, %v4153_v21, %v2136_v51 }
 0x5ba   :  { %3008 = vrcp.f32 %v2131_v0  ;;  %v2145_v38 = vsel %vm2142_vm12, %v2144_v24, %v2140_v26  ;;  %v2159_v7 = vor.u32 1.1754944e-38, %v2158_v13  ;;  %vm2157_vm0 = vcmp.eq.f32.partialorder %v2156_v60, 8.507059e+37 }
 0x5bb   :  { %v2077_v16 = vsel %vm2076_vm6, %v2999_v54, %v2073_v1  ;;  %v2111_v20 = vadd.f32 %v3001_v22, %v2110_v2 }
 0x5bc   :  { %v2082_v62 = vsel %vm2079_vm9, %v2081_v18, %v2077_v16  ;;  %2332 = vmatpush.bf16.msra.mxu1 %v2735_v5 }
 0x5bd   :  { %v2115_v25 = vsel %vm2114_vm10, %v3001_v22, %v2111_v20  ;;  %v2165_v34 = vmul.f32 %v3005_v63, %v2082_v62 }
 0x5be   :  { %v2120_v28 = vsel %vm2117_vm11, %v2119_v47, %v2115_v25 }
 0x5bf   :  { %v3007_v33 = vpop.eup %3006  ;;  %v2163_v37 = vmul.f32 %v2120_v28, %v4082_v43 }
 0x5c0   :  { %v3009_v42 = vpop.eup %3008  ;;  %v2170_v40 = vmul.f32 %v3007_v33, %v2145_v38  ;;  %2333 = vmatpush.bf16.msra.mxu1 %v2734_v53 }
 0x5c1   :  { %v2167_v46 = vadd.f32 %v2165_v34, %v2163_v37  ;;  %v2148_v52 = vmul.f32 %v3009_v42, %v2131_v0  ;;  %vm2153_vm13 = vweird.f32 %v3009_v42 }
 0x5c2   :  { %vm2154_vm15 = vmor %vm2152_vm14, %vm2153_vm13 }
 0x5c3   :  { %3010 = vtanh.f32 %v2167_v46  ;;  %v2149_v56 = vsub.f32 1.0, %v2148_v52 }
 0x5c5   :  { %v2150_v57 = vmul.f32 %v3009_v42, %v2149_v56 }
 0x5c7   :  { %v2151_v4 = vadd.f32 %v3009_v42, %v2150_v57 }
 0x5c9   :  { %v3011_v21 = vpop.eup %3010  ;;  %v2155_v29 = vsel %vm2154_vm15, %v3009_v42, %v2151_v4 }
 0x5ca   :  { %v2160_v31 = vsel %vm2157_vm0, %v2159_v7, %v2155_v29 }
 0x5cb   :  { %v2171_v43 = vmul.f32 %v3011_v21, %v2160_v31 }
 0x5cd   :  { %v2172_v32 = vpack.c.bf16 %v2171_v43, %v2170_v40 }
 0x5cf   :  { %2249 = vmatmul.bf16.vlgmr.msra.gmra.mxu0 %v2172_v32 }
 0x64c   :  { %v2250_v54 = vpop.f32.mrf.mxu0 }
 0x64d   :  { %v2251_v48 = vadd.f32 %v2754_v10, %v2250_v54 }
 0x64f   :  { %v2255_v45 = vmax.f32 %v2251_v48, 0.0 }
 0x654   :  { %v2252_v14 = vpop.f32.mrf.mxu0 }
 0x655   :  { %v2253_v36 = vadd.f32 %v2754_v10, %v2252_v14 }
 0x657   :  { %v2256_v12 = vmax.f32 %v2253_v36, 0.0 }
 0x659   :  { %v2257_v22 = vpack.c.bf16 %v2256_v12, %v2255_v45 }
 0x65b   :  { %2334 = vmatmul.bf16.vlgmr.msra.gmra.mxu1 %v2257_v22 }
 0x6d8   :  { %v2335_v49 = vpop.f32.mrf.mxu1 }
 0x6d9   :  { %v2336_v41 = vadd.f32 %v2755_v58, %v2335_v49 }
 0x6db   :  { %2340 = vst [vmem:[#allocation9] sm:$0xff] %v2336_v41 }
 0x6e0   :  { %v2337_v23 = vpop.f32.mrf.mxu1 }
 0x6e1   :  { %v2338_v19 = vadd.f32 %v2755_v58, %v2337_v23 }
 0x6e3   :  { %2341 = vst [vmem:[#allocation9 + $0x8] sm:$0xff] %v2338_v19 }
 0x6e4   :  { %2354 = dma.vmem_to_hbm [thread:$0]  %s2347_s10, 256, %s2349_s5, [#allocation5], %s3122_s13, %s3122_s13, %s3123_s14  }
 0x6e5   :  { %3112 = dma.done.wait [#allocation5], 256  }
 0x6e6   :  { %3113 = vsyncadd [#allocation5], 4294967040 }
 0x6e7   :  { %2359 = vsyncpa [#allocation4], 1 }
 0x6e8   :  { %2360 = vsyncpa [#allocation7], 1 }
 0x6e9   :  { %2361 = vsyncpa [#allocation5], 1 }

</bundles_post_ra>
